<compile_context>
chip_gen: v5e
topology: v5e:2x2
jax: 0.10.0
libtpu: 0.0.40
codegen_flags: <defaults>
</compile_context>

<pallas_src>
import functools

import jax
import jax.numpy as jnp
from jax.experimental import pallas as pl
from jax.experimental.pallas import tpu as pltpu

D_IN = 512        # MLP input size
H1 = 512          # hidden_sizes[0]
H2 = 256          # hidden_sizes[1]
N_LABELS = 14     # len(LABEL_COLUMNS)
L_PAD = 128       # label dim padded to one full lane width; masked in reductions
BN_EPS = 1e-5
ALPHA = 0.5


def _round_up(x, m):
    return ((x + m - 1) // m) * m


def _vmem_limit_bytes():
    """~75% of physical VMEM (96 MiB on v5e/v6e, 48 MiB on v7x), safe fallback."""
    try:
        cap = int(pltpu.get_tpu_info().vmem_capacity_bytes)
    except Exception:
        cap = 64 * 1024 * 1024
    return max(32 * 1024 * 1024, min((cap * 3) // 4, 96 * 1024 * 1024))


# ---------------------------------------------------------------------------
# Kernels
# ---------------------------------------------------------------------------

def _row_mask(tile_idx, tm, n_valid):
    """(tm, 1) f32 mask of rows that correspond to real (un-padded) samples."""
    rows = jax.lax.broadcasted_iota(jnp.int32, (tm, 1), 0) + tile_idx * tm
    return (rows < n_valid).astype(jnp.float32)


def _pass1_kernel(xp_ref, xt_ref, w1_ref, b1_ref, h1_ref, stats_ref, mse_ref,
                  *, tm, n_valid, masked):
    """relu(x @ W1 + b1) for y_pred & y_true; MSE partial + h1 sum/sumsq."""
    xp = xp_ref[...]                                        # (tm, D_IN) f32
    xt = xt_ref[...]

    # ---- MSE partial (pure f32; padded rows are zeros -> contribute 0) ----
    diff = xp - xt
    mse_ref[...] = jnp.full((1, 1, 128), jnp.sum(diff * diff), jnp.float32)

    # ---- linear layer 1 (two dots against the resident weight, no concat) ----
    hp = jnp.maximum(
        jnp.dot(xp.astype(jnp.bfloat16), w1_ref[...],
                preferred_element_type=jnp.float32) + b1_ref[...], 0.0)
    ht = jnp.maximum(
        jnp.dot(xt.astype(jnp.bfloat16), w1_ref[...],
                preferred_element_type=jnp.float32) + b1_ref[...], 0.0)

    hpb = hp.astype(jnp.bfloat16)                           # bf16 inter-pass storage
    htb = ht.astype(jnp.bfloat16)
    h1_ref[0] = hpb
    h1_ref[1] = htb

    # ---- one-traversal BN stats on the values that will actually be normalized
    hpf = hpb.astype(jnp.float32)
    htf = htb.astype(jnp.float32)
    if masked:
        rmask = _row_mask(pl.program_id(0), tm, n_valid)
        hpf = hpf * rmask
        htf = htf * rmask
    stats_ref[0] = jnp.concatenate(
        [jnp.sum(hpf, axis=0, keepdims=True),               # row 0: sum  (y_pred)
         jnp.sum(htf, axis=0, keepdims=True),               # row 1: sum  (y_true)
         jnp.sum(hpf * hpf, axis=0, keepdims=True),         # row 2: sumsq(y_pred)
         jnp.sum(htf * htf, axis=0, keepdims=True)],        # row 3: sumsq(y_true)
        axis=0)


def _pass2_kernel(h1_ref, sc1_ref, sh1_ref, w2_ref, b2_ref, h2_ref, stats_ref,
                  *, tm, n_valid, masked):
    """relu(BN1(h1) @ W2 + b2) for both inputs; h2 sum/sumsq partials."""
    # BN1 as per-input affine; leading-dim reshape (free) builds the 2*tm operand
    a = h1_ref[...].astype(jnp.float32) * sc1_ref[...] + sh1_ref[...]   # (2, tm, H1)
    a2 = a.reshape(2 * tm, H1).astype(jnp.bfloat16)

    h = jnp.maximum(
        jnp.dot(a2, w2_ref[...], preferred_element_type=jnp.float32) + b2_ref[...],
        0.0)                                                # (2tm, H2) f32
    hb = h.astype(jnp.bfloat16)
    h2_ref[...] = hb.reshape(2, tm, H2)

    hf = hb.astype(jnp.float32)
    hp = hf[:tm]
    ht = hf[tm:]
    if masked:
        rmask = _row_mask(pl.program_id(0), tm, n_valid)
        hp = hp * rmask
        ht = ht * rmask
    stats_ref[0] = jnp.concatenate(
        [jnp.sum(hp, axis=0, keepdims=True),
         jnp.sum(ht, axis=0, keepdims=True),
         jnp.sum(hp * hp, axis=0, keepdims=True),
         jnp.sum(ht * ht, axis=0, keepdims=True)], axis=0)


def _pass3_kernel(h2_ref, sc2_ref, sh2_ref, w3_ref, b3_ref, bce_ref,
                  *, tm, n_valid, masked):
    """Output layer on BN2(h2) for both inputs; masked BCE-with-logits partial."""
    a = h2_ref[...].astype(jnp.float32) * sc2_ref[...] + sh2_ref[...]   # (2, tm, H2)
    a2 = a.reshape(2 * tm, H2).astype(jnp.bfloat16)

    logits = jnp.dot(a2, w3_ref[...],
                     preferred_element_type=jnp.float32) + b3_ref[...]  # (2tm, L_PAD)
    x = logits[:tm]                                         # y_pred logits
    z = logits[tm:]                                         # y_true logits (BCE target)

    # BCEWithLogits(x, target=z), numerically stable form, all f32
    elem = jnp.maximum(x, 0.0) - x * z + jnp.log1p(jnp.exp(-jnp.abs(x)))

    lane = jax.lax.broadcasted_iota(jnp.int32, (1, L_PAD), 1)
    elem = elem * (lane < N_LABELS).astype(jnp.float32)     # mask padded label cols
    if masked:
        elem = elem * _row_mask(pl.program_id(0), tm, n_valid)

    bce_ref[...] = jnp.full((1, 1, 128), jnp.sum(elem), jnp.float32)


# ---------------------------------------------------------------------------
# Wrapper
# ---------------------------------------------------------------------------

def _bn_affine(gamma, beta, sums, sumsqs, n):
    """Finalize training-mode BN into per-input scale/shift, shape (2, 1, H)."""
    mu = sums / n
    var = jnp.maximum(sumsqs / n - mu * mu, 0.0)            # clamp: guard E[x^2]-mu^2
    scale = gamma * jax.lax.rsqrt(var + BN_EPS)             # (2, H)
    shift = beta - mu * scale                               # (2, H)
    return scale[:, None, :], shift[:, None, :]


def mse_bce_loss(y_pred, y_true, p, *, tm=None):
    n = y_pred.size // D_IN
    if tm is None:
        if n <= 512:
            tm = _round_up(n, 8)                            # single small tile
        else:
            # >= 2 row tiles (feeds both v7x TensorCores); cap 1024 keeps the
            # double-buffered blocks well inside every generation's VMEM.
            tm = min(1024, _round_up(-(-n // 2), 8))
    n_tiles = pl.cdiv(n, tm)
    n_pad = n_tiles * tm
    masked = (n_pad != n)

    yp = y_pred.reshape(n, D_IN).astype(jnp.float32)
    yt = y_true.reshape(n, D_IN).astype(jnp.float32)
    if masked:
        # Only the ragged tail is padded; aligned batches copy nothing.
        yp = jnp.pad(yp, ((0, n_pad - n), (0, 0)))
        yt = jnp.pad(yt, ((0, n_pad - n), (0, 0)))

    # bf16 matmul operands (weights); biases / BN params stay f32
    w1 = p["w1"].astype(jnp.bfloat16)
    w2 = p["w2"].astype(jnp.bfloat16)
    w3 = p["w3"].astype(jnp.bfloat16)
    b1, b2, b3 = p["b1"], p["b2"], p["b3"]

    cparams = pltpu.CompilerParams(
        dimension_semantics=("parallel",),      # row tiles are independent
        vmem_limit_bytes=_vmem_limit_bytes(),
    )

    # ---------------- pass 1: Linear1 + ReLU, MSE & BN1 partials ----------------
    h1, st1, mse_parts = pl.pallas_call(
        functools.partial(_pass1_kernel, tm=tm, n_valid=n, masked=masked),
        grid_spec=pltpu.PrefetchScalarGridSpec(
            num_scalar_prefetch=0,
            grid=(n_tiles,),
            in_specs=[
                pl.BlockSpec((tm, D_IN), lambda i: (i, 0)),      # y_pred rows
                pl.BlockSpec((tm, D_IN), lambda i: (i, 0)),      # y_true rows
                pl.BlockSpec((D_IN, H1), lambda i: (0, 0)),      # resident weight
                pl.BlockSpec((1, H1), lambda i: (0, 0)),         # resident bias
            ],
            out_specs=(
                pl.BlockSpec((2, tm, H1), lambda i: (0, i, 0)),
                pl.BlockSpec((1, 4, H1), lambda i: (i, 0, 0)),
                pl.BlockSpec((1, 1, 128), lambda i: (i, 0, 0)),
            ),
        ),
        out_shape=(jax.ShapeDtypeStruct((2, n_pad, H1), jnp.bfloat16),
                   jax.ShapeDtypeStruct((n_tiles, 4, H1), jnp.float32),
                   jax.ShapeDtypeStruct((n_tiles, 1, 128), jnp.float32)),
        compiler_params=cparams,
    )(yp, yt, w1, b1)

    mse = jnp.sum(mse_parts[:, 0, 0]) / (n * D_IN)
    st1 = jnp.sum(st1, axis=0)                               # (4, H1)
    sc1, sh1 = _bn_affine(p["g1"], p["be1"], st1[0:2], st1[2:4], n)

    # ---------------- pass 2: BN1 + Linear2 + ReLU, BN2 partials ----------------
    h2, st2 = pl.pallas_call(
        functools.partial(_pass2_kernel, tm=tm, n_valid=n, masked=masked),
        grid_spec=pltpu.PrefetchScalarGridSpec(
            num_scalar_prefetch=0,
            grid=(n_tiles,),
            in_specs=[
                pl.BlockSpec((2, tm, H1), lambda i: (0, i, 0)),
                pl.BlockSpec((2, 1, H1), lambda i: (0, 0, 0)),   # resident scale
                pl.BlockSpec((2, 1, H1), lambda i: (0, 0, 0)),   # resident shift
                pl.BlockSpec((H1, H2), lambda i: (0, 0)),        # resident weight
                pl.BlockSpec((1, H2), lambda i: (0, 0)),         # resident bias
            ],
            out_specs=(
                pl.BlockSpec((2, tm, H2), lambda i: (0, i, 0)),
                pl.BlockSpec((1, 4, H2), lambda i: (i, 0, 0)),
            ),
        ),
        out_shape=(jax.ShapeDtypeStruct((2, n_pad, H2), jnp.bfloat16),
                   jax.ShapeDtypeStruct((n_tiles, 4, H2), jnp.float32)),
        compiler_params=cparams,
    )(h1, sc1, sh1, w2, b2)

    st2 = jnp.sum(st2, axis=0)
    sc2, sh2 = _bn_affine(p["g2"], p["be2"], st2[0:2], st2[2:4], n)

    # ---------------- pass 3: BN2 + output layer + BCE partials -----------------
    bce_parts = pl.pallas_call(
        functools.partial(_pass3_kernel, tm=tm, n_valid=n, masked=masked),
        grid_spec=pltpu.PrefetchScalarGridSpec(
            num_scalar_prefetch=0,
            grid=(n_tiles,),
            in_specs=[
                pl.BlockSpec((2, tm, H2), lambda i: (0, i, 0)),
                pl.BlockSpec((2, 1, H2), lambda i: (0, 0, 0)),
                pl.BlockSpec((2, 1, H2), lambda i: (0, 0, 0)),
                pl.BlockSpec((H2, L_PAD), lambda i: (0, 0)),
                pl.BlockSpec((1, L_PAD), lambda i: (0, 0)),
            ],
            out_specs=pl.BlockSpec((1, 1, 128), lambda i: (i, 0, 0)),
        ),
        out_shape=jax.ShapeDtypeStruct((n_tiles, 1, 128), jnp.float32),
        compiler_params=cparams,
    )(h2, sc2, sh2, w3, b3)

    bce = jnp.sum(bce_parts[:, 0, 0]) / (n * N_LABELS)
    return (1.0 - ALPHA) * mse + ALPHA * bce


# ---------------------------------------------------------------------------
# Synthetic weights + references
# ---------------------------------------------------------------------------

def init_params(key):
    """Deterministic synthetic MLP weights (PyTorch Linear-style uniform init)."""
    def lin(k, fan_in, fan_out):
        bound = 1.0 / jnp.sqrt(jnp.float32(fan_in))
        kw, kb = jax.random.split(k)
        w = jax.random.uniform(kw, (fan_in, fan_out), jnp.float32, -bound, bound)
        b = jax.random.uniform(kb, (1, fan_out), jnp.float32, -bound, bound)
        return w, b

    k1, k2, k3 = jax.random.split(key, 3)
    w1, b1 = lin(k1, D_IN, H1)
    w2, b2 = lin(k2, H1, H2)
    w3, b3 = lin(k3, H2, N_LABELS)
    w3p = jnp.zeros((H2, L_PAD), jnp.float32).at[:, :N_LABELS].set(w3)
    b3p = jnp.zeros((1, L_PAD), jnp.float32).at[:, :N_LABELS].set(b3)
    return {
        "w1": w1, "b1": b1,
        "g1": jnp.ones((1, H1), jnp.float32), "be1": jnp.zeros((1, H1), jnp.float32),
        "w2": w2, "b2": b2,
        "g2": jnp.ones((1, H2), jnp.float32), "be2": jnp.zeros((1, H2), jnp.float32),
        "w3": w3p, "b3": b3p,
    }


def reference_loss(y_pred, y_true, p):
    """Pure-JAX reference with the SAME numerics as the kernel
    (bf16 matmul operands + bf16 inter-layer storage, f32 accumulation,
    one-pass BN batch stats on the bf16-rounded activations)."""
    yp = y_pred.reshape(-1, D_IN).astype(jnp.float32)
    yt = y_true.reshape(-1, D_IN).astype(jnp.float32)
    mse = jnp.mean((yp - yt) ** 2)

    def dot16(a, w, b):
        return jnp.dot(a.astype(jnp.bfloat16), w.astype(jnp.bfloat16),
                       preferred_element_type=jnp.float32) + b

    def bn(h, gamma, beta):
        mu = jnp.mean(h, axis=0, keepdims=True)
        var = jnp.maximum(jnp.mean(h * h, axis=0, keepdims=True) - mu * mu, 0.0)
        scale = gamma * jax.lax.rsqrt(var + BN_EPS)
        return h * scale + (beta - mu * scale)

    def mlp(v):
        h = jnp.maximum(dot16(v, p["w1"], p["b1"]), 0.0)
        h = h.astype(jnp.bfloat16).astype(jnp.float32)       # bf16 inter-pass storage
        h = bn(h, p["g1"], p["be1"])
        h = jnp.maximum(dot16(h, p["w2"], p["b2"]), 0.0)
        h = h.astype(jnp.bfloat16).astype(jnp.float32)
        h = bn(h, p["g2"], p["be2"])
        return dot16(h, p["w3"], p["b3"])[:, :N_LABELS]

    x = mlp(yp)
    z = mlp(yt)
    bce = jnp.mean(jnp.maximum(x, 0.0) - x * z + jnp.log1p(jnp.exp(-jnp.abs(x))))
    return (1.0 - ALPHA) * mse + ALPHA * bce


def reference_loss_f32(y_pred, y_true, p):
    """All-f32, textbook-BatchNorm reference (the PyTorch module's math)."""
    yp = y_pred.reshape(-1, D_IN)
    yt = y_true.reshape(-1, D_IN)
    mse = jnp.mean((yp - yt) ** 2)

    def bn(h, gamma, beta):
        mu = jnp.mean(h, axis=0, keepdims=True)
        var = jnp.mean((h - mu) ** 2, axis=0, keepdims=True)
        return (h - mu) * jax.lax.rsqrt(var + BN_EPS) * gamma + beta

    def mlp(v):
        h = jnp.maximum(v @ p["w1"] + p["b1"], 0.0)
        h = bn(h, p["g1"], p["be1"])
        h = jnp.maximum(h @ p["w2"] + p["b2"], 0.0)
        h = bn(h, p["g2"], p["be2"])
        return (h @ p["w3"] + p["b3"])[:, :N_LABELS]

    x = mlp(yp)
    z = mlp(yt)
    bce = jnp.mean(jnp.maximum(x, 0.0) - x * z + jnp.log1p(jnp.exp(-jnp.abs(x))))
    return (1.0 - ALPHA) * mse + ALPHA * bce


if __name__ == "__main__":
    key = jax.random.PRNGKey(0)
    kp, kt, kw = jax.random.split(key, 3)
    params = init_params(kw)

    # ---- small aligned case: (B, T, 512) = (2, 4, 512), single tile ----
    y_pred = jax.random.normal(kp, (2, 4, D_IN), jnp.float32)
    y_true = jax.random.normal(kt, (2, 4, D_IN), jnp.float32)

    loss = jax.block_until_ready(jax.jit(mse_bce_loss)(y_pred, y_true, params))
    ref = jax.block_until_ready(reference_loss(y_pred, y_true, params))
    ref32 = jax.block_until_ready(reference_loss_f32(y_pred, y_true, params))

    assert jnp.isfinite(loss)
    # exact-ish check vs a reference using identical (bf16) numerics
    assert jnp.allclose(loss, ref, rtol=1e-4, atol=1e-4), (loss, ref)
    # loose check vs the all-f32 PyTorch-style math (bf16 MXU/storage tradeoff)
    assert jnp.allclose(loss, ref32, rtol=5e-2, atol=5e-2), (loss, ref32)

    # ---- multi-tile + ragged-tail path: n=20 rows, tm=8 -> 3 tiles, 4 padded rows
    kp2, kt2 = jax.random.split(kp)
    y_pred2 = jax.random.normal(kp2, (2, 10, D_IN), jnp.float32)
    y_true2 = jax.random.normal(kt2, (2, 10, D_IN), jnp.float32)
    loss2 = jax.block_until_ready(
        jax.jit(functools.partial(mse_bce_loss, tm=8))(y_pred2, y_true2, params))
    ref2 = jax.block_until_ready(reference_loss(y_pred2, y_true2, params))
    assert jnp.isfinite(loss2)
    assert jnp.allclose(loss2, ref2, rtol=1e-4, atol=1e-4), (loss2, ref2)

    print("KERNEL_OK")
</pallas_src>

<mosaic_0001>
module attributes {stable_mosaic.version = 11 : i64} {
  func.func @_pass2_kernel(%arg0: i32, %arg1: memref<2x8x512xbf16, #tpu.memory_space<vmem>>, %arg2: memref<2x1x512xf32, #tpu.memory_space<vmem>>, %arg3: memref<2x1x512xf32, #tpu.memory_space<vmem>>, %arg4: memref<512x256xbf16, #tpu.memory_space<vmem>>, %arg5: memref<1x256xf32, #tpu.memory_space<vmem>>, %arg6: memref<2x8x256xbf16, #tpu.memory_space<vmem>>, %arg7: memref<1x4x256xf32, #tpu.memory_space<vmem>>) attributes {dimension_semantics = [#tpu.dimension_semantics<parallel>], iteration_bounds = array<i64: 1>, scalar_prefetch = 0 : i64, scratch_operands = 0 : i64, tpu.core_type = #tpu.core_type<tc>, window_params = [{transform_indices = @transform_0, window_bounds = array<i64: 2, 8, 512>}, {pipeline_mode = #tpu.pipeline_mode<synchronous>, transform_indices = @transform_1, window_bounds = array<i64: 2, 1, 512>}, {pipeline_mode = #tpu.pipeline_mode<synchronous>, transform_indices = @transform_2, window_bounds = array<i64: 2, 1, 512>}, {pipeline_mode = #tpu.pipeline_mode<synchronous>, transform_indices = @transform_3, window_bounds = array<i64: 512, 256>}, {pipeline_mode = #tpu.pipeline_mode<synchronous>, transform_indices = @transform_4, window_bounds = array<i64: 1, 256>}, {transform_indices = @transform_5, window_bounds = array<i64: 2, 8, 256>}, {transform_indices = @transform_6, window_bounds = array<i64: 1, 4, 256>}]} {
    %c0 = arith.constant 0 : index
    %c0_0 = arith.constant 0 : index
    %c0_1 = arith.constant 0 : index
    %0 = vector.load %arg1[%c0, %c0_0, %c0_1] : memref<2x8x512xbf16, #tpu.memory_space<vmem>>, vector<2x8x512xbf16>
    %1 = arith.extf %0 : vector<2x8x512xbf16> to vector<2x8x512xf32>
    %c0_2 = arith.constant 0 : index
    %c0_3 = arith.constant 0 : index
    %c0_4 = arith.constant 0 : index
    %2 = vector.load %arg2[%c0_2, %c0_3, %c0_4] : memref<2x1x512xf32, #tpu.memory_space<vmem>>, vector<2x1x512xf32>
    %3 = vector.broadcast %2 : vector<2x1x512xf32> to vector<2x8x512xf32>
    %4 = arith.mulf %1, %3 : vector<2x8x512xf32>
    %c0_5 = arith.constant 0 : index
    %c0_6 = arith.constant 0 : index
    %c0_7 = arith.constant 0 : index
    %5 = vector.load %arg3[%c0_5, %c0_6, %c0_7] : memref<2x1x512xf32, #tpu.memory_space<vmem>>, vector<2x1x512xf32>
    %6 = vector.broadcast %5 : vector<2x1x512xf32> to vector<2x8x512xf32>
    %7 = arith.addf %4, %6 : vector<2x8x512xf32>
    %8 = vector.shape_cast %7 : vector<2x8x512xf32> to vector<16x512xf32>
    %9 = arith.truncf %8 : vector<16x512xf32> to vector<16x512xbf16>
    %c0_8 = arith.constant 0 : index
    %c0_9 = arith.constant 0 : index
    %10 = vector.load %arg4[%c0_8, %c0_9] : memref<512x256xbf16, #tpu.memory_space<vmem>>, vector<512x256xbf16>
    %cst = arith.constant dense<0.000000e+00> : vector<16x256xf32>
    %11 = tpu.matmul %9, %10, %cst {dimension_numbers = #tpu.dot_dimension_numbers<[1], [0], [0], [1], [0, 0, 1, 1], [], []>} : vector<16x512xbf16>, vector<512x256xbf16>, vector<16x256xf32> -> vector<16x256xf32>
    %c0_10 = arith.constant 0 : index
    %c0_11 = arith.constant 0 : index
    %12 = vector.load %arg5[%c0_10, %c0_11] : memref<1x256xf32, #tpu.memory_space<vmem>>, vector<1x256xf32>
    %13 = vector.broadcast %12 : vector<1x256xf32> to vector<16x256xf32>
    %14 = arith.addf %11, %13 : vector<16x256xf32>
    %cst_12 = arith.constant 0.000000e+00 : f32
    %15 = vector.broadcast %cst_12 : f32 to vector<16x256xf32>
    %16 = arith.maximumf %14, %15 : vector<16x256xf32>
    %17 = arith.truncf %16 : vector<16x256xf32> to vector<16x256xbf16>
    %18 = vector.shape_cast %17 : vector<16x256xbf16> to vector<2x8x256xbf16>
    %c0_13 = arith.constant 0 : index
    %c0_14 = arith.constant 0 : index
    %c0_15 = arith.constant 0 : index
    %19 = vector.load %arg6[%c0_13, %c0_14, %c0_15] : memref<2x8x256xbf16, #tpu.memory_space<vmem>>, vector<2x8x256xbf16>
    tpu.vector_store %arg6[%c0_13, %c0_14, %c0_15], %18 {strides = array<i32>} : memref<2x8x256xbf16, #tpu.memory_space<vmem>>, vector<2x8x256xbf16>,
    %20 = arith.extf %17 : vector<16x256xbf16> to vector<16x256xf32>
    %21 = vector.extract_strided_slice %20 {offsets = [0, 0], sizes = [8, 256], strides = [1, 1]} : vector<16x256xf32> to vector<8x256xf32>
    %22 = vector.extract_strided_slice %20 {offsets = [8, 0], sizes = [8, 256], strides = [1, 1]} : vector<16x256xf32> to vector<8x256xf32>
    %cst_16 = arith.constant dense<0.000000e+00> : vector<256xf32>
    %23 = vector.multi_reduction <add>, %21, %cst_16 [0] : vector<8x256xf32> to vector<256xf32>
    %24 = vector.shape_cast %23 : vector<256xf32> to vector<1x256xf32>
    %cst_17 = arith.constant dense<0.000000e+00> : vector<256xf32>
    %25 = vector.multi_reduction <add>, %22, %cst_17 [0] : vector<8x256xf32> to vector<256xf32>
    %26 = vector.shape_cast %25 : vector<256xf32> to vector<1x256xf32>
    %27 = arith.mulf %21, %21 : vector<8x256xf32>
    %cst_18 = arith.constant dense<0.000000e+00> : vector<256xf32>
    %28 = vector.multi_reduction <add>, %27, %cst_18 [0] : vector<8x256xf32> to vector<256xf32>
    %29 = vector.shape_cast %28 : vector<256xf32> to vector<1x256xf32>
    %30 = arith.mulf %22, %22 : vector<8x256xf32>
    %cst_19 = arith.constant dense<0.000000e+00> : vector<256xf32>
    %31 = vector.multi_reduction <add>, %30, %cst_19 [0] : vector<8x256xf32> to vector<256xf32>
    %32 = vector.shape_cast %31 : vector<256xf32> to vector<1x256xf32>
    %33 = tpu.concatenate %24, %26, %29, %32 in 0 : vector<1x256xf32>, vector<1x256xf32>, vector<1x256xf32>, vector<1x256xf32> -> vector<4x256xf32>
    %c0_20 = arith.constant 0 : index
    %c0_21 = arith.constant 0 : index
    %c0_22 = arith.constant 0 : index
    %34 = vector.load %arg7[%c0_20, %c0_21, %c0_22] : memref<1x4x256xf32, #tpu.memory_space<vmem>>, vector<1x4x256xf32>
    %35 = vector.shape_cast %34 : vector<1x4x256xf32> to vector<4x256xf32>
    %36 = vector.shape_cast %33 : vector<4x256xf32> to vector<1x4x256xf32>
    tpu.vector_store %arg7[%c0_20, %c0_21, %c0_22], %36 {strides = array<i32>} : memref<1x4x256xf32, #tpu.memory_space<vmem>>, vector<1x4x256xf32>,
    return
  }
  func.func @transform_0(%arg0: i32) -> (i32, i32, i32) {
    %c0_i32 = arith.constant 0 : i32
    %c0_i32_0 = arith.constant 0 : i32
    %c0_i32_1 = arith.constant 0 : i32
    return %c0_i32, %arg0, %c0_i32_0 : i32, i32, i32
  }
  func.func @transform_1(%arg0: i32) -> (i32, i32, i32) {
    %c0_i32 = arith.constant 0 : i32
    %c0_i32_0 = arith.constant 0 : i32
    %c0_i32_1 = arith.constant 0 : i32
    %c0_i32_2 = arith.constant 0 : i32
    return %c0_i32, %c0_i32_0, %c0_i32_1 : i32, i32, i32
  }
  func.func @transform_2(%arg0: i32) -> (i32, i32, i32) {
    %c0_i32 = arith.constant 0 : i32
    %c0_i32_0 = arith.constant 0 : i32
    %c0_i32_1 = arith.constant 0 : i32
    %c0_i32_2 = arith.constant 0 : i32
    return %c0_i32, %c0_i32_0, %c0_i32_1 : i32, i32, i32
  }
  func.func @transform_3(%arg0: i32) -> (i32, i32) {
    %c0_i32 = arith.constant 0 : i32
    %c0_i32_0 = arith.constant 0 : i32
    %c0_i32_1 = arith.constant 0 : i32
    return %c0_i32, %c0_i32_0 : i32, i32
  }
  func.func @transform_4(%arg0: i32) -> (i32, i32) {
    %c0_i32 = arith.constant 0 : i32
    %c0_i32_0 = arith.constant 0 : i32
    %c0_i32_1 = arith.constant 0 : i32
    return %c0_i32, %c0_i32_0 : i32, i32
  }
  func.func @transform_5(%arg0: i32) -> (i32, i32, i32) {
    %c0_i32 = arith.constant 0 : i32
    %c0_i32_0 = arith.constant 0 : i32
    %c0_i32_1 = arith.constant 0 : i32
    return %c0_i32, %arg0, %c0_i32_0 : i32, i32, i32
  }
  func.func @transform_6(%arg0: i32) -> (i32, i32, i32) {
    %c0_i32 = arith.constant 0 : i32
    %c0_i32_0 = arith.constant 0 : i32
    %c0_i32_1 = arith.constant 0 : i32
    return %arg0, %c0_i32, %c0_i32_0 : i32, i32, i32
  }
}

module attributes {stable_mosaic.version = 11 : i64} {
  func.func @_pass1_kernel(%arg0: i32, %arg1: memref<8x512xf32, #tpu.memory_space<vmem>>, %arg2: memref<8x512xf32, #tpu.memory_space<vmem>>, %arg3: memref<512x512xbf16, #tpu.memory_space<vmem>>, %arg4: memref<1x512xf32, #tpu.memory_space<vmem>>, %arg5: memref<2x8x512xbf16, #tpu.memory_space<vmem>>, %arg6: memref<1x4x512xf32, #tpu.memory_space<vmem>>, %arg7: memref<1x1x128xf32, #tpu.memory_space<vmem>>) attributes {dimension_semantics = [#tpu.dimension_semantics<parallel>], iteration_bounds = array<i64: 1>, scalar_prefetch = 0 : i64, scratch_operands = 0 : i64, tpu.core_type = #tpu.core_type<tc>, window_params = [{transform_indices = @transform_0, window_bounds = array<i64: 8, 512>}, {transform_indices = @transform_1, window_bounds = array<i64: 8, 512>}, {pipeline_mode = #tpu.pipeline_mode<synchronous>, transform_indices = @transform_2, window_bounds = array<i64: 512, 512>}, {pipeline_mode = #tpu.pipeline_mode<synchronous>, transform_indices = @transform_3, window_bounds = array<i64: 1, 512>}, {transform_indices = @transform_4, window_bounds = array<i64: 2, 8, 512>}, {transform_indices = @transform_5, window_bounds = array<i64: 1, 4, 512>}, {transform_indices = @transform_6, window_bounds = array<i64: 1, 1, 128>}]} {
    %c0 = arith.constant 0 : index
    %c0_0 = arith.constant 0 : index
    %0 = vector.load %arg1[%c0, %c0_0] : memref<8x512xf32, #tpu.memory_space<vmem>>, vector<8x512xf32>
    %c0_1 = arith.constant 0 : index
    %c0_2 = arith.constant 0 : index
    %1 = vector.load %arg2[%c0_1, %c0_2] : memref<8x512xf32, #tpu.memory_space<vmem>>, vector<8x512xf32>
    %2 = arith.subf %0, %1 : vector<8x512xf32>
    %3 = arith.mulf %2, %2 : vector<8x512xf32>
    %4 = vector.shape_cast %3 : vector<8x512xf32> to vector<1x8x512xf32>
    %cst = arith.constant dense<0.000000e+00> : vector<1xf32>
    %5 = vector.multi_reduction <add>, %4, %cst [1, 2] : vector<1x8x512xf32> to vector<1xf32>
    %6 = vector.shape_cast %5 : vector<1xf32> to vector<1x1x1xf32>
    %7 = vector.extract %6[0, 0, 0] : f32 from vector<1x1x1xf32>
    %8 = vector.broadcast %7 : f32 to vector<1x1x128xf32>
    %c0_3 = arith.constant 0 : index
    %c0_4 = arith.constant 0 : index
    %c0_5 = arith.constant 0 : index
    %9 = vector.load %arg7[%c0_3, %c0_4, %c0_5] : memref<1x1x128xf32, #tpu.memory_space<vmem>>, vector<1x1x128xf32>
    tpu.vector_store %arg7[%c0_3, %c0_4, %c0_5], %8 {strides = array<i32>} : memref<1x1x128xf32, #tpu.memory_space<vmem>>, vector<1x1x128xf32>,
    %10 = arith.truncf %0 : vector<8x512xf32> to vector<8x512xbf16>
    %c0_6 = arith.constant 0 : index
    %c0_7 = arith.constant 0 : index
    %11 = vector.load %arg3[%c0_6, %c0_7] : memref<512x512xbf16, #tpu.memory_space<vmem>>, vector<512x512xbf16>
    %cst_8 = arith.constant dense<0.000000e+00> : vector<8x512xf32>
    %12 = tpu.matmul %10, %11, %cst_8 {dimension_numbers = #tpu.dot_dimension_numbers<[1], [0], [0], [1], [0, 0, 1, 1], [], []>} : vector<8x512xbf16>, vector<512x512xbf16>, vector<8x512xf32> -> vector<8x512xf32>
    %c0_9 = arith.constant 0 : index
    %c0_10 = arith.constant 0 : index
    %13 = vector.load %arg4[%c0_9, %c0_10] : memref<1x512xf32, #tpu.memory_space<vmem>>, vector<1x512xf32>
    %14 = vector.broadcast %13 : vector<1x512xf32> to vector<8x512xf32>
    %15 = arith.addf %12, %14 : vector<8x512xf32>
    %cst_11 = arith.constant 0.000000e+00 : f32
    %16 = vector.broadcast %cst_11 : f32 to vector<8x512xf32>
    %17 = arith.maximumf %15, %16 : vector<8x512xf32>
    %18 = arith.truncf %1 : vector<8x512xf32> to vector<8x512xbf16>
    %c0_12 = arith.constant 0 : index
    %c0_13 = arith.constant 0 : index
    %19 = vector.load %arg3[%c0_12, %c0_13] : memref<512x512xbf16, #tpu.memory_space<vmem>>, vector<512x512xbf16>
    %cst_14 = arith.constant dense<0.000000e+00> : vector<8x512xf32>
    %20 = tpu.matmul %18, %19, %cst_14 {dimension_numbers = #tpu.dot_dimension_numbers<[1], [0], [0], [1], [0, 0, 1, 1], [], []>} : vector<8x512xbf16>, vector<512x512xbf16>, vector<8x512xf32> -> vector<8x512xf32>
    %c0_15 = arith.constant 0 : index
    %c0_16 = arith.constant 0 : index
    %21 = vector.load %arg4[%c0_15, %c0_16] : memref<1x512xf32, #tpu.memory_space<vmem>>, vector<1x512xf32>
    %22 = vector.broadcast %21 : vector<1x512xf32> to vector<8x512xf32>
    %23 = arith.addf %20, %22 : vector<8x512xf32>
    %cst_17 = arith.constant 0.000000e+00 : f32
    %24 = vector.broadcast %cst_17 : f32 to vector<8x512xf32>
    %25 = arith.maximumf %23, %24 : vector<8x512xf32>
    %26 = arith.truncf %17 : vector<8x512xf32> to vector<8x512xbf16>
    %27 = arith.truncf %25 : vector<8x512xf32> to vector<8x512xbf16>
    %c0_18 = arith.constant 0 : index
    %c0_19 = arith.constant 0 : index
    %c0_20 = arith.constant 0 : index
    %28 = vector.load %arg5[%c0_18, %c0_19, %c0_20] : memref<2x8x512xbf16, #tpu.memory_space<vmem>>, vector<1x8x512xbf16>
    %29 = vector.shape_cast %28 : vector<1x8x512xbf16> to vector<8x512xbf16>
    %30 = vector.shape_cast %26 : vector<8x512xbf16> to vector<1x8x512xbf16>
    tpu.vector_store %arg5[%c0_18, %c0_19, %c0_20], %30 {strides = array<i32>} : memref<2x8x512xbf16, #tpu.memory_space<vmem>>, vector<1x8x512xbf16>,
    %c1 = arith.constant 1 : index
    %c0_21 = arith.constant 0 : index
    %c0_22 = arith.constant 0 : index
    %31 = vector.load %arg5[%c1, %c0_21, %c0_22] : memref<2x8x512xbf16, #tpu.memory_space<vmem>>, vector<1x8x512xbf16>
    %32 = vector.shape_cast %31 : vector<1x8x512xbf16> to vector<8x512xbf16>
    %33 = vector.shape_cast %27 : vector<8x512xbf16> to vector<1x8x512xbf16>
    tpu.vector_store %arg5[%c1, %c0_21, %c0_22], %33 {strides = array<i32>} : memref<2x8x512xbf16, #tpu.memory_space<vmem>>, vector<1x8x512xbf16>,
    %34 = arith.extf %26 : vector<8x512xbf16> to vector<8x512xf32>
    %35 = arith.extf %27 : vector<8x512xbf16> to vector<8x512xf32>
    %cst_23 = arith.constant dense<0.000000e+00> : vector<512xf32>
    %36 = vector.multi_reduction <add>, %34, %cst_23 [0] : vector<8x512xf32> to vector<512xf32>
    %37 = vector.shape_cast %36 : vector<512xf32> to vector<1x512xf32>
    %cst_24 = arith.constant dense<0.000000e+00> : vector<512xf32>
    %38 = vector.multi_reduction <add>, %35, %cst_24 [0] : vector<8x512xf32> to vector<512xf32>
    %39 = vector.shape_cast %38 : vector<512xf32> to vector<1x512xf32>
    %40 = arith.mulf %34, %34 : vector<8x512xf32>
    %cst_25 = arith.constant dense<0.000000e+00> : vector<512xf32>
    %41 = vector.multi_reduction <add>, %40, %cst_25 [0] : vector<8x512xf32> to vector<512xf32>
    %42 = vector.shape_cast %41 : vector<512xf32> to vector<1x512xf32>
    %43 = arith.mulf %35, %35 : vector<8x512xf32>
    %cst_26 = arith.constant dense<0.000000e+00> : vector<512xf32>
    %44 = vector.multi_reduction <add>, %43, %cst_26 [0] : vector<8x512xf32> to vector<512xf32>
    %45 = vector.shape_cast %44 : vector<512xf32> to vector<1x512xf32>
    %46 = tpu.concatenate %37, %39, %42, %45 in 0 : vector<1x512xf32>, vector<1x512xf32>, vector<1x512xf32>, vector<1x512xf32> -> vector<4x512xf32>
    %c0_27 = arith.constant 0 : index
    %c0_28 = arith.constant 0 : index
    %c0_29 = arith.constant 0 : index
    %47 = vector.load %arg6[%c0_27, %c0_28, %c0_29] : memref<1x4x512xf32, #tpu.memory_space<vmem>>, vector<1x4x512xf32>
    %48 = vector.shape_cast %47 : vector<1x4x512xf32> to vector<4x512xf32>
    %49 = vector.shape_cast %46 : vector<4x512xf32> to vector<1x4x512xf32>
    tpu.vector_store %arg6[%c0_27, %c0_28, %c0_29], %49 {strides = array<i32>} : memref<1x4x512xf32, #tpu.memory_space<vmem>>, vector<1x4x512xf32>,
    return
  }
  func.func @transform_0(%arg0: i32) -> (i32, i32) {
    %c0_i32 = arith.constant 0 : i32
    %c0_i32_0 = arith.constant 0 : i32
    return %arg0, %c0_i32 : i32, i32
  }
  func.func @transform_1(%arg0: i32) -> (i32, i32) {
    %c0_i32 = arith.constant 0 : i32
    %c0_i32_0 = arith.constant 0 : i32
    return %arg0, %c0_i32 : i32, i32
  }
  func.func @transform_2(%arg0: i32) -> (i32, i32) {
    %c0_i32 = arith.constant 0 : i32
    %c0_i32_0 = arith.constant 0 : i32
    %c0_i32_1 = arith.constant 0 : i32
    return %c0_i32, %c0_i32_0 : i32, i32
  }
  func.func @transform_3(%arg0: i32) -> (i32, i32) {
    %c0_i32 = arith.constant 0 : i32
    %c0_i32_0 = arith.constant 0 : i32
    %c0_i32_1 = arith.constant 0 : i32
    return %c0_i32, %c0_i32_0 : i32, i32
  }
  func.func @transform_4(%arg0: i32) -> (i32, i32, i32) {
    %c0_i32 = arith.constant 0 : i32
    %c0_i32_0 = arith.constant 0 : i32
    %c0_i32_1 = arith.constant 0 : i32
    return %c0_i32, %arg0, %c0_i32_0 : i32, i32, i32
  }
  func.func @transform_5(%arg0: i32) -> (i32, i32, i32) {
    %c0_i32 = arith.constant 0 : i32
    %c0_i32_0 = arith.constant 0 : i32
    %c0_i32_1 = arith.constant 0 : i32
    return %arg0, %c0_i32, %c0_i32_0 : i32, i32, i32
  }
  func.func @transform_6(%arg0: i32) -> (i32, i32, i32) {
    %c0_i32 = arith.constant 0 : i32
    %c0_i32_0 = arith.constant 0 : i32
    %c0_i32_1 = arith.constant 0 : i32
    return %arg0, %c0_i32, %c0_i32_0 : i32, i32, i32
  }
}

module attributes {stable_mosaic.version = 11 : i64} {
  func.func @_pass3_kernel(%arg0: i32, %arg1: memref<2x8x256xbf16, #tpu.memory_space<vmem>>, %arg2: memref<2x1x256xf32, #tpu.memory_space<vmem>>, %arg3: memref<2x1x256xf32, #tpu.memory_space<vmem>>, %arg4: memref<256x128xbf16, #tpu.memory_space<vmem>>, %arg5: memref<1x128xf32, #tpu.memory_space<vmem>>, %arg6: memref<1x1x128xf32, #tpu.memory_space<vmem>>) attributes {dimension_semantics = [#tpu.dimension_semantics<parallel>], iteration_bounds = array<i64: 1>, scalar_prefetch = 0 : i64, scratch_operands = 0 : i64, tpu.core_type = #tpu.core_type<tc>, window_params = [{transform_indices = @transform_0, window_bounds = array<i64: 2, 8, 256>}, {pipeline_mode = #tpu.pipeline_mode<synchronous>, transform_indices = @transform_1, window_bounds = array<i64: 2, 1, 256>}, {pipeline_mode = #tpu.pipeline_mode<synchronous>, transform_indices = @transform_2, window_bounds = array<i64: 2, 1, 256>}, {pipeline_mode = #tpu.pipeline_mode<synchronous>, transform_indices = @transform_3, window_bounds = array<i64: 256, 128>}, {pipeline_mode = #tpu.pipeline_mode<synchronous>, transform_indices = @transform_4, window_bounds = array<i64: 1, 128>}, {transform_indices = @transform_5, window_bounds = array<i64: 1, 1, 128>}]} {
    %c0 = arith.constant 0 : index
    %c0_0 = arith.constant 0 : index
    %c0_1 = arith.constant 0 : index
    %0 = vector.load %arg1[%c0, %c0_0, %c0_1] : memref<2x8x256xbf16, #tpu.memory_space<vmem>>, vector<2x8x256xbf16>
    %1 = arith.extf %0 : vector<2x8x256xbf16> to vector<2x8x256xf32>
    %c0_2 = arith.constant 0 : index
    %c0_3 = arith.constant 0 : index
    %c0_4 = arith.constant 0 : index
    %2 = vector.load %arg2[%c0_2, %c0_3, %c0_4] : memref<2x1x256xf32, #tpu.memory_space<vmem>>, vector<2x1x256xf32>
    %3 = vector.broadcast %2 : vector<2x1x256xf32> to vector<2x8x256xf32>
    %4 = arith.mulf %1, %3 : vector<2x8x256xf32>
    %c0_5 = arith.constant 0 : index
    %c0_6 = arith.constant 0 : index
    %c0_7 = arith.constant 0 : index
    %5 = vector.load %arg3[%c0_5, %c0_6, %c0_7] : memref<2x1x256xf32, #tpu.memory_space<vmem>>, vector<2x1x256xf32>
    %6 = vector.broadcast %5 : vector<2x1x256xf32> to vector<2x8x256xf32>
    %7 = arith.addf %4, %6 : vector<2x8x256xf32>
    %8 = vector.shape_cast %7 : vector<2x8x256xf32> to vector<16x256xf32>
    %9 = arith.truncf %8 : vector<16x256xf32> to vector<16x256xbf16>
    %c0_8 = arith.constant 0 : index
    %c0_9 = arith.constant 0 : index
    %10 = vector.load %arg4[%c0_8, %c0_9] : memref<256x128xbf16, #tpu.memory_space<vmem>>, vector<256x128xbf16>
    %cst = arith.constant dense<0.000000e+00> : vector<16x128xf32>
    %11 = tpu.matmul %9, %10, %cst {dimension_numbers = #tpu.dot_dimension_numbers<[1], [0], [0], [1], [0, 0, 1, 1], [], []>} : vector<16x256xbf16>, vector<256x128xbf16>, vector<16x128xf32> -> vector<16x128xf32>
    %c0_10 = arith.constant 0 : index
    %c0_11 = arith.constant 0 : index
    %12 = vector.load %arg5[%c0_10, %c0_11] : memref<1x128xf32, #tpu.memory_space<vmem>>, vector<1x128xf32>
    %13 = vector.broadcast %12 : vector<1x128xf32> to vector<16x128xf32>
    %14 = arith.addf %11, %13 : vector<16x128xf32>
    %15 = vector.extract_strided_slice %14 {offsets = [0, 0], sizes = [8, 128], strides = [1, 1]} : vector<16x128xf32> to vector<8x128xf32>
    %16 = vector.extract_strided_slice %14 {offsets = [8, 0], sizes = [8, 128], strides = [1, 1]} : vector<16x128xf32> to vector<8x128xf32>
    %cst_12 = arith.constant 0.000000e+00 : f32
    %17 = vector.broadcast %cst_12 : f32 to vector<8x128xf32>
    %18 = arith.maximumf %15, %17 : vector<8x128xf32>
    %19 = arith.mulf %15, %16 : vector<8x128xf32>
    %20 = arith.subf %18, %19 : vector<8x128xf32>
    %21 = math.absf %15 : vector<8x128xf32>
    %cst_13 = arith.constant 0.000000e+00 : f32
    %22 = vector.broadcast %cst_13 : f32 to vector<8x128xf32>
    %23 = arith.subf %22, %21 : vector<8x128xf32>
    %24 = math.exp %23 : vector<8x128xf32>
    %25 = math.log1p %24 : vector<8x128xf32>
    %26 = arith.addf %20, %25 : vector<8x128xf32>
    %27 = tpu.iota {dimensions = array<i32: 1>} : vector<1x128xi32>
    %c14_i32 = arith.constant 14 : i32
    %28 = vector.broadcast %c14_i32 : i32 to vector<1x128xi32>
    %29 = arith.cmpi slt, %27, %28 : vector<1x128xi32>
    %30 = arith.extui %29 : vector<1x128xi1> to vector<1x128xi32>
    %31 = arith.sitofp %30 : vector<1x128xi32> to vector<1x128xf32>
    %32 = vector.broadcast %31 : vector<1x128xf32> to vector<8x128xf32>
    %33 = arith.mulf %26, %32 : vector<8x128xf32>
    %34 = vector.shape_cast %33 : vector<8x128xf32> to vector<1x8x128xf32>
    %cst_14 = arith.constant dense<0.000000e+00> : vector<1xf32>
    %35 = vector.multi_reduction <add>, %34, %cst_14 [1, 2] : vector<1x8x128xf32> to vector<1xf32>
    %36 = vector.shape_cast %35 : vector<1xf32> to vector<1x1x1xf32>
    %37 = vector.extract %36[0, 0, 0] : f32 from vector<1x1x1xf32>
    %38 = vector.broadcast %37 : f32 to vector<1x1x128xf32>
    %c0_15 = arith.constant 0 : index
    %c0_16 = arith.constant 0 : index
    %c0_17 = arith.constant 0 : index
    %39 = vector.load %arg6[%c0_15, %c0_16, %c0_17] : memref<1x1x128xf32, #tpu.memory_space<vmem>>, vector<1x1x128xf32>
    tpu.vector_store %arg6[%c0_15, %c0_16, %c0_17], %38 {strides = array<i32>} : memref<1x1x128xf32, #tpu.memory_space<vmem>>, vector<1x1x128xf32>,
    return
  }
  func.func @transform_0(%arg0: i32) -> (i32, i32, i32) {
    %c0_i32 = arith.constant 0 : i32
    %c0_i32_0 = arith.constant 0 : i32
    %c0_i32_1 = arith.constant 0 : i32
    return %c0_i32, %arg0, %c0_i32_0 : i32, i32, i32
  }
  func.func @transform_1(%arg0: i32) -> (i32, i32, i32) {
    %c0_i32 = arith.constant 0 : i32
    %c0_i32_0 = arith.constant 0 : i32
    %c0_i32_1 = arith.constant 0 : i32
    %c0_i32_2 = arith.constant 0 : i32
    return %c0_i32, %c0_i32_0, %c0_i32_1 : i32, i32, i32
  }
  func.func @transform_2(%arg0: i32) -> (i32, i32, i32) {
    %c0_i32 = arith.constant 0 : i32
    %c0_i32_0 = arith.constant 0 : i32
    %c0_i32_1 = arith.constant 0 : i32
    %c0_i32_2 = arith.constant 0 : i32
    return %c0_i32, %c0_i32_0, %c0_i32_1 : i32, i32, i32
  }
  func.func @transform_3(%arg0: i32) -> (i32, i32) {
    %c0_i32 = arith.constant 0 : i32
    %c0_i32_0 = arith.constant 0 : i32
    %c0_i32_1 = arith.constant 0 : i32
    return %c0_i32, %c0_i32_0 : i32, i32
  }
  func.func @transform_4(%arg0: i32) -> (i32, i32) {
    %c0_i32 = arith.constant 0 : i32
    %c0_i32_0 = arith.constant 0 : i32
    %c0_i32_1 = arith.constant 0 : i32
    return %c0_i32, %c0_i32_0 : i32, i32
  }
  func.func @transform_5(%arg0: i32) -> (i32, i32, i32) {
    %c0_i32 = arith.constant 0 : i32
    %c0_i32_0 = arith.constant 0 : i32
    %c0_i32_1 = arith.constant 0 : i32
    return %arg0, %c0_i32, %c0_i32_0 : i32, i32, i32
  }
}

</mosaic_0001>

<bundles_post_ra>
// kernel: mse_bce_loss.4
= control target key start
LH: loop header
LB: loop body
LE: loop exit
PB: predicated region body
PF: predicated region fallthrough
CT: control target
= control target key end

     0   :  { %vm660_vm0 = vcmask 1040384   ;;  %vm663_vm1 = vcmask 1041408   ;;  %vm666_vm2 = vcmask 1042432   ;;  %vm672_vm3 = vcmask 1043456   ;;  %s1597_s3 = inlined_call_operand.vmem [shape: bf16[512,256], index: 3, kind: input, shape index: {}]   ;;  %s1598_s0 = inlined_call_operand.vmem [shape: bf16[2,8,512], index: 0, kind: input, shape index: {}]   ;;  %s1599_s1 = inlined_call_operand.vmem [shape: f32[2,1,512], index: 1, kind: input, shape index: {}]   ;;  %s1600_s2 = inlined_call_operand.vmem [shape: f32[2,1,512], index: 2, kind: input, shape index: {}]   ;;  %s1601_s4 = inlined_call_operand.vmem [shape: f32[1,256], index: 4, kind: input, shape index: {}]   ;;  %s1602_s5 = inlined_call_operand.vmem [shape: bf16[2,8,256], index: 5, kind: output, shape index: {0}]   ;;  %s1603_s6 = inlined_call_operand.vmem [shape: f32[1,4,256], index: 6, kind: output, shape index: {1}]  }
   0x1   :  { %v742_v0 = vld [vmem:[%s1597_s3 + $0x70] sm:$0xf]  ;;  %v955_v1 = vld [vmem:[%s1597_s3 + $0x74] sm:$0xf0]  ;;  %v734_v11 = vld [vmem:[%s1597_s3 + $0x60] sm:$0xf] }
   0x2   :  { %v806_v2 = vld [vmem:[%s1597_s3 + $0xf0] sm:$0xf]  ;;  %v743_v3 = vor.u32 %v955_v1, %v742_v0  ;;  %v971_v4 = vld [vmem:[%s1597_s3 + $0xf4] sm:$0xf0]  ;;  %v953_v13 = vld [vmem:[%s1597_s3 + $0x64] sm:$0xf0] }
   0x3   :  { %v870_v5 = vld [vmem:[%s1597_s3 + $0x170] sm:$0xf]  ;;  %v987_v6 = vld [vmem:[%s1597_s3 + $0x174] sm:$0xf0]  ;;  %v807_v7 = vor.u32 %v971_v4, %v806_v2  ;;  %v798_v14 = vld [vmem:[%s1597_s3 + $0xe0] sm:$0xf]  ;;  %v735_v16 = vor.u32 %v953_v13, %v734_v11 }
   0x4   :  { %v871_v8 = vor.u32 %v987_v6, %v870_v5  ;;  %v934_v9 = vld [vmem:[%s1597_s3 + $0x1f0] sm:$0xf]  ;;  %v1003_v10 = vld [vmem:[%s1597_s3 + $0x1f4] sm:$0xf0]  ;;  %484 = vmatpush.bf16.msra.mxu0 %v743_v3  ;;  %v969_v15 = vld [vmem:[%s1597_s3 + $0xe4] sm:$0xf0] }
   0x5   :  { %v935_v12 = vor.u32 %v1003_v10, %v934_v9  ;;  %498 = vmatpush.bf16.msra.mxu1 %v807_v7  ;;  %v799_v17 = vor.u32 %v969_v15, %v798_v14  ;;  %v862_v18 = vld [vmem:[%s1597_s3 + $0x160] sm:$0xf]  ;;  %v985_v19 = vld [vmem:[%s1597_s3 + $0x164] sm:$0xf0]  ;;  %v726_v23 = vld [vmem:[%s1597_s3 + $0x50] sm:$0xf] }
   0x6   :  { %512 = vmatpush.bf16.msra.mxu2 %v871_v8  ;;  %v926_v20 = vld [vmem:[%s1597_s3 + $0x1e0] sm:$0xf]  ;;  %v863_v21 = vor.u32 %v985_v19, %v862_v18  ;;  %v1001_v22 = vld [vmem:[%s1597_s3 + $0x1e4] sm:$0xf0]  ;;  %v951_v24 = vld [vmem:[%s1597_s3 + $0x54] sm:$0xf0] }
   0x7   :  { %526 = vmatpush.bf16.msra.mxu3 %v935_v12  ;;  %v927_v25 = vor.u32 %v1001_v22, %v926_v20  ;;  %v790_v26 = vld [vmem:[%s1597_s3 + $0xd0] sm:$0xf]  ;;  %v967_v27 = vld [vmem:[%s1597_s3 + $0xd4] sm:$0xf0]  ;;  %v727_v29 = vor.u32 %v951_v24, %v726_v23  ;;  %v718_v35 = vld [vmem:[%s1597_s3 + $0x40] sm:$0xf] }
   0x8   :  { %v854_v28 = vld [vmem:[%s1597_s3 + $0x150] sm:$0xf]  ;;  %485 = vmatpush.bf16.msra.mxu0 %v735_v16  ;;  %v983_v30 = vld [vmem:[%s1597_s3 + $0x154] sm:$0xf0]  ;;  %v791_v33 = vor.u32 %v967_v27, %v790_v26  ;;  %v949_v36 = vld [vmem:[%s1597_s3 + $0x44] sm:$0xf0] }
   0x9   :  { %v918_v31 = vld [vmem:[%s1597_s3 + $0x1d0] sm:$0xf]  ;;  %v999_v32 = vld [vmem:[%s1597_s3 + $0x1d4] sm:$0xf0]  ;;  %499 = vmatpush.bf16.msra.mxu1 %v799_v17  ;;  %v855_v34 = vor.u32 %v983_v30, %v854_v28  ;;  %v782_v37 = vld [vmem:[%s1597_s3 + $0xc0] sm:$0xf]  ;;  %v719_v44 = vor.u32 %v949_v36, %v718_v35 }
   0xa   :  { %513 = vmatpush.bf16.msra.mxu2 %v863_v21  ;;  %v919_v38 = vor.u32 %v999_v32, %v918_v31  ;;  %v965_v39 = vld [vmem:[%s1597_s3 + $0xc4] sm:$0xf0]  ;;  %v846_v40 = vld [vmem:[%s1597_s3 + $0x140] sm:$0xf]  ;;  %v710_v47 = vld [vmem:[%s1597_s3 + $0x30] sm:$0xf] }
   0xb   :  { %527 = vmatpush.bf16.msra.mxu3 %v927_v25  ;;  %v981_v41 = vld [vmem:[%s1597_s3 + $0x144] sm:$0xf0]  ;;  %v910_v42 = vld [vmem:[%s1597_s3 + $0x1c0] sm:$0xf]  ;;  %v783_v45 = vor.u32 %v965_v39, %v782_v37  ;;  %v947_v48 = vld [vmem:[%s1597_s3 + $0x34] sm:$0xf0] }
   0xc   :  { %v997_v43 = vld [vmem:[%s1597_s3 + $0x1c4] sm:$0xf0]  ;;  %486 = vmatpush.bf16.msra.mxu0 %v727_v29  ;;  %v847_v46 = vor.u32 %v981_v41, %v846_v40  ;;  %v774_v49 = vld [vmem:[%s1597_s3 + $0xb0] sm:$0xf]  ;;  %v963_v51 = vld [vmem:[%s1597_s3 + $0xb4] sm:$0xf0]  ;;  %v711_v56 = vor.u32 %v947_v48, %v710_v47 }
   0xd   :  { %500 = vmatpush.bf16.msra.mxu1 %v791_v33  ;;  %v911_v50 = vor.u32 %v997_v43, %v910_v42  ;;  %v838_v52 = vld [vmem:[%s1597_s3 + $0x130] sm:$0xf]  ;;  %v979_v53 = vld [vmem:[%s1597_s3 + $0x134] sm:$0xf0]  ;;  %v702_v57 = vld [vmem:[%s1597_s3 + $0x20] sm:$0xf]  ;;  %v775_v58 = vor.u32 %v963_v51, %v774_v49 }
   0xe   :  { %514 = vmatpush.bf16.msra.mxu2 %v855_v34  ;;  %v902_v54 = vld [vmem:[%s1597_s3 + $0x1b0] sm:$0xf]  ;;  %v995_v55 = vld [vmem:[%s1597_s3 + $0x1b4] sm:$0xf0]  ;;  %v839_v59 = vor.u32 %v979_v53, %v838_v52  ;;  %v945_v60 = vld [vmem:[%s1597_s3 + $0x24] sm:$0xf0] }
   0xf   :  { %528 = vmatpush.bf16.msra.mxu3 %v919_v38  ;;  %v766_v61 = vld [vmem:[%s1597_s3 + $0xa0] sm:$0xf]  ;;  %v961_v62 = vld [vmem:[%s1597_s3 + $0xa4] sm:$0xf0]  ;;  %v903_v63 = vor.u32 %v995_v55, %v902_v54  ;;  %v694_v4 = vld [vmem:[%s1597_s3 + $0x10] sm:$0xf]  ;;  %v703_v6 = vor.u32 %v945_v60, %v702_v57 }
  0x10   :  { %487 = vmatpush.bf16.msra.mxu0 %v719_v44  ;;  %v830_v0 = vld [vmem:[%s1597_s3 + $0x120] sm:$0xf]  ;;  %v977_v1 = vld [vmem:[%s1597_s3 + $0x124] sm:$0xf0]  ;;  %v943_v5 = vld [vmem:[%s1597_s3 + $0x14] sm:$0xf0]  ;;  %v767_v10 = vor.u32 %v961_v62, %v766_v61 }
  0x11   :  { %501 = vmatpush.bf16.msra.mxu1 %v783_v45  ;;  %v894_v2 = vld [vmem:[%s1597_s3 + $0x1a0] sm:$0xf]  ;;  %v993_v3 = vld [vmem:[%s1597_s3 + $0x1a4] sm:$0xf0]  ;;  %v758_v7 = vld [vmem:[%s1597_s3 + $0x90] sm:$0xf]  ;;  %v831_v11 = vor.u32 %v977_v1, %v830_v0  ;;  %v695_v27 = vor.u32 %v943_v5, %v694_v4 }
  0x12   :  { %515 = vmatpush.bf16.msra.mxu2 %v847_v46  ;;  %v959_v8 = vld [vmem:[%s1597_s3 + $0x94] sm:$0xf0]  ;;  %v822_v9 = vld [vmem:[%s1597_s3 + $0x110] sm:$0xf]  ;;  %v895_v15 = vor.u32 %v993_v3, %v894_v2  ;;  %v1210_v16 = vld [vmem:[%s1597_s3] sm:$0xf] }
  0x13   :  { %529 = vmatpush.bf16.msra.mxu3 %v911_v50  ;;  %v975_v12 = vld [vmem:[%s1597_s3 + $0x114] sm:$0xf0]  ;;  %v886_v13 = vld [vmem:[%s1597_s3 + $0x190] sm:$0xf]  ;;  %v1215_v17 = vld [vmem:[%s1597_s3 + $0x4] sm:$0xf0]  ;;  %v759_v31 = vor.u32 %v959_v8, %v758_v7 }
  0x14   :  { %488 = vmatpush.bf16.msra.mxu0 %v711_v56  ;;  %v991_v14 = vld [vmem:[%s1597_s3 + $0x194] sm:$0xf0]  ;;  %v1220_v18 = vld [vmem:[%s1597_s3 + $0x80] sm:$0xf]  ;;  %v1225_v19 = vld [vmem:[%s1597_s3 + $0x84] sm:$0xf0]  ;;  %v823_v32 = vor.u32 %v975_v12, %v822_v9  ;;  %v687_v42 = vor.u32 %v1215_v17, %v1210_v16 }
  0x15   :  { %502 = vmatpush.bf16.msra.mxu1 %v775_v58  ;;  %v1230_v20 = vld [vmem:[%s1597_s3 + $0x100] sm:$0xf]  ;;  %v1235_v21 = vld [vmem:[%s1597_s3 + $0x104] sm:$0xf0]  ;;  %v1250_v24 = vld [vmem:[%s1597_s3 + $0x74] sm:$0xf]  ;;  %v887_v37 = vor.u32 %v991_v14, %v886_v13  ;;  %v751_v43 = vor.u32 %v1225_v19, %v1220_v18 }
  0x16   :  { %516 = vmatpush.bf16.msra.mxu2 %v839_v59  ;;  %v1240_v22 = vld [vmem:[%s1597_s3 + $0x180] sm:$0xf]  ;;  %v1245_v23 = vld [vmem:[%s1597_s3 + $0x184] sm:$0xf0]  ;;  %v1255_v25 = vld [vmem:[%s1597_s3 + $0x78] sm:$0xf0]  ;;  %v815_v44 = vor.u32 %v1235_v21, %v1230_v20 }
  0x17   :  { %530 = vmatpush.bf16.msra.mxu3 %v903_v63  ;;  %v1260_v26 = vld [vmem:[%s1597_s3 + $0xf4] sm:$0xf]  ;;  %v1265_v28 = vld [vmem:[%s1597_s3 + $0xf8] sm:$0xf0]  ;;  %v1290_v35 = vld [vmem:[%s1597_s3 + $0x64] sm:$0xf]  ;;  %v879_v48 = vor.u32 %v1245_v23, %v1240_v22  ;;  %v747_v49 = vor.u32 %v1250_v24, %v1255_v25 }
  0x18   :  { %489 = vmatpush.bf16.msra.mxu0 %v703_v6  ;;  %v1270_v29 = vld [vmem:[%s1597_s3 + $0x174] sm:$0xf]  ;;  %v1275_v30 = vld [vmem:[%s1597_s3 + $0x178] sm:$0xf0]  ;;  %v1295_v36 = vld [vmem:[%s1597_s3 + $0x68] sm:$0xf0]  ;;  %v811_v50 = vor.u32 %v1260_v26, %v1265_v28 }
  0x19   :  { %503 = vmatpush.bf16.msra.mxu1 %v767_v10  ;;  %v1280_v33 = vld [vmem:[%s1597_s3 + $0x1f4] sm:$0xf]  ;;  %v1285_v34 = vld [vmem:[%s1597_s3 + $0x1f8] sm:$0xf0]  ;;  %v1300_v38 = vld [vmem:[%s1597_s3 + $0xe4] sm:$0xf]  ;;  %v875_v55 = vor.u32 %v1270_v29, %v1275_v30  ;;  %v739_v62 = vor.u32 %v1290_v35, %v1295_v36 }
  0x1a   :  { %517 = vmatpush.bf16.msra.mxu2 %v831_v11  ;;  %v1305_v39 = vld [vmem:[%s1597_s3 + $0xe8] sm:$0xf0]  ;;  %v1310_v40 = vld [vmem:[%s1597_s3 + $0x164] sm:$0xf]  ;;  %v1347_v51 = vld [vmem:[%s1598_s0 + $0x18] sm:$0xff]  ;;  %v939_v61 = vor.u32 %v1280_v33, %v1285_v34 }
  0x1b   :  { %531 = vmatpush.bf16.msra.mxu3 %v895_v15  ;;  %v1315_v41 = vld [vmem:[%s1597_s3 + $0x168] sm:$0xf0]  ;;  %v1326_v45 = vld [vmem:[%s1597_s3 + $0x1e4] sm:$0xf]  ;;  %v1353_v53 = vld [vmem:[%s1599_s1] sm:$0xf]  ;;  %v32_v56 = vunpack.c.l.bf16 %v1347_v51  ;;  %v803_v3 = vor.u32 %v1300_v38, %v1305_v39  ;;  %v33_v14 = vunpack.c.h.bf16 %v1347_v51 }
  0x1c   :  { %v1331_v46 = vld [vmem:[%s1597_s3 + $0x1e8] sm:$0xf0]  ;;  %490 = vmatpush.bf16.msra.mxu0 %v695_v27  ;;  %v1358_v54 = vld [vmem:[%s1599_s1 + $0x4] sm:$0xf]  ;;  %v40_v57 = vperm.slane %v1353_v53, 2  ;;  %v867_v4 = vor.u32 %v1310_v40, %v1315_v41  ;;  %v24_v19 = vld [vmem:[%s1598_s0 + $0x10] sm:$0xff] }
  0x1d   :  { %v1336_v47 = vld [vmem:[%s1598_s0 + $0x8] sm:$0xff]  ;;  %504 = vmatpush.bf16.msra.mxu1 %v759_v31  ;;  %v44_v58 = vperm.slane %v1358_v54, 2  ;;  %v1368_v59 = vld [vmem:[%s1600_s2] sm:$0xf]  ;;  %v1373_v60 = vld [vmem:[%s1600_s2 + $0x4] sm:$0xf]  ;;  %v931_v10 = vor.u32 %v1326_v45, %v1331_v46  ;;  %v30_v23 = vunpack.c.l.bf16 %v24_v19  ;;  %v31_v38 = vunpack.c.h.bf16 %v24_v19 }
  0x1e   :  { %v28_v52 = vunpack.c.l.bf16 %v1336_v47  ;;  %518 = vmatpush.bf16.msra.mxu2 %v823_v32  ;;  %v68_v63 = vperm.slane %v1368_v59, 2  ;;  %v72_v0 = vperm.slane %v1373_v60, 2  ;;  %v1384_v1 = vld [vmem:[%s1597_s3 + $0x54] sm:$0xf]  ;;  %v1389_v2 = vld [vmem:[%s1597_s3 + $0x58] sm:$0xf0]  ;;  %v29_v13 = vunpack.c.h.bf16 %v1336_v47 }
  0x1f   :  { %532 = vmatpush.bf16.msra.mxu3 %v887_v37  ;;  %v60_v6 = vmul.f32 %v44_v58, %v32_v56  ;;  %v1398_v7 = vld [vmem:[%s1597_s3 + $0xd4] sm:$0xf]  ;;  %v1403_v8 = vld [vmem:[%s1597_s3 + $0xd8] sm:$0xf0]  ;;  %v731_v11 = vor.u32 %v1384_v1, %v1389_v2  ;;  %v22_v18 = vld [vmem:[%s1598_s0] sm:$0xff]  ;;  %v38_v20 = vperm.slane %v1353_v53, 0 }
  0x20   :  { %v56_v5 = vmul.f32 %v40_v57, %v28_v52  ;;  %v1408_v9 = vld [vmem:[%s1597_s3 + $0x154] sm:$0xf]  ;;  %491 = vmatpush.bf16.msra.mxu0 %v687_v42  ;;  %v1417_v12 = vld [vmem:[%s1597_s3 + $0x158] sm:$0xf0]  ;;  %v795_v17 = vor.u32 %v1398_v7, %v1403_v8  ;;  %v26_v22 = vunpack.c.l.bf16 %v22_v18  ;;  %v42_v24 = vperm.slane %v1358_v54, 0 }
  0x21   :  { %505 = vmatpush.bf16.msra.mxu1 %v751_v43  ;;  %v88_v16 = vadd.f32 %v72_v0, %v60_v6  ;;  %v859_v21 = vor.u32 %v1408_v9, %v1417_v12  ;;  %v66_v26 = vperm.slane %v1368_v59, 0  ;;  %v70_v27 = vperm.slane %v1373_v60, 0  ;;  %v998_v33 = vld [vmem:[%s1597_s3 + $0x1d4] sm:$0xf]  ;;  %v920_v34 = vld [vmem:[%s1597_s3 + $0x1d8] sm:$0xf0] }
  0x22   :  { %519 = vmatpush.bf16.msra.mxu2 %v815_v44  ;;  %v84_v15 = vadd.f32 %v68_v63, %v56_v5  ;;  %v41_v28 = vperm.slane %v1353_v53, 3  ;;  %v54_v29 = vmul.f32 %v38_v20, %v26_v22  ;;  %v58_v30 = vmul.f32 %v42_v24, %v30_v23  ;;  %v948_v43 = vld [vmem:[%s1597_s3 + $0x44] sm:$0xf]  ;;  %v784_v57 = vld [vmem:[%s1597_s3 + $0xc8] sm:$0xf0] }
  0x23   :  { %533 = vmatpush.bf16.msra.mxu3 %v879_v48  ;;  %v45_v31 = vperm.slane %v1358_v54, 3  ;;  %v69_v32 = vperm.slane %v1368_v59, 3  ;;  %v73_v36 = vperm.slane %v1373_v60, 3  ;;  %v27_v37 = vunpack.c.h.bf16 %v22_v18  ;;  %v720_v48 = vld [vmem:[%s1597_s3 + $0x48] sm:$0xf0] }
  0x24   :  { %540 = vmatpush.bf16.msrb.mxu0 %v747_v49  ;;  %v1433_v25 = vpack.c.bf16 %v88_v16, %v84_v15  ;;  %v57_v35 = vmul.f32 %v41_v28, %v29_v13  ;;  %v82_v39 = vadd.f32 %v66_v26, %v54_v29  ;;  %v86_v40 = vadd.f32 %v70_v27, %v58_v30  ;;  %v996_v58 = vld [vmem:[%s1597_s3 + $0x1c4] sm:$0xf]  ;;  %v946_v1 = vld [vmem:[%s1597_s3 + $0x34] sm:$0xf]  ;;  %v712_v2 = vld [vmem:[%s1597_s3 + $0x38] sm:$0xf0] }
  0x25   :  { %554 = vmatpush.bf16.msrb.mxu1 %v811_v50  ;;  %v61_v41 = vmul.f32 %v45_v31, %v33_v14  ;;  %v39_v42 = vperm.slane %v1353_v53, 1  ;;  %v43_v45 = vperm.slane %v1358_v54, 1  ;;  %v67_v46 = vperm.slane %v1368_v59, 1  ;;  %v964_v53 = vld [vmem:[%s1597_s3 + $0xc4] sm:$0xf] }
  0x26   :  { %568 = vmatpush.bf16.msrb.mxu2 %v875_v55  ;;  %v85_v44 = vadd.f32 %v69_v32, %v57_v35  ;;  %v71_v47 = vperm.slane %v1373_v60, 1  ;;  %v923_v49 = vor.u32 %v998_v33, %v920_v34  ;;  %v1458_v50 = vpack.c.bf16 %v86_v40, %v82_v39  ;;  %v980_v54 = vld [vmem:[%s1597_s3 + $0x144] sm:$0xf]  ;;  %v848_v55 = vld [vmem:[%s1597_s3 + $0x148] sm:$0xf0] }
  0x27   :  { %582 = vmatpush.bf16.msrb.mxu3 %v939_v61  ;;  %520 = vmatmul.bf16.vlgmr.msra.gmra.mxu2 %v1433_v25  ;;  %v89_v51 = vadd.f32 %v73_v36, %v61_v41  ;;  %v55_v52 = vmul.f32 %v39_v42, %v27_v37  ;;  %v59_v56 = vmul.f32 %v43_v45, %v31_v38  ;;  %v912_v59 = vld [vmem:[%s1597_s3 + $0x1c8] sm:$0xf0]  ;;  %v962_v5 = vld [vmem:[%s1597_s3 + $0xb4] sm:$0xf]  ;;  %v840_v7 = vld [vmem:[%s1597_s3 + $0x138] sm:$0xf0] }
  0x28   :  { %541 = vmatpush.bf16.msrb.mxu0 %v739_v62  ;;  %v723_v62 = vor.u32 %v948_v43, %v720_v48  ;;  %v851_v0 = vor.u32 %v980_v54, %v848_v55  ;;  %v978_v6 = vld [vmem:[%s1597_s3 + $0x134] sm:$0xf]  ;;  %v776_v9 = vld [vmem:[%s1597_s3 + $0xb8] sm:$0xf0]  ;;  %v715_v12 = vor.u32 %v946_v1, %v712_v2  ;;  %v944_v14 = vld [vmem:[%s1597_s3 + $0x24] sm:$0xf] }
  0x29   :  { %555 = vmatpush.bf16.msrb.mxu1 %v803_v3  ;;  %v1478_v60 = vpack.c.bf16 %v89_v51, %v85_v44  ;;  %v83_v61 = vadd.f32 %v67_v46, %v55_v52  ;;  %v87_v63 = vadd.f32 %v71_v47, %v59_v56  ;;  %492 = vmatmul.bf16.vlgmr.msra.gmra.mxu0 %v1458_v50  ;;  %v704_v15 = vld [vmem:[%s1597_s3 + $0x28] sm:$0xf0]  ;;  %v960_v18 = vld [vmem:[%s1597_s3 + $0xa4] sm:$0xf]  ;;  %v942_v27 = vld [vmem:[%s1597_s3 + $0x14] sm:$0xf] }
  0x2a   :  { %569 = vmatpush.bf16.msrb.mxu2 %v867_v4  ;;  %v787_v3 = vor.u32 %v964_v53, %v784_v57  ;;  %v915_v4 = vor.u32 %v996_v58, %v912_v59  ;;  %v843_v13 = vor.u32 %v978_v6, %v840_v7  ;;  %v779_v16 = vor.u32 %v962_v5, %v776_v9  ;;  %v976_v19 = vld [vmem:[%s1597_s3 + $0x124] sm:$0xf]  ;;  %v832_v20 = vld [vmem:[%s1597_s3 + $0x128] sm:$0xf0]  ;;  %v696_v28 = vld [vmem:[%s1597_s3 + $0x18] sm:$0xf0] }
  0x2b   :  { %583 = vmatpush.bf16.msrb.mxu3 %v931_v10  ;;  %v1497_v8 = vpack.c.bf16 %v87_v63, %v83_v61  ;;  %v994_v10 = vld [vmem:[%s1597_s3 + $0x1b4] sm:$0xf]  ;;  %v992_v22 = vld [vmem:[%s1597_s3 + $0x1a4] sm:$0xf]  ;;  %v896_v23 = vld [vmem:[%s1597_s3 + $0x1a8] sm:$0xf0]  ;;  %v707_v24 = vor.u32 %v944_v14, %v704_v15  ;;  %v835_v26 = vor.u32 %v976_v19, %v832_v20  ;;  %v699_v37 = vor.u32 %v942_v27, %v696_v28 }
  0x2c   :  { %542 = vmatpush.bf16.msrb.mxu0 %v731_v11  ;;  %534 = vmatmul.bf16.vlgmr.msra.gmra.mxu3 %v1478_v60  ;;  %v904_v11 = vld [vmem:[%s1597_s3 + $0x1b8] sm:$0xf0]  ;;  %v899_v30 = vor.u32 %v992_v22, %v896_v23  ;;  %v958_v31 = vld [vmem:[%s1597_s3 + $0x94] sm:$0xf]  ;;  %v940_v39 = vld [vmem:[%s1597_s3 + $0x4] sm:$0xf] }
  0x2d   :  { %556 = vmatpush.bf16.msrb.mxu1 %v795_v17  ;;  %v907_v17 = vor.u32 %v994_v10, %v904_v11  ;;  %v974_v32 = vld [vmem:[%s1597_s3 + $0x114] sm:$0xf]  ;;  %v824_v33 = vld [vmem:[%s1597_s3 + $0x118] sm:$0xf0]  ;;  %v688_v40 = vld [vmem:[%s1597_s3 + $0x8] sm:$0xf0] }
  0x2e   :  { %570 = vmatpush.bf16.msrb.mxu2 %v859_v21  ;;  %506 = vmatmul.bf16.vlgmr.msra.gmra.mxu1 %v1497_v8  ;;  %v768_v21 = vld [vmem:[%s1597_s3 + $0xa8] sm:$0xf0]  ;;  %v760_v34 = vld [vmem:[%s1597_s3 + $0x98] sm:$0xf0]  ;;  %v990_v35 = vld [vmem:[%s1597_s3 + $0x194] sm:$0xf]  ;;  %v827_v38 = vor.u32 %v974_v32, %v824_v33 }
  0x2f   :  { %584 = vmatpush.bf16.msrb.mxu3 %v923_v49  ;;  %v771_v29 = vor.u32 %v960_v18, %v768_v21  ;;  %v888_v36 = vld [vmem:[%s1597_s3 + $0x198] sm:$0xf0]  ;;  %v763_v41 = vor.u32 %v958_v31, %v760_v34  ;;  %v956_v43 = vld [vmem:[%s1597_s3 + $0x84] sm:$0xf]  ;;  %v816_v45 = vld [vmem:[%s1597_s3 + $0x108] sm:$0xf0]  ;;  %v691_v49 = vor.u32 %v940_v39, %v688_v40 }
  0x30   :  { %543 = vmatpush.bf16.msrb.mxu0 %v723_v62  ;;  %v891_v42 = vor.u32 %v990_v35, %v888_v36  ;;  %v972_v44 = vld [vmem:[%s1597_s3 + $0x104] sm:$0xf]  ;;  %v752_v46 = vld [vmem:[%s1597_s3 + $0x88] sm:$0xf0]  ;;  %v158_v56 = vld [vmem:[%s1601_s4] sm:$0x3] }
  0x31   :  { %557 = vmatpush.bf16.msrb.mxu1 %v787_v3  ;;  %v988_v47 = vld [vmem:[%s1597_s3 + $0x184] sm:$0xf]  ;;  %v880_v48 = vld [vmem:[%s1597_s3 + $0x188] sm:$0xf0]  ;;  %v819_v51 = vor.u32 %v972_v44, %v816_v45  ;;  %v755_v52 = vor.u32 %v956_v43, %v752_v46  ;;  %v160_v59 = vperm.slane %v158_v56, 0 }
  0x32   :  { %571 = vmatpush.bf16.msrb.mxu2 %v851_v0  ;;  %v883_v53 = vor.u32 %v988_v47, %v880_v48  ;;  %v161_v0 = vperm.slane %v158_v56, 1 }
  0x33   :  { %585 = vmatpush.bf16.msrb.mxu3 %v915_v4 }
  0x34   :  { %544 = vmatpush.bf16.msrb.mxu0 %v715_v12 }
  0x35   :  { %558 = vmatpush.bf16.msrb.mxu1 %v779_v16 }
  0x36   :  { %572 = vmatpush.bf16.msrb.mxu2 %v843_v13 }
  0x37   :  { %586 = vmatpush.bf16.msrb.mxu3 %v907_v17 }
  0x38   :  { %545 = vmatpush.bf16.msrb.mxu0 %v707_v24 }
  0x39   :  { %559 = vmatpush.bf16.msrb.mxu1 %v771_v29 }
  0x3a   :  { %573 = vmatpush.bf16.msrb.mxu2 %v835_v26 }
  0x3b   :  { %587 = vmatpush.bf16.msrb.mxu3 %v899_v30 }
  0x3c   :  { %546 = vmatpush.bf16.msrb.mxu0 %v699_v37 }
  0x3d   :  { %560 = vmatpush.bf16.msrb.mxu1 %v763_v41 }
  0x3e   :  { %574 = vmatpush.bf16.msrb.mxu2 %v827_v38 }
  0x3f   :  { %588 = vmatpush.bf16.msrb.mxu3 %v891_v42 }
  0x40   :  { %547 = vmatpush.bf16.msrb.mxu0 %v691_v49 }
  0x41   :  { %561 = vmatpush.bf16.msrb.mxu1 %v755_v52 }
  0x42   :  { %575 = vmatpush.bf16.msrb.mxu2 %v819_v51 }
  0x43   :  { %589 = vmatpush.bf16.msrb.mxu3 %v883_v53  ;;  %548 = vmatmul.bf16.vlgmr.msrb.gmra.mxu0 %v1458_v50 }
  0x44   :  { %562 = vmatmul.bf16.vlgmr.msrb.gmra.mxu1 %v1497_v8 }
  0x45   :  { %576 = vmatmul.bf16.vlgmr.msrb.gmra.mxu2 %v1433_v25 }
  0x46   :  { %590 = vmatmul.bf16.vlgmr.msrb.gmra.mxu3 %v1478_v60 }
  0xa6   :  { %v493_v54 = vpop.f32.mrf.mxu0 }
  0xa7   :  { %v494_v63 = vadd.f32 %v493_v54, %v160_v59 }
  0xaa   :  { %v521_v57 = vpop.f32.mrf.mxu2 }
  0xab   :  { %v507_v55 = vpop.f32.mrf.mxu1 }
  0xac   :  { %v508_v1 = vadd.f32 %v507_v55, %v494_v63 }
  0xae   :  { %v495_v61 = vpop.f32.mrf.mxu0  ;;  %v522_v60 = vadd.f32 %v521_v57, %v508_v1 }
  0xaf   :  { %v535_v58 = vpop.f32.mrf.mxu3  ;;  %v496_v6 = vadd.f32 %v495_v61, %v160_v59 }
  0xb0   :  { %v536_v8 = vadd.f32 %v535_v58, %v522_v60 }
  0xb2   :  { %v523_v50 = vpop.f32.mrf.mxu2  ;;  %v596_v15 = vmax.f32 %v536_v8, 0.0 }
  0xb3   :  { %v509_v62 = vpop.f32.mrf.mxu1 }
  0xb4   :  { %v510_v12 = vadd.f32 %v509_v62, %v496_v6 }
  0xb6   :  { %v524_v17 = vadd.f32 %v523_v50, %v510_v12 }
  0xb7   :  { %v537_v25 = vpop.f32.mrf.mxu3 }
  0xb8   :  { %v538_v26 = vadd.f32 %v537_v25, %v524_v17 }
  0xba   :  { %v598_v37 = vmax.f32 %v538_v26, 0.0 }
  0xc0   :  { %v549_v2 = vpop.f32.mrf.mxu0 }
  0xc1   :  { %v550_v3 = vadd.f32 %v549_v2, %v161_v0  ;;  %v563_v4 = vpop.f32.mrf.mxu1 }
  0xc3   :  { %v564_v5 = vadd.f32 %v563_v4, %v550_v3 }
  0xc8   :  { %v577_v7 = vpop.f32.mrf.mxu2  ;;  %v551_v11 = vpop.f32.mrf.mxu0 }
  0xc9   :  { %v578_v9 = vadd.f32 %v577_v7, %v564_v5  ;;  %v591_v10 = vpop.f32.mrf.mxu3  ;;  %v552_v14 = vadd.f32 %v551_v11, %v161_v0  ;;  %v565_v18 = vpop.f32.mrf.mxu1 }
  0xcb   :  { %v592_v13 = vadd.f32 %v591_v10, %v578_v9  ;;  %v566_v20 = vadd.f32 %v565_v18, %v552_v14 }
  0xcd   :  { %v597_v16 = vmax.f32 %v592_v13, 0.0 }
  0xcf   :  { %v600_v19 = vpack.c.bf16 %v597_v16, %v596_v15 }
  0xd0   :  { %v579_v21 = vpop.f32.mrf.mxu2 }
  0xd1   :  { %602 = vst [vmem:[%s1602_s5] sm:$0xff] %v600_v19  ;;  %v604_v22 = vunpack.c.l.bf16 %v600_v19  ;;  %v605_v23 = vunpack.c.h.bf16 %v600_v19  ;;  %v580_v24 = vadd.f32 %v579_v21, %v566_v20  ;;  %v593_v31 = vpop.f32.mrf.mxu3 }
  0xd3   :  { %v608_v27 = vrot.slane %v604_v22, 4  ;;  %v614_v28 = vrot.slane %v605_v23, 4  ;;  %v632_v29 = vmul.f32 %v604_v22, %v604_v22  ;;  %v633_v30 = vmul.f32 %v605_v23, %v605_v23 }
  0xd4   :  { %v594_v32 = vadd.f32 %v593_v31, %v580_v24 }
  0xd5   :  { %v609_v33 = vadd.f32 %v608_v27, %v604_v22  ;;  %v615_v34 = vadd.f32 %v614_v28, %v605_v23  ;;  %v634_v35 = vrot.slane %v632_v29, 4  ;;  %v640_v36 = vrot.slane %v633_v30, 4 }
  0xd6   :  { %v599_v38 = vmax.f32 %v594_v32, 0.0 }
  0xd7   :  { %v635_v39 = vadd.f32 %v634_v35, %v632_v29  ;;  %v641_v40 = vadd.f32 %v640_v36, %v633_v30  ;;  %v610_v42 = vrot.slane %v609_v33, 2  ;;  %v616_v43 = vrot.slane %v615_v34, 2 }
  0xd8   :  { %v601_v41 = vpack.c.bf16 %v599_v38, %v598_v37 }
  0xd9   :  { %v636_v46 = vrot.slane %v635_v39, 2  ;;  %v642_v47 = vrot.slane %v641_v40, 2  ;;  %v611_v53 = vadd.f32 %v610_v42, %v609_v33  ;;  %v617_v54 = vadd.f32 %v616_v43, %v615_v34 }
  0xda   :  { %603 = vst [vmem:[%s1602_s5 + $0x8] sm:$0xff] %v601_v41  ;;  %v606_v44 = vunpack.c.l.bf16 %v601_v41  ;;  %v607_v45 = vunpack.c.h.bf16 %v601_v41 }
  0xdb   :  { %v637_v59 = vadd.f32 %v636_v46, %v635_v39  ;;  %v643_v61 = vadd.f32 %v642_v47, %v641_v40  ;;  %v612_v1 = vrot.slane %v611_v53, 1  ;;  %v618_v25 = vrot.slane %v617_v54, 1 }
  0xdc   :  { %v620_v48 = vrot.slane %v606_v44, 4  ;;  %v626_v49 = vrot.slane %v607_v45, 4  ;;  %v646_v51 = vmul.f32 %v606_v44, %v606_v44  ;;  %v647_v52 = vmul.f32 %v607_v45, %v607_v45 }
  0xdd   :  { %v638_v5 = vrot.slane %v637_v59, 1  ;;  %v644_v6 = vrot.slane %v643_v61, 1  ;;  %v613_v11 = vadd.f32 %v612_v1, %v611_v53  ;;  %v619_v12 = vadd.f32 %v618_v25, %v617_v54 }
  0xde   :  { %v621_v55 = vadd.f32 %v620_v48, %v606_v44  ;;  %v627_v56 = vadd.f32 %v626_v49, %v607_v45  ;;  %v648_v57 = vrot.slane %v646_v51, 4  ;;  %v654_v58 = vrot.slane %v647_v52, 4 }
  0xdf   :  { %v639_v17 = vadd.f32 %v638_v5, %v637_v59  ;;  %v645_v18 = vadd.f32 %v644_v6, %v643_v61 }
  0xe0   :  { %v622_v62 = vrot.slane %v621_v55, 2  ;;  %v628_v63 = vrot.slane %v627_v56, 2  ;;  %v649_v0 = vadd.f32 %v648_v57, %v646_v51  ;;  %v655_v50 = vadd.f32 %v654_v58, %v647_v52 }
  0xe2   :  { %v623_v2 = vadd.f32 %v622_v62, %v621_v55  ;;  %v629_v3 = vadd.f32 %v628_v63, %v627_v56  ;;  %v650_v4 = vrot.slane %v649_v0, 2  ;;  %v656_v60 = vrot.slane %v655_v50, 2 }
  0xe4   :  { %v624_v7 = vrot.slane %v623_v2, 1  ;;  %v630_v8 = vrot.slane %v629_v3, 1  ;;  %v651_v9 = vadd.f32 %v650_v4, %v649_v0  ;;  %v657_v10 = vadd.f32 %v656_v60, %v655_v50 }
  0xe6   :  { %v625_v13 = vadd.f32 %v624_v7, %v623_v2  ;;  %v631_v14 = vadd.f32 %v630_v8, %v629_v3  ;;  %v652_v15 = vrot.slane %v651_v9, 1  ;;  %v658_v16 = vrot.slane %v657_v10, 1 }
  0xe8   :  { %v653_v19 = vadd.f32 %v652_v15, %v651_v9  ;;  %v659_v20 = vadd.f32 %v658_v16, %v657_v10  ;;  %v661_v21 = vsel %vm660_vm0, %v613_v11, %v625_v13  ;;  %v662_v22 = vsel %vm660_vm0, %v619_v12, %v631_v14 }
  0xe9   :  { %v664_v23 = vsel %vm663_vm1, %v661_v21, %v639_v17  ;;  %v665_v24 = vsel %vm663_vm1, %v662_v22, %v645_v18 }
  0xea   :  { %v668_v26 = vsel %vm666_vm2, %v665_v24, %v659_v20  ;;  %v667_v28 = vsel %vm666_vm2, %v664_v23, %v653_v19 }
  0xeb   :  { %v671_v27 = vrot.slane %v668_v26, 4 }
  0xed   :  { %v673_v29 = vsel %vm672_vm3, %v667_v28, %v671_v27 }
  0xee   :  { %675 = vst [vmem:[%s1603_s6] sm:$0xff] %v673_v29 }

// kernel: mse_bce_loss.5
= control target key start
LH: loop header
LB: loop body
LE: loop exit
PB: predicated region body
PF: predicated region fallthrough
CT: control target
= control target key end

     0   :  { %v237_v56 = vlaneseq  ;;  %s450_s3 = inlined_call_operand.vmem [shape: bf16[256,128], index: 3, kind: input, shape index: {}]   ;;  %s451_s4 = inlined_call_operand.vmem [shape: f32[1,128], index: 4, kind: input, shape index: {}]   ;;  %s452_s0 = inlined_call_operand.vmem [shape: bf16[2,8,256], index: 0, kind: input, shape index: {}]   ;;  %s453_s1 = inlined_call_operand.vmem [shape: f32[2,1,256], index: 1, kind: input, shape index: {}]   ;;  %s454_s2 = inlined_call_operand.vmem [shape: f32[2,1,256], index: 2, kind: input, shape index: {}]   ;;  %s455_s5 = inlined_call_operand.vmem [shape: f32[1,1,128], index: 5, kind: output, shape index: {}]  }
   0x1   :  { %v330_v0 = vld [vmem:[%s450_s3 + $0x38] sm:$0xff]  ;;  %v329_v2 = vld [vmem:[%s450_s3 + $0x30] sm:$0xff]  ;;  %v328_v4 = vld [vmem:[%s450_s3 + $0x28] sm:$0xff] }
   0x2   :  { %v338_v1 = vld [vmem:[%s450_s3 + $0x78] sm:$0xff]  ;;  %192 = vmatpush.bf16.msra.mxu0 %v330_v0  ;;  %v337_v3 = vld [vmem:[%s450_s3 + $0x70] sm:$0xff]  ;;  %v336_v5 = vld [vmem:[%s450_s3 + $0x68] sm:$0xff]  ;;  %v238_v60 = vand.u32 127, %v237_v56 }
   0x3   :  { %206 = vmatpush.bf16.msra.mxu1 %v338_v1  ;;  %v327_v6 = vld [vmem:[%s450_s3 + $0x20] sm:$0xff]  ;;  %v326_v8 = vld [vmem:[%s450_s3 + $0x18] sm:$0xff]  ;;  %v21_v10 = vld [vmem:[%s452_s0 + $0x8] sm:$0xff] }
   0x4   :  { %v335_v7 = vld [vmem:[%s450_s3 + $0x60] sm:$0xff]  ;;  %v334_v11 = vld [vmem:[%s450_s3 + $0x58] sm:$0xff]  ;;  %v24_v15 = vunpack.c.l.bf16 %v21_v10  ;;  %v25_v18 = vunpack.c.h.bf16 %v21_v10  ;;  %v325_v24 = vld [vmem:[%s450_s3 + $0x10] sm:$0xff]  ;;  %vm239_vm0 = vcmp.lt.s32.totalorder %v238_v60, 14 }
   0x5   :  { %v20_v9 = vld [vmem:[%s452_s0] sm:$0xff]  ;;  %v333_v25 = vld [vmem:[%s450_s3 + $0x50] sm:$0xff]  ;;  %v324_v34 = vld [vmem:[%s450_s3 + $0x8] sm:$0xff] }
   0x6   :  { %193 = vmatpush.bf16.msra.mxu0 %v329_v2  ;;  %v26_v12 = vld [vmem:[%s453_s1] sm:$0x3]  ;;  %v27_v13 = vld [vmem:[%s453_s1 + $0x2] sm:$0x3]  ;;  %v22_v14 = vunpack.c.l.bf16 %v20_v9  ;;  %v23_v17 = vunpack.c.h.bf16 %v20_v9  ;;  %v332_v35 = vld [vmem:[%s450_s3 + $0x48] sm:$0xff] }
   0x7   :  { %207 = vmatpush.bf16.msra.mxu1 %v337_v3  ;;  %v42_v16 = vld [vmem:[%s454_s2] sm:$0x3]  ;;  %v30_v19 = vperm.slane %v26_v12, 0  ;;  %v32_v20 = vperm.slane %v27_v13, 0  ;;  %v43_v21 = vld [vmem:[%s454_s2 + $0x2] sm:$0x3] }
   0x8   :  { %v31_v22 = vperm.slane %v26_v12, 1  ;;  %v33_v23 = vperm.slane %v27_v13, 1  ;;  %v46_v26 = vperm.slane %v42_v16, 0  ;;  %v48_v27 = vperm.slane %v43_v21, 0  ;;  %v323_v40 = vld [vmem:[%s450_s3] sm:$0xff] }
   0x9   :  { %v47_v28 = vperm.slane %v42_v16, 1  ;;  %v49_v29 = vperm.slane %v43_v21, 1  ;;  %v38_v30 = vmul.f32 %v30_v19, %v22_v14  ;;  %v40_v31 = vmul.f32 %v32_v20, %v24_v15  ;;  %v331_v41 = vld [vmem:[%s450_s3 + $0x40] sm:$0xff] }
   0xa   :  { %194 = vmatpush.bf16.msra.mxu0 %v328_v4  ;;  %v39_v32 = vmul.f32 %v31_v22, %v23_v17  ;;  %v41_v33 = vmul.f32 %v33_v23, %v25_v18  ;;  %v342_v44 = vld [vmem:[%s451_s4] ss:$0 sm:$0xff] }
   0xb   :  { %208 = vmatpush.bf16.msra.mxu1 %v336_v5  ;;  %v54_v36 = vadd.f32 %v46_v26, %v38_v30  ;;  %v56_v37 = vadd.f32 %v48_v27, %v40_v31 }
   0xc   :  { %v55_v38 = vadd.f32 %v47_v28, %v39_v32  ;;  %v57_v39 = vadd.f32 %v49_v29, %v41_v33 }
   0xd   :  { %v58_v42 = vpack.c.bf16 %v56_v37, %v54_v36 }
   0xe   :  { %195 = vmatpush.bf16.msra.mxu0 %v327_v6  ;;  %v59_v43 = vpack.c.bf16 %v57_v39, %v55_v38  ;;  %v347_v6 = vmov 0.0  }
   0xf   :  { %209 = vmatpush.bf16.msra.mxu1 %v335_v7  ;;  %v322_v7 = vsel %vm239_vm0, 1.0, %v347_v6 }
  0x12   :  { %196 = vmatpush.bf16.msra.mxu0 %v326_v8 }
  0x13   :  { %210 = vmatpush.bf16.msra.mxu1 %v334_v11 }
  0x16   :  { %197 = vmatpush.bf16.msra.mxu0 %v325_v24 }
  0x17   :  { %211 = vmatpush.bf16.msra.mxu1 %v333_v25 }
  0x1a   :  { %198 = vmatpush.bf16.msra.mxu0 %v324_v34 }
  0x1b   :  { %212 = vmatpush.bf16.msra.mxu1 %v332_v35 }
  0x1e   :  { %199 = vmatpush.bf16.msra.mxu0 %v323_v40 }
  0x1f   :  { %213 = vmatpush.bf16.msra.mxu1 %v331_v41 }
  0x21   :  { %200 = vmatmul.bf16.vlgmr.msra.gmra.mxu0 %v58_v42 }
  0x22   :  { %214 = vmatmul.bf16.vlgmr.msra.gmra.mxu1 %v59_v43 }
  0x9e   :  { %v201_v45 = vpop.f32.mrf.mxu0 }
  0x9f   :  { %v202_v46 = vadd.f32 %v342_v44, %v201_v45  ;;  %v215_v47 = vpop.f32.mrf.mxu1 }
  0xa1   :  { %v216_v48 = vadd.f32 %v215_v47, %v202_v46 }
  0xa3   :  { %v223_v49 = vand.u32 2147483647, %v216_v48  ;;  %v220_v1 = vmax.f32 %v216_v48, 0.0 }
  0xa5   :  { %v224_v50 = vsub.f32 0.0, %v223_v49 }
  0xa6   :  { %v203_v52 = vpop.f32.mrf.mxu0 }
  0xa7   :  { %v225_v51 = vmul.f32 1.442695, %v224_v50  ;;  %v204_v53 = vadd.f32 %v342_v44, %v203_v52  ;;  %v217_v57 = vpop.f32.mrf.mxu1 }
  0xa9   :  { %343 = vpow2.f32 %v225_v51  ;;  %v218_v59 = vadd.f32 %v217_v57, %v204_v53 }
  0xab   :  { %v221_v62 = vmul.f32 %v218_v59, %v216_v48 }
  0xad   :  { %v222_v4 = vsub.f32 %v220_v1, %v221_v62 }
  0xaf   :  { %v344_v54 = vpop.eup %343 }
  0xb0   :  { %v227_v55 = vadd.f32 1.0, %v344_v54  ;;  %v230_v58 = vmul.f32 -0.5, %v344_v54  ;;  %v233_v63 = vand.u32 2147483647, %v344_v54 }
  0xb2   :  { %345 = vlog2.f32 %v227_v55  ;;  %v231_v61 = vadd.f32 1.0, %v230_v58  ;;  %vm234_vm1 = vcmp.lt.f32.partialorder %v233_v63, 0.0004427343 }
  0xb4   :  { %v232_v3 = vmul.f32 %v344_v54, %v231_v61 }
  0xb8   :  { %v346_v0 = vpop.eup %345 }
  0xb9   :  { %v229_v2 = vmul.f32 0.6931472, %v346_v0 }
  0xbb   :  { %v235_v5 = vsel %vm234_vm1, %v232_v3, %v229_v2 }
  0xbc   :  { %v236_v8 = vadd.f32 %v235_v5, %v222_v4 }
  0xbe   :  { %v242_v9 = vmul.f32 %v322_v7, %v236_v8 }
  0xc0   :  { %243 = vadd.xlane.f32.xlu0 %v242_v9 }
 0x133   :  { %v244_v10 = vpop.xlane.xlu0 %243 }
 0x134   :  { %v245_v11 = vrot.slane %v244_v10, 4 }
 0x136   :  { %v246_v12 = vadd.f32 %v245_v11, %v244_v10 }
 0x138   :  { %v247_v13 = vrot.slane %v246_v12, 2 }
 0x13a   :  { %v248_v14 = vadd.f32 %v247_v13, %v246_v12 }
 0x13c   :  { %v249_v15 = vrot.slane %v248_v14, 1 }
 0x13e   :  { %v250_v16 = vadd.f32 %v249_v15, %v248_v14 }
 0x140   :  { %339 = vpush %v250_v16 }
 0x171   :  { %s340_s3 = spop %339 }
 0x172   :  { %v252_v17 = vstv %s340_s3 }
 0x173   :  { %253 = vst [vmem:[%s455_s5] sm:$0x1] %v252_v17 }

// kernel: mse_bce_loss.3
= control target key start
LH: loop header
LB: loop body
LE: loop exit
PB: predicated region body
PF: predicated region fallthrough
CT: control target
= control target key end

     0   :  { %vm1381_vm0 = vcmask 1040384   ;;  %vm1386_vm1 = vcmask 1041408   ;;  %vm1391_vm2 = vcmask 1042432   ;;  %vm1402_vm3 = vcmask 1043456   ;;  %s3547_s2 = inlined_call_operand.vmem [shape: bf16[512,512], index: 2, kind: input, shape index: {}]   ;;  %s3548_s0 = inlined_call_operand.vmem [shape: f32[8,512], index: 0, kind: input, shape index: {}]   ;;  %s3549_s1 = inlined_call_operand.vmem [shape: f32[8,512], index: 1, kind: input, shape index: {}]   ;;  %s3550_s3 = inlined_call_operand.vmem [shape: f32[1,512], index: 3, kind: input, shape index: {}]   ;;  %s3551_s4 = inlined_call_operand.vmem [shape: bf16[2,8,512], index: 4, kind: output, shape index: {0}]   ;;  %s3552_s5 = inlined_call_operand.vmem [shape: f32[1,4,512], index: 5, kind: output, shape index: {1}]   ;;  %s3553_s6 = inlined_call_operand.vmem [shape: f32[1,1,128], index: 6, kind: output, shape index: {2}]  }
   0x1   :  { %v1535_v0 = vld [vmem:[%s3547_s2 + $0xe0] sm:$0xf]  ;;  %v1965_v1 = vld [vmem:[%s3547_s2 + $0xec] sm:$0xf0] }
   0x2   :  { %v1663_v2 = vld [vmem:[%s3547_s2 + $0x1e0] sm:$0xf]  ;;  %v2109_v3 = vor.u32 %v1965_v1, %v1535_v0  ;;  %v1997_v4 = vld [vmem:[%s3547_s2 + $0x1ec] sm:$0xf0] }
   0x3   :  { %v1791_v5 = vld [vmem:[%s3547_s2 + $0x2e0] sm:$0xf]  ;;  %v2029_v6 = vld [vmem:[%s3547_s2 + $0x2ec] sm:$0xf0]  ;;  %v2120_v7 = vor.u32 %v1997_v4, %v1663_v2 }
   0x4   :  { %v2122_v8 = vor.u32 %v2029_v6, %v1791_v5  ;;  %v1919_v9 = vld [vmem:[%s3547_s2 + $0x3e0] sm:$0xf]  ;;  %v2061_v10 = vld [vmem:[%s3547_s2 + $0x3ec] sm:$0xf0]  ;;  %832 = vmatpush.bf16.msra.mxu0 %v2109_v3 }
   0x5   :  { %v1519_v11 = vld [vmem:[%s3547_s2 + $0xc0] sm:$0xf]  ;;  %v2134_v12 = vor.u32 %v2061_v10, %v1919_v9  ;;  %v1961_v13 = vld [vmem:[%s3547_s2 + $0xcc] sm:$0xf0]  ;;  %845 = vmatpush.bf16.msra.mxu1 %v2120_v7 }
   0x6   :  { %v1647_v14 = vld [vmem:[%s3547_s2 + $0x1c0] sm:$0xf]  ;;  %v1993_v15 = vld [vmem:[%s3547_s2 + $0x1cc] sm:$0xf0]  ;;  %858 = vmatpush.bf16.msra.mxu2 %v2122_v8  ;;  %v2147_v16 = vor.u32 %v1961_v13, %v1519_v11 }
   0x7   :  { %v2149_v17 = vor.u32 %v1993_v15, %v1647_v14  ;;  %v1775_v18 = vld [vmem:[%s3547_s2 + $0x2c0] sm:$0xf]  ;;  %v2025_v19 = vld [vmem:[%s3547_s2 + $0x2cc] sm:$0xf0]  ;;  %871 = vmatpush.bf16.msra.mxu3 %v2134_v12 }
   0x8   :  { %v1903_v20 = vld [vmem:[%s3547_s2 + $0x3c0] sm:$0xf]  ;;  %v2161_v21 = vor.u32 %v2025_v19, %v1775_v18  ;;  %v2057_v22 = vld [vmem:[%s3547_s2 + $0x3cc] sm:$0xf0]  ;;  %833 = vmatpush.bf16.msra.mxu0 %v2147_v16 }
   0x9   :  { %v1503_v23 = vld [vmem:[%s3547_s2 + $0xa0] sm:$0xf]  ;;  %v1957_v24 = vld [vmem:[%s3547_s2 + $0xac] sm:$0xf0]  ;;  %v2172_v25 = vor.u32 %v2057_v22, %v1903_v20  ;;  %846 = vmatpush.bf16.msra.mxu1 %v2149_v17 }
   0xa   :  { %v1631_v26 = vld [vmem:[%s3547_s2 + $0x1a0] sm:$0xf]  ;;  %v1989_v27 = vld [vmem:[%s3547_s2 + $0x1ac] sm:$0xf0]  ;;  %v2184_v29 = vor.u32 %v1957_v24, %v1503_v23  ;;  %859 = vmatpush.bf16.msra.mxu2 %v2161_v21 }
   0xb   :  { %v1759_v28 = vld [vmem:[%s3547_s2 + $0x2a0] sm:$0xf]  ;;  %v2021_v30 = vld [vmem:[%s3547_s2 + $0x2ac] sm:$0xf0]  ;;  %v2197_v33 = vor.u32 %v1989_v27, %v1631_v26  ;;  %872 = vmatpush.bf16.msra.mxu3 %v2172_v25 }
   0xc   :  { %v1887_v31 = vld [vmem:[%s3547_s2 + $0x3a0] sm:$0xf]  ;;  %v2053_v32 = vld [vmem:[%s3547_s2 + $0x3ac] sm:$0xf0]  ;;  %v2199_v34 = vor.u32 %v2021_v30, %v1759_v28  ;;  %834 = vmatpush.bf16.msra.mxu0 %v2184_v29 }
   0xd   :  { %v1487_v35 = vld [vmem:[%s3547_s2 + $0x80] sm:$0xf]  ;;  %v1953_v36 = vld [vmem:[%s3547_s2 + $0x8c] sm:$0xf0]  ;;  %v2211_v38 = vor.u32 %v2053_v32, %v1887_v31  ;;  %847 = vmatpush.bf16.msra.mxu1 %v2197_v33 }
   0xe   :  { %v1615_v37 = vld [vmem:[%s3547_s2 + $0x180] sm:$0xf]  ;;  %v1985_v39 = vld [vmem:[%s3547_s2 + $0x18c] sm:$0xf0]  ;;  %v2229_v44 = vor.u32 %v1953_v36, %v1487_v35  ;;  %860 = vmatpush.bf16.msra.mxu2 %v2199_v34 }
   0xf   :  { %v1743_v40 = vld [vmem:[%s3547_s2 + $0x280] sm:$0xf]  ;;  %v2017_v41 = vld [vmem:[%s3547_s2 + $0x28c] sm:$0xf0]  ;;  %v2233_v45 = vor.u32 %v1985_v39, %v1615_v37  ;;  %873 = vmatpush.bf16.msra.mxu3 %v2211_v38 }
  0x10   :  { %v1871_v42 = vld [vmem:[%s3547_s2 + $0x380] sm:$0xf]  ;;  %v2049_v43 = vld [vmem:[%s3547_s2 + $0x38c] sm:$0xf0]  ;;  %v2235_v46 = vor.u32 %v2017_v41, %v1743_v40  ;;  %835 = vmatpush.bf16.msra.mxu0 %v2229_v44  ;;  %v1963_v40 = vld [vmem:[%s3547_s2 + $0xe4] sm:$0xf] }
  0x11   :  { %v1471_v47 = vld [vmem:[%s3547_s2 + $0x60] sm:$0xf]  ;;  %v1949_v48 = vld [vmem:[%s3547_s2 + $0x6c] sm:$0xf0]  ;;  %v2247_v50 = vor.u32 %v2049_v43, %v1871_v42  ;;  %848 = vmatpush.bf16.msra.mxu1 %v2233_v45  ;;  %v1537_v41 = vld [vmem:[%s3547_s2 + $0xf0] sm:$0xf0] }
  0x12   :  { %v1599_v49 = vld [vmem:[%s3547_s2 + $0x160] sm:$0xf]  ;;  %v1981_v51 = vld [vmem:[%s3547_s2 + $0x16c] sm:$0xf0]  ;;  %v2265_v56 = vor.u32 %v1949_v48, %v1471_v47  ;;  %861 = vmatpush.bf16.msra.mxu2 %v2235_v46  ;;  %v1995_v42 = vld [vmem:[%s3547_s2 + $0x1e4] sm:$0xf] }
  0x13   :  { %v1727_v52 = vld [vmem:[%s3547_s2 + $0x260] sm:$0xf]  ;;  %v2013_v53 = vld [vmem:[%s3547_s2 + $0x26c] sm:$0xf0]  ;;  %v2269_v57 = vor.u32 %v1981_v51, %v1599_v49  ;;  %874 = vmatpush.bf16.msra.mxu3 %v2247_v50  ;;  %v1665_v47 = vld [vmem:[%s3547_s2 + $0x1f0] sm:$0xf0] }
  0x14   :  { %v1855_v54 = vld [vmem:[%s3547_s2 + $0x360] sm:$0xf]  ;;  %v2045_v55 = vld [vmem:[%s3547_s2 + $0x36c] sm:$0xf0]  ;;  %v2271_v58 = vor.u32 %v2013_v53, %v1727_v52  ;;  %836 = vmatpush.bf16.msra.mxu0 %v2265_v56  ;;  %v2027_v48 = vld [vmem:[%s3547_s2 + $0x2e4] sm:$0xf] }
  0x15   :  { %v1455_v59 = vld [vmem:[%s3547_s2 + $0x40] sm:$0xf]  ;;  %v1945_v60 = vld [vmem:[%s3547_s2 + $0x4c] sm:$0xf0]  ;;  %v2283_v62 = vor.u32 %v2045_v55, %v1855_v54  ;;  %849 = vmatpush.bf16.msra.mxu1 %v2269_v57  ;;  %v1793_v49 = vld [vmem:[%s3547_s2 + $0x2f0] sm:$0xf0] }
  0x16   :  { %v1583_v61 = vld [vmem:[%s3547_s2 + $0x140] sm:$0xf]  ;;  %v1977_v63 = vld [vmem:[%s3547_s2 + $0x14c] sm:$0xf0]  ;;  %v2301_v5 = vor.u32 %v1945_v60, %v1455_v59  ;;  %862 = vmatpush.bf16.msra.mxu2 %v2271_v58  ;;  %v2059_v53 = vld [vmem:[%s3547_s2 + $0x3e4] sm:$0xf]  ;;  %v2408_v59 = vor.u32 %v1963_v40, %v1537_v41  ;;  %v2410_v60 = vor.u32 %v1995_v42, %v1665_v47 }
  0x17   :  { %v1711_v0 = vld [vmem:[%s3547_s2 + $0x240] sm:$0xf]  ;;  %v2009_v1 = vld [vmem:[%s3547_s2 + $0x24c] sm:$0xf0]  ;;  %v2305_v6 = vor.u32 %v1977_v63, %v1583_v61  ;;  %875 = vmatpush.bf16.msra.mxu3 %v2283_v62  ;;  %v1921_v54 = vld [vmem:[%s3547_s2 + $0x3f0] sm:$0xf0]  ;;  %v2412_v61 = vor.u32 %v2027_v48, %v1793_v49 }
  0x18   :  { %v1839_v2 = vld [vmem:[%s3547_s2 + $0x340] sm:$0xf]  ;;  %v2041_v4 = vld [vmem:[%s3547_s2 + $0x34c] sm:$0xf0]  ;;  %v2307_v9 = vor.u32 %v2009_v1, %v1711_v0  ;;  %837 = vmatpush.bf16.msra.mxu0 %v2301_v5  ;;  %v1959_v63 = vld [vmem:[%s3547_s2 + $0xc4] sm:$0xf] }
  0x19   :  { %v1439_v10 = vld [vmem:[%s3547_s2 + $0x20] sm:$0xf]  ;;  %v1941_v11 = vld [vmem:[%s3547_s2 + $0x2c] sm:$0xf0]  ;;  %v2319_v14 = vor.u32 %v2041_v4, %v1839_v2  ;;  %850 = vmatpush.bf16.msra.mxu1 %v2305_v6  ;;  %v1521_v0 = vld [vmem:[%s3547_s2 + $0xd0] sm:$0xf0]  ;;  %v2424_v2 = vor.u32 %v2059_v53, %v1921_v54 }
  0x1a   :  { %v1567_v13 = vld [vmem:[%s3547_s2 + $0x120] sm:$0xf]  ;;  %v1973_v15 = vld [vmem:[%s3547_s2 + $0x12c] sm:$0xf0]  ;;  %v2337_v23 = vor.u32 %v1941_v11, %v1439_v10  ;;  %863 = vmatpush.bf16.msra.mxu2 %v2307_v9  ;;  %v1991_v1 = vld [vmem:[%s3547_s2 + $0x1c4] sm:$0xf] }
  0x1b   :  { %v1695_v18 = vld [vmem:[%s3547_s2 + $0x220] sm:$0xf]  ;;  %v2005_v19 = vld [vmem:[%s3547_s2 + $0x22c] sm:$0xf0]  ;;  %v2347_v27 = vor.u32 %v1973_v15, %v1567_v13  ;;  %876 = vmatpush.bf16.msra.mxu3 %v2319_v14  ;;  %v1649_v4 = vld [vmem:[%s3547_s2 + $0x1d0] sm:$0xf0] }
  0x1c   :  { %v1823_v20 = vld [vmem:[%s3547_s2 + $0x320] sm:$0xf]  ;;  %v2037_v22 = vld [vmem:[%s3547_s2 + $0x32c] sm:$0xf0]  ;;  %v2349_v28 = vor.u32 %v2005_v19, %v1695_v18  ;;  %838 = vmatpush.bf16.msra.mxu0 %v2337_v23  ;;  %v2023_v10 = vld [vmem:[%s3547_s2 + $0x2c4] sm:$0xf]  ;;  %v2450_v19 = vor.u32 %v1959_v63, %v1521_v0 }
  0x1d   :  { %v1423_v24 = vld [vmem:[%s3547_s2] sm:$0xf]  ;;  %v1937_v26 = vld [vmem:[%s3547_s2 + $0xc] sm:$0xf0]  ;;  %v2361_v35 = vor.u32 %v2037_v22, %v1823_v20  ;;  %851 = vmatpush.bf16.msra.mxu1 %v2347_v27  ;;  %v1777_v11 = vld [vmem:[%s3547_s2 + $0x2d0] sm:$0xf0] }
  0x1e   :  { %v1551_v30 = vld [vmem:[%s3547_s2 + $0x100] sm:$0xf]  ;;  %v1969_v31 = vld [vmem:[%s3547_s2 + $0x10c] sm:$0xf0]  ;;  %v2382_v43 = vor.u32 %v1937_v26, %v1423_v24  ;;  %864 = vmatpush.bf16.msra.mxu2 %v2349_v28  ;;  %v2055_v13 = vld [vmem:[%s3547_s2 + $0x3c4] sm:$0xf] }
  0x1f   :  { %v1679_v32 = vld [vmem:[%s3547_s2 + $0x200] sm:$0xf]  ;;  %v2001_v36 = vld [vmem:[%s3547_s2 + $0x20c] sm:$0xf0]  ;;  %v2395_v51 = vor.u32 %v1969_v31, %v1551_v30  ;;  %877 = vmatpush.bf16.msra.mxu3 %v2361_v35  ;;  %v1905_v15 = vld [vmem:[%s3547_s2 + $0x3d0] sm:$0xf0]  ;;  %v2467_v30 = vor.u32 %v1991_v1, %v1649_v4  ;;  %v2469_v31 = vor.u32 %v2023_v10, %v1777_v11 }
  0x20   :  { %v1807_v37 = vld [vmem:[%s3547_s2 + $0x300] sm:$0xf]  ;;  %v2033_v39 = vld [vmem:[%s3547_s2 + $0x30c] sm:$0xf0]  ;;  %v2397_v52 = vor.u32 %v2001_v36, %v1679_v32  ;;  %839 = vmatpush.bf16.msra.mxu0 %v2382_v43  ;;  %v1955_v20 = vld [vmem:[%s3547_s2 + $0xa4] sm:$0xf] }
  0x21   :  { %v2406_v55 = vor.u32 %v2033_v39, %v1807_v37  ;;  %852 = vmatpush.bf16.msra.mxu1 %v2395_v51  ;;  %v2446_v18 = vld [vmem:[%s3548_s0 + $0x10] sm:$0xff]  ;;  %v1987_v24 = vld [vmem:[%s3547_s2 + $0x1a4] sm:$0xf]  ;;  %3635 = vst [vmem:[#allocation3_spill] sm:$0xff] %v2469_v31  ;;  %v2481_v39 = vor.u32 %v2055_v13, %v1905_v15  ;;  %v2492_v41 = vld [vmem:[%s3548_s0 + $0x18] sm:$0xff] }
  0x22   :  { %865 = vmatpush.bf16.msra.mxu2 %v2397_v52  ;;  %3634 = vst [vmem:[#allocation2_spill] sm:$0xff] %v2446_v18  ;;  %v1505_v22 = vld [vmem:[%s3547_s2 + $0xb0] sm:$0xf0]  ;;  %v2463_v26 = vpack.c.bf16 %v2446_v18, %v2446_v18  ;;  %v2019_v36 = vld [vmem:[%s3547_s2 + $0x2a4] sm:$0xf]  ;;  %v2497_v42 = vld [vmem:[%s3548_s0 + $0x8] sm:$0xff]  ;;  %v2511_v53 = vpack.c.bf16 %v2492_v41, %v2492_v41 }
  0x23   :  { %878 = vmatpush.bf16.msra.mxu3 %v2406_v55  ;;  %v1633_v32 = vld [vmem:[%s3547_s2 + $0x1b0] sm:$0xf0]  ;;  %3636 = vst [vmem:[#allocation4_spill] sm:$0xff] %v2481_v39  ;;  %v2487_v40 = vld [vmem:[%s3548_s0] sm:$0xff]  ;;  %v2515_v54 = vpack.c.bf16 %v2497_v42, %v2497_v42  ;;  %v2518_v63 = vor.u32 %v1955_v20, %v1505_v22 }
  0x24   :  { %884 = vmatpush.bf16.msrb.mxu0 %v2408_v59  ;;  %v1761_v37 = vld [vmem:[%s3547_s2 + $0x2b0] sm:$0xf0]  ;;  %3637 = vst [vmem:[#allocation5_spill] sm:$0xff] %v2487_v40  ;;  %v2051_v47 = vld [vmem:[%s3547_s2 + $0x3a4] sm:$0xf]  ;;  %v2507_v49 = vpack.c.bf16 %v2487_v40, %v2487_v40  ;;  %v2522_v0 = vor.u32 %v1987_v24, %v1633_v32 }
  0x25   :  { %897 = vmatpush.bf16.msrb.mxu1 %v2410_v60  ;;  %866 = vmatmul.bf16.vlgmr.msra.gmra.mxu2 %v2463_v26  ;;  %3638 = vst [vmem:[#allocation6_spill] sm:$0xff] %v2492_v41  ;;  %v1889_v48 = vld [vmem:[%s3547_s2 + $0x3b0] sm:$0xf0]  ;;  %v2524_v1 = vor.u32 %v2019_v36, %v1761_v37  ;;  %v1951_v4 = vld [vmem:[%s3547_s2 + $0x84] sm:$0xf] }
  0x26   :  { %910 = vmatpush.bf16.msrb.mxu2 %v2412_v61  ;;  %3639 = vst [vmem:[#allocation7_spill] sm:$0xff] %v2497_v42  ;;  %v1489_v10 = vld [vmem:[%s3547_s2 + $0x90] sm:$0xf0]  ;;  %v1983_v11 = vld [vmem:[%s3547_s2 + $0x184] sm:$0xf]  ;;  %v2536_v13 = vor.u32 %v2051_v47, %v1889_v48  ;;  %840 = vmatmul.bf16.vlgmr.msra.gmra.mxu0 %v2507_v49 }
  0x27   :  { %923 = vmatpush.bf16.msrb.mxu3 %v2424_v2  ;;  %3640 = vst [vmem:[#allocation8_spill] sm:$0xff] %v2518_v63  ;;  %v1617_v15 = vld [vmem:[%s3547_s2 + $0x190] sm:$0xf0]  ;;  %v2015_v20 = vld [vmem:[%s3547_s2 + $0x284] sm:$0xf]  ;;  %853 = vmatmul.bf16.vlgmr.msra.gmra.mxu1 %v2515_v54  ;;  %v2557_v36 = vor.u32 %v1951_v4, %v1489_v10 }
  0x28   :  { %885 = vmatpush.bf16.msrb.mxu0 %v2450_v19  ;;  %3641 = vst [vmem:[#allocation9_spill] sm:$0xff] %v2522_v0  ;;  %v1745_v22 = vld [vmem:[%s3547_s2 + $0x290] sm:$0xf0]  ;;  %v2047_v24 = vld [vmem:[%s3547_s2 + $0x384] sm:$0xf]  ;;  %879 = vmatmul.bf16.vlgmr.msra.gmra.mxu3 %v2511_v53  ;;  %v2561_v37 = vor.u32 %v1983_v11, %v1617_v15 }
  0x29   :  { %898 = vmatpush.bf16.msrb.mxu1 %v2467_v30  ;;  %3642 = vst [vmem:[#allocation10_spill] sm:$0xff] %v2524_v1  ;;  %v1873_v32 = vld [vmem:[%s3547_s2 + $0x390] sm:$0xf0]  ;;  %v2563_v47 = vor.u32 %v2015_v20, %v1745_v22  ;;  %v1947_v48 = vld [vmem:[%s3547_s2 + $0x64] sm:$0xf] }
  0x2a   :  { %911 = vmatpush.bf16.msrb.mxu2 %v2469_v31  ;;  %3643 = vst [vmem:[#allocation11_spill] sm:$0xff] %v2536_v13  ;;  %v1473_v41 = vld [vmem:[%s3547_s2 + $0x70] sm:$0xf0]  ;;  %v1979_v4 = vld [vmem:[%s3547_s2 + $0x164] sm:$0xf]  ;;  %v2575_v10 = vor.u32 %v2047_v24, %v1873_v32 }
  0x2b   :  { %924 = vmatpush.bf16.msrb.mxu3 %v2481_v39  ;;  %3644 = vst [vmem:[#allocation12_spill] sm:$0xff] %v2557_v36  ;;  %v1601_v11 = vld [vmem:[%s3547_s2 + $0x170] sm:$0xf0]  ;;  %v2011_v15 = vld [vmem:[%s3547_s2 + $0x264] sm:$0xf]  ;;  %v2593_v32 = vor.u32 %v1947_v48, %v1473_v41 }
  0x2c   :  { %886 = vmatpush.bf16.msrb.mxu0 %v2518_v63  ;;  %3645 = vst [vmem:[#allocation13_spill] sm:$0xff] %v2561_v37  ;;  %v1729_v20 = vld [vmem:[%s3547_s2 + $0x270] sm:$0xf0]  ;;  %v2043_v22 = vld [vmem:[%s3547_s2 + $0x364] sm:$0xf]  ;;  %v2597_v18 = vor.u32 %v1979_v4, %v1601_v11 }
  0x2d   :  { %899 = vmatpush.bf16.msrb.mxu1 %v2522_v0  ;;  %3646 = vst [vmem:[#allocation14_spill] sm:$0xff] %v2563_v47  ;;  %v1857_v24 = vld [vmem:[%s3547_s2 + $0x370] sm:$0xf0]  ;;  %v2599_v42 = vor.u32 %v2011_v15, %v1729_v20  ;;  %v1943_v40 = vld [vmem:[%s3547_s2 + $0x44] sm:$0xf] }
  0x2e   :  { %912 = vmatpush.bf16.msrb.mxu2 %v2524_v1  ;;  %3647 = vst [vmem:[#allocation15_spill] sm:$0xff] %v2575_v10  ;;  %v1975_v41 = vld [vmem:[%s3547_s2 + $0x144] sm:$0xf]  ;;  %v2611_v48 = vor.u32 %v2043_v22, %v1857_v24  ;;  %v1585_v4 = vld [vmem:[%s3547_s2 + $0x150] sm:$0xf0] }
  0x2f   :  { %925 = vmatpush.bf16.msrb.mxu3 %v2536_v13  ;;  %3648 = vst [vmem:[#allocation16_spill] sm:$0xff] %v2593_v32  ;;  %v1457_v13 = vld [vmem:[%s3547_s2 + $0x50] sm:$0xf0]  ;;  %v2007_v11 = vld [vmem:[%s3547_s2 + $0x244] sm:$0xf] }
  0x30   :  { %887 = vmatpush.bf16.msrb.mxu0 %v2557_v36  ;;  %3649 = vst [vmem:[#allocation17_spill] sm:$0xff] %v2597_v18  ;;  %v1713_v15 = vld [vmem:[%s3547_s2 + $0x250] sm:$0xf0]  ;;  %v2039_v20 = vld [vmem:[%s3547_s2 + $0x344] sm:$0xf]  ;;  %v2629_v24 = vor.u32 %v1943_v40, %v1457_v13 }
  0x31   :  { %900 = vmatpush.bf16.msrb.mxu1 %v2561_v37  ;;  %3650 = vst [vmem:[#allocation18_spill] sm:$0xff] %v2599_v42  ;;  %v1841_v22 = vld [vmem:[%s3547_s2 + $0x350] sm:$0xf0]  ;;  %v1939_v37 = vld [vmem:[%s3547_s2 + $0x24] sm:$0xf] }
  0x32   :  { %913 = vmatpush.bf16.msrb.mxu2 %v2563_v47  ;;  %3651 = vst [vmem:[#allocation19_spill] sm:$0xff] %v2611_v48  ;;  %v2635_v47 = vor.u32 %v2007_v11, %v1713_v15  ;;  %v1441_v36 = vld [vmem:[%s3547_s2 + $0x30] sm:$0xf0]  ;;  %v1971_v40 = vld [vmem:[%s3547_s2 + $0x124] sm:$0xf]  ;;  %v2647_v13 = vor.u32 %v2039_v20, %v1841_v22 }
  0x33   :  { %926 = vmatpush.bf16.msrb.mxu3 %v2575_v10  ;;  %3652 = vst [vmem:[#allocation20_spill] sm:$0xff] %v2629_v24  ;;  %v2633_v10 = vor.u32 %v1975_v41, %v1585_v4  ;;  %v1569_v41 = vld [vmem:[%s3547_s2 + $0x130] sm:$0xf0]  ;;  %v2003_v4 = vld [vmem:[%s3547_s2 + $0x224] sm:$0xf]  ;;  %v2665_v22 = vor.u32 %v1939_v37, %v1441_v36 }
  0x34   :  { %888 = vmatpush.bf16.msrb.mxu0 %v2593_v32  ;;  %3654 = vst [vmem:[#allocation22_spill] sm:$0xff] %v2635_v47  ;;  %v1697_v11 = vld [vmem:[%s3547_s2 + $0x230] sm:$0xf0]  ;;  %v2035_v15 = vld [vmem:[%s3547_s2 + $0x324] sm:$0xf] }
  0x35   :  { %901 = vmatpush.bf16.msrb.mxu1 %v2597_v18  ;;  %3653 = vst [vmem:[#allocation21_spill] sm:$0xff] %v2633_v10  ;;  %v1825_v20 = vld [vmem:[%s3547_s2 + $0x330] sm:$0xf0]  ;;  %v2675_v18 = vor.u32 %v1971_v40, %v1569_v41  ;;  %v2677_v32 = vor.u32 %v2003_v4, %v1697_v11  ;;  %v1967_v36 = vld [vmem:[%s3547_s2 + $0x104] sm:$0xf] }
  0x36   :  { %914 = vmatpush.bf16.msrb.mxu2 %v2599_v42  ;;  %3655 = vst [vmem:[#allocation23_spill] sm:$0xff] %v2647_v13  ;;  %v1425_v42 = vld [vmem:[%s3547_s2 + $0x10] sm:$0xf0]  ;;  %v2031_v41 = vld [vmem:[%s3547_s2 + $0x304] sm:$0xf] }
  0x37   :  { %927 = vmatpush.bf16.msrb.mxu3 %v2611_v48  ;;  %3656 = vst [vmem:[#allocation24_spill] sm:$0xff] %v2665_v22  ;;  %v1935_v48 = vld [vmem:[%s3547_s2 + $0x4] sm:$0xf]  ;;  %v1553_v37 = vld [vmem:[%s3547_s2 + $0x110] sm:$0xf0] }
  0x38   :  { %889 = vmatpush.bf16.msrb.mxu0 %v2629_v24  ;;  %3657 = vst [vmem:[#allocation25_spill] sm:$0xff] %v2675_v18  ;;  %v1999_v24 = vld [vmem:[%s3547_s2 + $0x204] sm:$0xf]  ;;  %v1681_v40 = vld [vmem:[%s3547_s2 + $0x210] sm:$0xf0]  ;;  %v2723_v63 = vor.u32 %v1967_v36, %v1553_v37 }
  0x39   :  { %902 = vmatpush.bf16.msrb.mxu1 %v2633_v10  ;;  %3658 = vst [vmem:[#allocation26_spill] sm:$0xff] %v2677_v32  ;;  %v2689_v10 = vor.u32 %v2035_v15, %v1825_v20  ;;  %v1809_v4 = vld [vmem:[%s3547_s2 + $0x310] sm:$0xf0]  ;;  %v1543_v11 = vld [vmem:[%s3547_s2 + $0xe8] sm:$0xf] }
  0x3a   :  { %915 = vmatpush.bf16.msrb.mxu2 %v2635_v47  ;;  %v1966_v15 = vld [vmem:[%s3547_s2 + $0xf4] sm:$0xf0]  ;;  %v1671_v20 = vld [vmem:[%s3547_s2 + $0x1e8] sm:$0xf]  ;;  %3661 = vst [vmem:[#allocation29_spill] sm:$0xff] %v2723_v63  ;;  %v2734_v39 = vor.u32 %v2031_v41, %v1809_v4 }
  0x3b   :  { %928 = vmatpush.bf16.msrb.mxu3 %v2647_v13  ;;  %3659 = vst [vmem:[#allocation27_spill] sm:$0xff] %v2689_v10  ;;  %v2710_v13 = vor.u32 %v1935_v48, %v1425_v42  ;;  %v1998_v47 = vld [vmem:[%s3547_s2 + $0x1f4] sm:$0xf0]  ;;  %v1799_v1 = vld [vmem:[%s3547_s2 + $0x2e8] sm:$0xf]  ;;  %v2725_v42 = vor.u32 %v1999_v24, %v1681_v40  ;;  %v2736_v31 = vor.u32 %v1966_v15, %v1543_v11 }
  0x3c   :  { %890 = vmatpush.bf16.msrb.mxu0 %v2665_v22  ;;  %v2030_v0 = vld [vmem:[%s3547_s2 + $0x2f4] sm:$0xf0]  ;;  %v1927_v48 = vld [vmem:[%s3547_s2 + $0x3e8] sm:$0xf]  ;;  %3663 = vst [vmem:[#allocation31_spill] sm:$0xff] %v2734_v39 }
  0x3d   :  { %3660 = vst [vmem:[#allocation28_spill] sm:$0xff] %v2710_v13  ;;  %903 = vmatpush.bf16.msrb.mxu1 %v2675_v18  ;;  %v2062_v22 = vld [vmem:[%s3547_s2 + $0x3f4] sm:$0xf0]  ;;  %v2738_v18 = vor.u32 %v1998_v47, %v1671_v20  ;;  %v2740_v36 = vor.u32 %v2030_v0, %v1799_v1  ;;  %v1527_v24 = vld [vmem:[%s3547_s2 + $0xc8] sm:$0xf] }
  0x3e   :  { %916 = vmatpush.bf16.msrb.mxu2 %v2677_v32  ;;  %3662 = vst [vmem:[#allocation30_spill] sm:$0xff] %v2725_v42  ;;  %v1962_v37 = vld [vmem:[%s3547_s2 + $0xd4] sm:$0xf0]  ;;  %v1655_v40 = vld [vmem:[%s3547_s2 + $0x1c8] sm:$0xf]  ;;  %v2752_v41 = vor.u32 %v2062_v22, %v1927_v48 }
  0x3f   :  { %929 = vmatpush.bf16.msrb.mxu3 %v2689_v10  ;;  %3664 = vst [vmem:[#allocation32_spill] sm:$0xff] %v2736_v31  ;;  %v1994_v0 = vld [vmem:[%s3547_s2 + $0x1d4] sm:$0xf0]  ;;  %v1783_v1 = vld [vmem:[%s3547_s2 + $0x2c8] sm:$0xf]  ;;  %v2773_v11 = vor.u32 %v1962_v37, %v1527_v24 }
  0x40   :  { %3665 = vst [vmem:[#allocation33_spill] sm:$0xff] %v2738_v18  ;;  %891 = vmatpush.bf16.msrb.mxu0 %v2710_v13  ;;  %v2026_v47 = vld [vmem:[%s3547_s2 + $0x2d4] sm:$0xf0]  ;;  %v1911_v22 = vld [vmem:[%s3547_s2 + $0x3c8] sm:$0xf]  ;;  %v2777_v15 = vor.u32 %v1994_v0, %v1655_v40 }
  0x41   :  { %3666 = vst [vmem:[#allocation34_spill] sm:$0xff] %v2740_v36  ;;  %904 = vmatpush.bf16.msrb.mxu1 %v2723_v63  ;;  %v2058_v4 = vld [vmem:[%s3547_s2 + $0x3d4] sm:$0xf0]  ;;  %v2779_v20 = vor.u32 %v2026_v47, %v1783_v1  ;;  %v1511_v48 = vld [vmem:[%s3547_s2 + $0xa8] sm:$0xf] }
  0x42   :  { %3667 = vst [vmem:[#allocation35_spill] sm:$0xff] %v2752_v41  ;;  %917 = vmatpush.bf16.msrb.mxu2 %v2725_v42  ;;  %v1639_v24 = vld [vmem:[%s3547_s2 + $0x1a8] sm:$0xf]  ;;  %v2792_v37 = vor.u32 %v2058_v4, %v1911_v22  ;;  %v1990_v40 = vld [vmem:[%s3547_s2 + $0x1b4] sm:$0xf0] }
  0x43   :  { %930 = vmatpush.bf16.msrb.mxu3 %v2734_v39  ;;  %3668 = vst [vmem:[#allocation36_spill] sm:$0xff] %v2773_v11  ;;  %v1958_v39 = vld [vmem:[%s3547_s2 + $0xb4] sm:$0xf0]  ;;  %v1767_v0 = vld [vmem:[%s3547_s2 + $0x2a8] sm:$0xf]  ;;  %892 = vmatmul.bf16.vlgmr.msrb.gmra.mxu0 %v2507_v49 }
  0x44   :  { %936 = vmatpush.bf16.msra.mxu0 %v2736_v31  ;;  %3669 = vst [vmem:[#allocation37_spill] sm:$0xff] %v2777_v15  ;;  %v2022_v1 = vld [vmem:[%s3547_s2 + $0x2b4] sm:$0xf0]  ;;  %v1895_v47 = vld [vmem:[%s3547_s2 + $0x3a8] sm:$0xf]  ;;  %905 = vmatmul.bf16.vlgmr.msrb.gmra.mxu1 %v2515_v54  ;;  %v2813_v4 = vor.u32 %v1958_v39, %v1511_v48 }
  0x45   :  { %949 = vmatpush.bf16.msra.mxu1 %v2738_v18  ;;  %3670 = vst [vmem:[#allocation38_spill] sm:$0xff] %v2779_v20  ;;  %918 = vmatmul.bf16.vlgmr.msrb.gmra.mxu2 %v2463_v26  ;;  %v2054_v22 = vld [vmem:[%s3547_s2 + $0x3b4] sm:$0xf0]  ;;  %v1495_v18 = vld [vmem:[%s3547_s2 + $0x88] sm:$0xf] }
  0x46   :  { %962 = vmatpush.bf16.msra.mxu2 %v2740_v36  ;;  %3671 = vst [vmem:[#allocation39_spill] sm:$0xff] %v2792_v37  ;;  %931 = vmatmul.bf16.vlgmr.msrb.gmra.mxu3 %v2511_v53  ;;  %v2819_v36 = vor.u32 %v2022_v1, %v1767_v0  ;;  %v1623_v39 = vld [vmem:[%s3547_s2 + $0x188] sm:$0xf]  ;;  %v2831_v48 = vor.u32 %v2054_v22, %v1895_v47  ;;  %v2018_v0 = vld [vmem:[%s3547_s2 + $0x294] sm:$0xf0] }
  0x47   :  { %975 = vmatpush.bf16.msra.mxu3 %v2752_v41  ;;  %3672 = vst [vmem:[#allocation40_spill] sm:$0xff] %v2813_v4  ;;  %v2817_v41 = vor.u32 %v1990_v40, %v1639_v24  ;;  %v1986_v24 = vld [vmem:[%s3547_s2 + $0x194] sm:$0xf0]  ;;  %v1751_v40 = vld [vmem:[%s3547_s2 + $0x288] sm:$0xf] }
  0x48   :  { %937 = vmatpush.bf16.msra.mxu0 %v2773_v11  ;;  %3674 = vst [vmem:[#allocation42_spill] sm:$0xff] %v2819_v36  ;;  %v1954_v11 = vld [vmem:[%s3547_s2 + $0x94] sm:$0xf0]  ;;  %v1879_v1 = vld [vmem:[%s3547_s2 + $0x388] sm:$0xf] }
  0x49   :  { %950 = vmatpush.bf16.msra.mxu1 %v2777_v15  ;;  %3673 = vst [vmem:[#allocation41_spill] sm:$0xff] %v2817_v41  ;;  %v2050_v47 = vld [vmem:[%s3547_s2 + $0x394] sm:$0xf0]  ;;  %v2849_v22 = vor.u32 %v1954_v11, %v1495_v18  ;;  %v1479_v15 = vld [vmem:[%s3547_s2 + $0x68] sm:$0xf] }
  0x4a   :  { %963 = vmatpush.bf16.msra.mxu2 %v2779_v20  ;;  %3675 = vst [vmem:[#allocation43_spill] sm:$0xff] %v2831_v48  ;;  %v2855_v20 = vor.u32 %v2018_v0, %v1751_v40  ;;  %v1950_v31 = vld [vmem:[%s3547_s2 + $0x74] sm:$0xf0]  ;;  %v1607_v18 = vld [vmem:[%s3547_s2 + $0x168] sm:$0xf]  ;;  %v2867_v11 = vor.u32 %v2050_v47, %v1879_v1 }
  0x4b   :  { %976 = vmatpush.bf16.msra.mxu3 %v2792_v37  ;;  %3676 = vst [vmem:[#allocation44_spill] sm:$0xff] %v2849_v22  ;;  %v2853_v37 = vor.u32 %v1986_v24, %v1623_v39  ;;  %v1982_v39 = vld [vmem:[%s3547_s2 + $0x174] sm:$0xf0]  ;;  %v1735_v24 = vld [vmem:[%s3547_s2 + $0x268] sm:$0xf]  ;;  %v2885_v47 = vor.u32 %v1950_v31, %v1479_v15 }
  0x4c   :  { %938 = vmatpush.bf16.msra.mxu0 %v2813_v4  ;;  %3678 = vst [vmem:[#allocation46_spill] sm:$0xff] %v2855_v20  ;;  %v2014_v40 = vld [vmem:[%s3547_s2 + $0x274] sm:$0xf0]  ;;  %v1863_v0 = vld [vmem:[%s3547_s2 + $0x368] sm:$0xf] }
  0x4d   :  { %951 = vmatpush.bf16.msra.mxu1 %v2817_v41  ;;  %3677 = vst [vmem:[#allocation45_spill] sm:$0xff] %v2853_v37  ;;  %v2046_v1 = vld [vmem:[%s3547_s2 + $0x374] sm:$0xf0]  ;;  %v1463_v41 = vld [vmem:[%s3547_s2 + $0x48] sm:$0xf] }
  0x4e   :  { %964 = vmatpush.bf16.msra.mxu2 %v2819_v36  ;;  %3679 = vst [vmem:[#allocation47_spill] sm:$0xff] %v2867_v11  ;;  %v2891_v36 = vor.u32 %v2014_v40, %v1735_v24  ;;  %v1946_v4 = vld [vmem:[%s3547_s2 + $0x54] sm:$0xf0]  ;;  %v1591_v31 = vld [vmem:[%s3547_s2 + $0x148] sm:$0xf]  ;;  %v2903_v15 = vor.u32 %v2046_v1, %v1863_v0 }
  0x4f   :  { %977 = vmatpush.bf16.msra.mxu3 %v2831_v48  ;;  %3680 = vst [vmem:[#allocation48_spill] sm:$0xff] %v2885_v47  ;;  %v2889_v48 = vor.u32 %v1982_v39, %v1607_v18  ;;  %v1978_v18 = vld [vmem:[%s3547_s2 + $0x154] sm:$0xf0]  ;;  %v1719_v39 = vld [vmem:[%s3547_s2 + $0x248] sm:$0xf]  ;;  %v2921_v1 = vor.u32 %v1946_v4, %v1463_v41 }
  0x50   :  { %939 = vmatpush.bf16.msra.mxu0 %v2849_v22  ;;  %3682 = vst [vmem:[#allocation50_spill] sm:$0xff] %v2891_v36  ;;  %v2010_v24 = vld [vmem:[%s3547_s2 + $0x254] sm:$0xf0]  ;;  %v1847_v40 = vld [vmem:[%s3547_s2 + $0x348] sm:$0xf] }
  0x51   :  { %952 = vmatpush.bf16.msra.mxu1 %v2853_v37  ;;  %3681 = vst [vmem:[#allocation49_spill] sm:$0xff] %v2889_v48  ;;  %v2042_v0 = vld [vmem:[%s3547_s2 + $0x354] sm:$0xf0]  ;;  %v1447_v37 = vld [vmem:[%s3547_s2 + $0x28] sm:$0xf] }
  0x52   :  { %965 = vmatpush.bf16.msra.mxu2 %v2855_v20  ;;  %3683 = vst [vmem:[#allocation51_spill] sm:$0xff] %v2903_v15  ;;  %v2927_v20 = vor.u32 %v2010_v24, %v1719_v39  ;;  %v1942_v22 = vld [vmem:[%s3547_s2 + $0x34] sm:$0xf0]  ;;  %v1575_v41 = vld [vmem:[%s3547_s2 + $0x128] sm:$0xf]  ;;  %v2939_v4 = vor.u32 %v2042_v0, %v1847_v40 }
  0x53   :  { %978 = vmatpush.bf16.msra.mxu3 %v2867_v11  ;;  %3684 = vst [vmem:[#allocation52_spill] sm:$0xff] %v2921_v1  ;;  %v2925_v11 = vor.u32 %v1978_v18, %v1591_v31  ;;  %v1974_v31 = vld [vmem:[%s3547_s2 + $0x134] sm:$0xf0]  ;;  %v1703_v18 = vld [vmem:[%s3547_s2 + $0x228] sm:$0xf]  ;;  %v2957_v0 = vor.u32 %v1942_v22, %v1447_v37 }
  0x54   :  { %940 = vmatpush.bf16.msra.mxu0 %v2885_v47  ;;  %3686 = vst [vmem:[#allocation54_spill] sm:$0xff] %v2927_v20  ;;  %v2006_v39 = vld [vmem:[%s3547_s2 + $0x234] sm:$0xf0]  ;;  %v1831_v24 = vld [vmem:[%s3547_s2 + $0x328] sm:$0xf] }
  0x55   :  { %953 = vmatpush.bf16.msra.mxu1 %v2889_v48  ;;  %3685 = vst [vmem:[#allocation53_spill] sm:$0xff] %v2925_v11  ;;  %v2038_v40 = vld [vmem:[%s3547_s2 + $0x334] sm:$0xf0]  ;;  %v2967_v48 = vor.u32 %v1974_v31, %v1575_v41  ;;  %v2969_v47 = vor.u32 %v2006_v39, %v1703_v18  ;;  %v1559_v37 = vld [vmem:[%s3547_s2 + $0x108] sm:$0xf] }
  0x56   :  { %966 = vmatpush.bf16.msra.mxu2 %v2891_v36  ;;  %3687 = vst [vmem:[#allocation55_spill] sm:$0xff] %v2939_v4  ;;  %v1938_v36 = vld [vmem:[%s3547_s2 + $0x14] sm:$0xf0]  ;;  %v1815_v31 = vld [vmem:[%s3547_s2 + $0x308] sm:$0xf] }
  0x57   :  { %979 = vmatpush.bf16.msra.mxu3 %v2903_v15  ;;  %3688 = vst [vmem:[#allocation56_spill] sm:$0xff] %v2957_v0  ;;  %v1431_v15 = vld [vmem:[%s3547_s2 + $0x8] sm:$0xf]  ;;  %v1970_v22 = vld [vmem:[%s3547_s2 + $0x114] sm:$0xf0] }
  0x58   :  { %941 = vmatpush.bf16.msra.mxu0 %v2921_v1  ;;  %3689 = vst [vmem:[#allocation57_spill] sm:$0xff] %v2967_v48  ;;  %v1687_v1 = vld [vmem:[%s3547_s2 + $0x208] sm:$0xf]  ;;  %v2002_v41 = vld [vmem:[%s3547_s2 + $0x214] sm:$0xf0]  ;;  %v3015_v13 = vor.u32 %v1970_v22, %v1559_v37 }
  0x59   :  { %954 = vmatpush.bf16.msra.mxu1 %v2925_v11  ;;  %v2981_v11 = vor.u32 %v2038_v40, %v1831_v24  ;;  %v2034_v18 = vld [vmem:[%s3547_s2 + $0x314] sm:$0xf0]  ;;  %v1964_v39 = vld [vmem:[%s3547_s2 + $0xec] sm:$0xf]  ;;  %v1545_v24 = vld [vmem:[%s3547_s2 + $0xf8] sm:$0xf0] }
  0x5a   :  { %967 = vmatpush.bf16.msra.mxu2 %v2927_v20  ;;  %v1996_v40 = vld [vmem:[%s3547_s2 + $0x1ec] sm:$0xf]  ;;  %v1673_v20 = vld [vmem:[%s3547_s2 + $0x1f8] sm:$0xf0]  ;;  %v3026_v10 = vor.u32 %v2034_v18, %v1815_v31  ;;  %v3028_v32 = vor.u32 %v1964_v39, %v1545_v24 }
  0x5b   :  { %980 = vmatpush.bf16.msra.mxu3 %v2939_v4  ;;  %v3002_v4 = vor.u32 %v1938_v36, %v1431_v15  ;;  %v2028_v42 = vld [vmem:[%s3547_s2 + $0x2ec] sm:$0xf]  ;;  %v1801_v63 = vld [vmem:[%s3547_s2 + $0x2f8] sm:$0xf0]  ;;  %v3017_v36 = vor.u32 %v2002_v41, %v1687_v1 }
  0x5c   :  { %942 = vmatpush.bf16.msra.mxu0 %v2957_v0  ;;  %v2060_v15 = vld [vmem:[%s3547_s2 + $0x3ec] sm:$0xf]  ;;  %v1929_v0 = vld [vmem:[%s3547_s2 + $0x3f8] sm:$0xf0]  ;;  %3690 = vst [vmem:[#allocation58_spill] sm:$0xff] %v3026_v10  ;;  %v3032_v37 = vor.u32 %v2028_v42, %v1801_v63 }
  0x5d   :  { %955 = vmatpush.bf16.msra.mxu1 %v2967_v48  ;;  %3691 = vst [vmem:[#allocation59_spill] sm:$0xff] %v3028_v32  ;;  %v3030_v48 = vor.u32 %v1996_v40, %v1673_v20  ;;  %v1960_v1 = vld [vmem:[%s3547_s2 + $0xcc] sm:$0xf]  ;;  %v1529_v22 = vld [vmem:[%s3547_s2 + $0xd8] sm:$0xf0]  ;;  %v3044_v31 = vor.u32 %v2060_v15, %v1929_v0 }
  0x5e   :  { %968 = vmatpush.bf16.msra.mxu2 %v2969_v47  ;;  %3693 = vst [vmem:[#allocation61_spill] sm:$0xff] %v3032_v37  ;;  %v1992_v41 = vld [vmem:[%s3547_s2 + $0x1cc] sm:$0xf]  ;;  %v1657_v63 = vld [vmem:[%s3547_s2 + $0x1d8] sm:$0xf0]  ;;  %v3065_v39 = vor.u32 %v1960_v1, %v1529_v22 }
  0x5f   :  { %981 = vmatpush.bf16.msra.mxu3 %v2981_v11  ;;  %3692 = vst [vmem:[#allocation60_spill] sm:$0xff] %v3030_v48  ;;  %v2024_v42 = vld [vmem:[%s3547_s2 + $0x2cc] sm:$0xf]  ;;  %v1785_v20 = vld [vmem:[%s3547_s2 + $0x2d8] sm:$0xf0]  ;;  %v3069_v24 = vor.u32 %v1992_v41, %v1657_v63 }
  0x60   :  { %943 = vmatpush.bf16.msra.mxu0 %v3002_v4  ;;  %3694 = vst [vmem:[#allocation62_spill] sm:$0xff] %v3044_v31  ;;  %v2056_v0 = vld [vmem:[%s3547_s2 + $0x3cc] sm:$0xf]  ;;  %v1913_v18 = vld [vmem:[%s3547_s2 + $0x3d8] sm:$0xf0]  ;;  %v3071_v40 = vor.u32 %v2024_v42, %v1785_v20 }
  0x61   :  { %956 = vmatpush.bf16.msra.mxu1 %v3015_v13  ;;  %3695 = vst [vmem:[#allocation63_spill] sm:$0xff] %v3065_v39  ;;  %v1956_v15 = vld [vmem:[%s3547_s2 + $0xac] sm:$0xf]  ;;  %v3083_v22 = vor.u32 %v2056_v0, %v1913_v18  ;;  %v1641_v41 = vld [vmem:[%s3547_s2 + $0x1b8] sm:$0xf0] }
  0x62   :  { %969 = vmatpush.bf16.msra.mxu2 %v3017_v36  ;;  %3696 = vst [vmem:[#allocation64_spill] sm:$0xff] %v3069_v24  ;;  %v1988_v1 = vld [vmem:[%s3547_s2 + $0x1ac] sm:$0xf]  ;;  %v1769_v42 = vld [vmem:[%s3547_s2 + $0x2b8] sm:$0xf0] }
  0x63   :  { %982 = vmatpush.bf16.msra.mxu3 %v3026_v10  ;;  %3697 = vst [vmem:[#allocation65_spill] sm:$0xff] %v3071_v40  ;;  %v1513_v10 = vld [vmem:[%s3547_s2 + $0xb8] sm:$0xf0]  ;;  %v2020_v63 = vld [vmem:[%s3547_s2 + $0x2ac] sm:$0xf]  ;;  %944 = vmatmul.bf16.vlgmr.msra.gmra.mxu0 %v2507_v49 }
  0x64   :  { %988 = vmatpush.bf16.msrb.mxu0 %v3028_v32  ;;  %3698 = vst [vmem:[#allocation66_spill] sm:$0xff] %v3083_v22  ;;  %v2052_v20 = vld [vmem:[%s3547_s2 + $0x3ac] sm:$0xf]  ;;  %v1897_v0 = vld [vmem:[%s3547_s2 + $0x3b8] sm:$0xf0]  ;;  %v3104_v18 = vor.u32 %v1956_v15, %v1513_v10  ;;  %957 = vmatmul.bf16.vlgmr.msra.gmra.mxu1 %v2515_v54 }
  0x65   :  { %1001 = vmatpush.bf16.msrb.mxu1 %v3030_v48  ;;  %970 = vmatmul.bf16.vlgmr.msra.gmra.mxu2 %v2463_v26  ;;  %v1952_v48 = vld [vmem:[%s3547_s2 + $0x8c] sm:$0xf]  ;;  %v3123_v15 = vor.u32 %v2052_v20, %v1897_v0  ;;  %v1881_v20 = vld [vmem:[%s3547_s2 + $0x398] sm:$0xf0] }
  0x66   :  { %1014 = vmatpush.bf16.msrb.mxu2 %v3032_v37  ;;  %983 = vmatmul.bf16.vlgmr.msra.gmra.mxu3 %v2511_v53  ;;  %3699 = vst [vmem:[#allocation67_spill] sm:$0xff] %v3104_v18  ;;  %v3111_v37 = vor.u32 %v2020_v63, %v1769_v42  ;;  %v1984_v10 = vld [vmem:[%s3547_s2 + $0x18c] sm:$0xf]  ;;  %v1753_v63 = vld [vmem:[%s3547_s2 + $0x298] sm:$0xf0] }
  0x67   :  { %1027 = vmatpush.bf16.msrb.mxu3 %v3044_v31  ;;  %v3109_v31 = vor.u32 %v1988_v1, %v1641_v41  ;;  %3702 = vst [vmem:[#allocation70_spill] sm:$0xff] %v3123_v15  ;;  %v1625_v1 = vld [vmem:[%s3547_s2 + $0x198] sm:$0xf0]  ;;  %v2016_v41 = vld [vmem:[%s3547_s2 + $0x28c] sm:$0xf] }
  0x68   :  { %989 = vmatpush.bf16.msrb.mxu0 %v3065_v39  ;;  %3701 = vst [vmem:[#allocation69_spill] sm:$0xff] %v3111_v37  ;;  %v1497_v39 = vld [vmem:[%s3547_s2 + $0x98] sm:$0xf0]  ;;  %v2048_v42 = vld [vmem:[%s3547_s2 + $0x38c] sm:$0xf] }
  0x69   :  { %1002 = vmatpush.bf16.msrb.mxu1 %v3069_v24  ;;  %3700 = vst [vmem:[#allocation68_spill] sm:$0xff] %v3109_v31  ;;  %v3141_v0 = vor.u32 %v1952_v48, %v1497_v39  ;;  %v1948_v24 = vld [vmem:[%s3547_s2 + $0x6c] sm:$0xf]  ;;  %v1481_v32 = vld [vmem:[%s3547_s2 + $0x78] sm:$0xf0]  ;;  %v3159_v39 = vor.u32 %v2048_v42, %v1881_v20 }
  0x6a   :  { %1015 = vmatpush.bf16.msrb.mxu2 %v3071_v40  ;;  %v3147_v40 = vor.u32 %v2016_v41, %v1753_v63  ;;  %v1980_v48 = vld [vmem:[%s3547_s2 + $0x16c] sm:$0xf]  ;;  %v1737_v41 = vld [vmem:[%s3547_s2 + $0x278] sm:$0xf0]  ;;  %v3177_v20 = vor.u32 %v1948_v24, %v1481_v32 }
  0x6b   :  { %1028 = vmatpush.bf16.msrb.mxu3 %v3083_v22  ;;  %3703 = vst [vmem:[#allocation71_spill] sm:$0xff] %v3141_v0  ;;  %v3145_v22 = vor.u32 %v1984_v10, %v1625_v1  ;;  %v1609_v10 = vld [vmem:[%s3547_s2 + $0x178] sm:$0xf0]  ;;  %v2012_v1 = vld [vmem:[%s3547_s2 + $0x26c] sm:$0xf] }
  0x6c   :  { %990 = vmatpush.bf16.msrb.mxu0 %v3104_v18  ;;  %3705 = vst [vmem:[#allocation73_spill] sm:$0xff] %v3147_v40  ;;  %v2044_v63 = vld [vmem:[%s3547_s2 + $0x36c] sm:$0xf]  ;;  %v1865_v42 = vld [vmem:[%s3547_s2 + $0x378] sm:$0xf0] }
  0x6d   :  { %1003 = vmatpush.bf16.msrb.mxu1 %v3109_v31  ;;  %3704 = vst [vmem:[#allocation72_spill] sm:$0xff] %v3145_v22  ;;  %v1944_v31 = vld [vmem:[%s3547_s2 + $0x4c] sm:$0xf]  ;;  %v1465_v18 = vld [vmem:[%s3547_s2 + $0x58] sm:$0xf0]  ;;  %v3195_v24 = vor.u32 %v2044_v63, %v1865_v42 }
  0x6e   :  { %1016 = vmatpush.bf16.msrb.mxu2 %v3111_v37  ;;  %3706 = vst [vmem:[#allocation74_spill] sm:$0xff] %v3159_v39  ;;  %v3183_v37 = vor.u32 %v2012_v1, %v1737_v41  ;;  %v1976_v32 = vld [vmem:[%s3547_s2 + $0x14c] sm:$0xf]  ;;  %v1721_v1 = vld [vmem:[%s3547_s2 + $0x258] sm:$0xf0]  ;;  %v3213_v42 = vor.u32 %v1944_v31, %v1465_v18 }
  0x6f   :  { %1029 = vmatpush.bf16.msrb.mxu3 %v3123_v15  ;;  %3707 = vst [vmem:[#allocation75_spill] sm:$0xff] %v3177_v20  ;;  %v3181_v15 = vor.u32 %v1980_v48, %v1609_v10  ;;  %v1593_v48 = vld [vmem:[%s3547_s2 + $0x158] sm:$0xf0]  ;;  %v2008_v10 = vld [vmem:[%s3547_s2 + $0x24c] sm:$0xf] }
  0x70   :  { %991 = vmatpush.bf16.msrb.mxu0 %v3141_v0  ;;  %3709 = vst [vmem:[#allocation77_spill] sm:$0xff] %v3183_v37  ;;  %v2040_v41 = vld [vmem:[%s3547_s2 + $0x34c] sm:$0xf]  ;;  %v1849_v63 = vld [vmem:[%s3547_s2 + $0x358] sm:$0xf0] }
  0x71   :  { %1004 = vmatpush.bf16.msrb.mxu1 %v3145_v22  ;;  %3708 = vst [vmem:[#allocation76_spill] sm:$0xff] %v3181_v15  ;;  %v1940_v22 = vld [vmem:[%s3547_s2 + $0x2c] sm:$0xf]  ;;  %v1449_v0 = vld [vmem:[%s3547_s2 + $0x38] sm:$0xf0]  ;;  %v3231_v18 = vor.u32 %v2040_v41, %v1849_v63 }
  0x72   :  { %1017 = vmatpush.bf16.msrb.mxu2 %v3147_v40  ;;  %3710 = vst [vmem:[#allocation78_spill] sm:$0xff] %v3195_v24  ;;  %v3219_v40 = vor.u32 %v2008_v10, %v1721_v1  ;;  %v1972_v31 = vld [vmem:[%s3547_s2 + $0x12c] sm:$0xf]  ;;  %v1705_v10 = vld [vmem:[%s3547_s2 + $0x238] sm:$0xf0]  ;;  %v3249_v63 = vor.u32 %v1940_v22, %v1449_v0 }
  0x73   :  { %1030 = vmatpush.bf16.msrb.mxu3 %v3159_v39  ;;  %v3217_v39 = vor.u32 %v1976_v32, %v1593_v48  ;;  %3713 = vst [vmem:[#allocation81_spill] sm:$0xff] %v3231_v18  ;;  %v1577_v32 = vld [vmem:[%s3547_s2 + $0x138] sm:$0xf0]  ;;  %v2004_v48 = vld [vmem:[%s3547_s2 + $0x22c] sm:$0xf] }
  0x74   :  { %992 = vmatpush.bf16.msrb.mxu0 %v3177_v20  ;;  %3712 = vst [vmem:[#allocation80_spill] sm:$0xff] %v3219_v40  ;;  %v2036_v1 = vld [vmem:[%s3547_s2 + $0x32c] sm:$0xf]  ;;  %v1833_v41 = vld [vmem:[%s3547_s2 + $0x338] sm:$0xf0] }
  0x75   :  { %1005 = vmatpush.bf16.msrb.mxu1 %v3181_v15  ;;  %3711 = vst [vmem:[#allocation79_spill] sm:$0xff] %v3217_v39  ;;  %v1936_v15 = vld [vmem:[%s3547_s2 + $0xc] sm:$0xf]  ;;  %v1433_v20 = vld [vmem:[%s3547_s2 + $0x18] sm:$0xf0]  ;;  %v3267_v0 = vor.u32 %v2036_v1, %v1833_v41 }
  0x76   :  { %1018 = vmatpush.bf16.msrb.mxu2 %v3183_v37  ;;  %v3255_v37 = vor.u32 %v2004_v48, %v1705_v10  ;;  %v1968_v22 = vld [vmem:[%s3547_s2 + $0x10c] sm:$0xf]  ;;  %v1689_v48 = vld [vmem:[%s3547_s2 + $0x218] sm:$0xf0]  ;;  %v3285_v41 = vor.u32 %v1936_v15, %v1433_v20 }
  0x77   :  { %1031 = vmatpush.bf16.msrb.mxu3 %v3195_v24  ;;  %v3253_v24 = vor.u32 %v1972_v31, %v1577_v32  ;;  %v1561_v31 = vld [vmem:[%s3547_s2 + $0x118] sm:$0xf0]  ;;  %v2000_v32 = vld [vmem:[%s3547_s2 + $0x20c] sm:$0xf] }
  0x78   :  { %993 = vmatpush.bf16.msrb.mxu0 %v3213_v42  ;;  %v2032_v10 = vld [vmem:[%s3547_s2 + $0x30c] sm:$0xf]  ;;  %v1817_v1 = vld [vmem:[%s3547_s2 + $0x318] sm:$0xf0] }
  0x79   :  { %1006 = vmatpush.bf16.msrb.mxu1 %v3217_v39  ;;  %v3294_v39 = vor.u32 %v2032_v10, %v1817_v1  ;;  %v3740_v1 = vld [vmem:[#allocation29_spill] sm:$0xff] }
  0x7a   :  { %1019 = vmatpush.bf16.msrb.mxu2 %v3219_v40  ;;  %v3291_v40 = vor.u32 %v2000_v32, %v1689_v48 }
  0x7b   :  { %1032 = vmatpush.bf16.msrb.mxu3 %v3231_v18  ;;  %v3289_v18 = vor.u32 %v1968_v22, %v1561_v31  ;;  %v3738_v22 = vld [vmem:[#allocation28_spill] sm:$0xff]  ;;  %v3739_v31 = vld [vmem:[#allocation2_spill] sm:$0xff] }
  0x7c   :  { %994 = vmatpush.bf16.msrb.mxu0 %v3249_v63 }
  0x7d   :  { %1007 = vmatpush.bf16.msrb.mxu1 %v3253_v24 }
  0x7e   :  { %1020 = vmatpush.bf16.msrb.mxu2 %v3255_v37 }
  0x7f   :  { %1033 = vmatpush.bf16.msrb.mxu3 %v3267_v0 }
  0x80   :  { %995 = vmatpush.bf16.msrb.mxu0 %v3285_v41 }
  0x81   :  { %1008 = vmatpush.bf16.msrb.mxu1 %v3289_v18 }
  0x82   :  { %1021 = vmatpush.bf16.msrb.mxu2 %v3291_v40 }
  0x83   :  { %1034 = vmatpush.bf16.msrb.mxu3 %v3294_v39  ;;  %996 = vmatmul.bf16.vlgmr.msrb.gmra.mxu0 %v2507_v49  ;;  %v3736_v49 = vld [vmem:[#allocation5_spill] sm:$0xff] }
  0x84   :  { %1048 = vmatpush.bf16.msra.mxu0 %v2109_v3  ;;  %1009 = vmatmul.bf16.vlgmr.msrb.gmra.mxu1 %v2515_v54  ;;  %v26_v3 = vld [vmem:[%s3549_s1 + $0x10] sm:$0xff]  ;;  %v3737_v54 = vld [vmem:[#allocation7_spill] sm:$0xff] }
  0x85   :  { %1061 = vmatpush.bf16.msra.mxu1 %v2120_v7  ;;  %1022 = vmatmul.bf16.vlgmr.msrb.gmra.mxu2 %v2463_v26  ;;  %v24_v7 = vld [vmem:[%s3549_s1] sm:$0xff]  ;;  %v3735_v26 = vld [vmem:[#allocation27_spill] sm:$0xff]  ;;  %v30_v32 = vsub.f32 %v3739_v31, %v26_v3  ;;  %v3760_v31 = vld [vmem:[#allocation48_spill] sm:$0xff] }
  0x86   :  { %1074 = vmatpush.bf16.msra.mxu2 %v2122_v8  ;;  %1035 = vmatmul.bf16.vlgmr.msrb.gmra.mxu3 %v2511_v53  ;;  %v3341_v8 = vld [vmem:[%s3549_s1 + $0x18] sm:$0xff]  ;;  %v28_v53 = vsub.f32 %v3736_v49, %v24_v7 }
  0x87   :  { %1087 = vmatpush.bf16.msra.mxu3 %v2134_v12  ;;  %v25_v12 = vld [vmem:[%s3549_s1 + $0x8] sm:$0xff] }
  0x88   :  { %1049 = vmatpush.bf16.msra.mxu0 %v2147_v16  ;;  %v3347_v16 = vpack.c.bf16 %v26_v3, %v26_v3  ;;  %v29_v15 = vsub.f32 %v3737_v54, %v25_v12  ;;  %v32_v48 = vmul.f32 %v28_v53, %v28_v53  ;;  %v3759_v54 = vld [vmem:[#allocation47_spill] sm:$0xff] }
  0x89   :  { %1062 = vmatpush.bf16.msra.mxu1 %v2149_v17  ;;  %v3351_v17 = vpack.c.bf16 %v24_v7, %v24_v7  ;;  %v3744_v7 = vld [vmem:[#allocation6_spill] sm:$0xff] }
  0x8a   :  { %1075 = vmatpush.bf16.msra.mxu2 %v2161_v21  ;;  %v3355_v21 = vpack.c.bf16 %v3341_v8, %v3341_v8  ;;  %v33_v10 = vmul.f32 %v29_v15, %v29_v15 }
  0x8b   :  { %1088 = vmatpush.bf16.msra.mxu3 %v2172_v25  ;;  %v3359_v25 = vpack.c.bf16 %v25_v12, %v25_v12  ;;  %v34_v12 = vmul.f32 %v30_v32, %v30_v32 }
  0x8c   :  { %1050 = vmatpush.bf16.msra.mxu0 %v2184_v29  ;;  %v3714_v29 = vld [vmem:[#allocation3_spill] sm:$0xff] }
  0x8d   :  { %1063 = vmatpush.bf16.msra.mxu1 %v2197_v33  ;;  %v3715_v33 = vld [vmem:[#allocation4_spill] sm:$0xff] }
  0x8e   :  { %1076 = vmatpush.bf16.msra.mxu2 %v2199_v34  ;;  %v3716_v34 = vld [vmem:[#allocation8_spill] sm:$0xff] }
  0x8f   :  { %1089 = vmatpush.bf16.msra.mxu3 %v2211_v38  ;;  %v3717_v38 = vld [vmem:[#allocation9_spill] sm:$0xff] }
  0x90   :  { %1051 = vmatpush.bf16.msra.mxu0 %v2229_v44  ;;  %v3718_v44 = vld [vmem:[#allocation10_spill] sm:$0xff] }
  0x91   :  { %1064 = vmatpush.bf16.msra.mxu1 %v2233_v45  ;;  %v3719_v45 = vld [vmem:[#allocation11_spill] sm:$0xff] }
  0x92   :  { %1077 = vmatpush.bf16.msra.mxu2 %v2235_v46 }
  0x93   :  { %1090 = vmatpush.bf16.msra.mxu3 %v2247_v50  ;;  %v3720_v50 = vld [vmem:[#allocation12_spill] sm:$0xff] }
  0x94   :  { %1052 = vmatpush.bf16.msra.mxu0 %v2265_v56 }
  0x95   :  { %1065 = vmatpush.bf16.msra.mxu1 %v2269_v57  ;;  %v3721_v57 = vld [vmem:[#allocation13_spill] sm:$0xff] }
  0x96   :  { %1078 = vmatpush.bf16.msra.mxu2 %v2271_v58  ;;  %v3722_v58 = vld [vmem:[#allocation14_spill] sm:$0xff] }
  0x97   :  { %1091 = vmatpush.bf16.msra.mxu3 %v2283_v62 }
  0x98   :  { %1053 = vmatpush.bf16.msra.mxu0 %v2301_v5  ;;  %v3723_v5 = vld [vmem:[#allocation15_spill] sm:$0xff] }
  0x99   :  { %1066 = vmatpush.bf16.msra.mxu1 %v2305_v6  ;;  %v3724_v6 = vld [vmem:[#allocation16_spill] sm:$0xff] }
  0x9a   :  { %1079 = vmatpush.bf16.msra.mxu2 %v2307_v9  ;;  %v3725_v9 = vld [vmem:[#allocation17_spill] sm:$0xff] }
  0x9b   :  { %1092 = vmatpush.bf16.msra.mxu3 %v2319_v14  ;;  %v3726_v14 = vld [vmem:[#allocation18_spill] sm:$0xff] }
  0x9c   :  { %1054 = vmatpush.bf16.msra.mxu0 %v2337_v23  ;;  %v3727_v23 = vld [vmem:[#allocation19_spill] sm:$0xff] }
  0x9d   :  { %1067 = vmatpush.bf16.msra.mxu1 %v2347_v27 }
  0x9e   :  { %1080 = vmatpush.bf16.msra.mxu2 %v2349_v28 }
  0x9f   :  { %1093 = vmatpush.bf16.msra.mxu3 %v2361_v35  ;;  %v3728_v35 = vld [vmem:[#allocation20_spill] sm:$0xff] }
  0xa0   :  { %1055 = vmatpush.bf16.msra.mxu0 %v2382_v43 }
  0xa1   :  { %1068 = vmatpush.bf16.msra.mxu1 %v2395_v51  ;;  %v3729_v51 = vld [vmem:[#allocation21_spill] sm:$0xff] }
  0xa2   :  { %1081 = vmatpush.bf16.msra.mxu2 %v2397_v52  ;;  %v3730_v52 = vld [vmem:[#allocation22_spill] sm:$0xff] }
  0xa3   :  { %1094 = vmatpush.bf16.msra.mxu3 %v2406_v55  ;;  %1056 = vmatmul.bf16.vlgmr.msra.gmra.mxu0 %v3351_v17  ;;  %v841_v46 = vpop.f32.mrf.mxu0 }
  0xa4   :  { %1100 = vmatpush.bf16.msrb.mxu0 %v2408_v59  ;;  %1069 = vmatmul.bf16.vlgmr.msra.gmra.mxu1 %v3359_v25  ;;  %v854_v56 = vpop.f32.mrf.mxu1  ;;  %v3731_v59 = vld [vmem:[#allocation23_spill] sm:$0xff] }
  0xa5   :  { %1113 = vmatpush.bf16.msrb.mxu1 %v2410_v60  ;;  %1082 = vmatmul.bf16.vlgmr.msra.gmra.mxu2 %v3347_v16  ;;  %v3732_v60 = vld [vmem:[#allocation24_spill] sm:$0xff] }
  0xa6   :  { %1126 = vmatpush.bf16.msrb.mxu2 %v2412_v61  ;;  %1095 = vmatmul.bf16.vlgmr.msra.gmra.mxu3 %v3355_v21  ;;  %v3733_v61 = vld [vmem:[#allocation25_spill] sm:$0xff] }
  0xa7   :  { %1139 = vmatpush.bf16.msrb.mxu3 %v2424_v2  ;;  %v3734_v2 = vld [vmem:[#allocation26_spill] sm:$0xff] }
  0xa8   :  { %1101 = vmatpush.bf16.msrb.mxu0 %v2450_v19  ;;  %v867_v62 = vpop.f32.mrf.mxu2  ;;  %v3394_v19 = vld [vmem:[%s3550_s3] sm:$0xf] }
  0xa9   :  { %1114 = vmatpush.bf16.msrb.mxu1 %v2467_v30  ;;  %v184_v20 = vperm.slane %v3394_v19, 0 }
  0xaa   :  { %1127 = vmatpush.bf16.msrb.mxu2 %v3714_v29  ;;  %v3741_v29 = vld [vmem:[#allocation30_spill] sm:$0xff] }
  0xab   :  { %1140 = vmatpush.bf16.msrb.mxu3 %v3715_v33  ;;  %v880_v27 = vpop.f32.mrf.mxu3  ;;  %v843_v28 = vpop.f32.mrf.mxu0  ;;  %v3742_v33 = vld [vmem:[#allocation31_spill] sm:$0xff]  ;;  %v842_v3 = vadd.f32 %v841_v46, %v184_v20  ;;  %v185_v46 = vperm.slane %v3394_v19, 1 }
  0xac   :  { %1102 = vmatpush.bf16.msrb.mxu0 %v3716_v34  ;;  %v856_v43 = vpop.f32.mrf.mxu1  ;;  %v3743_v34 = vld [vmem:[#allocation32_spill] sm:$0xff]  ;;  %v3751_v28 = vld [vmem:[#allocation39_spill] sm:$0xff] }
  0xad   :  { %1115 = vmatpush.bf16.msrb.mxu1 %v3717_v38  ;;  %v31_v38 = vsub.f32 %v3744_v7, %v3341_v8  ;;  %v3748_v8 = vld [vmem:[#allocation36_spill] sm:$0xff] }
  0xae   :  { %1128 = vmatpush.bf16.msrb.mxu2 %v3718_v44  ;;  %v36_v44 = vadd.f32 %v33_v10, %v32_v48  ;;  %v3762_v10 = vld [vmem:[#allocation50_spill] sm:$0xff] }
  0xaf   :  { %1141 = vmatpush.bf16.msrb.mxu3 %v3719_v45  ;;  %v3745_v45 = vld [vmem:[#allocation33_spill] sm:$0xff] }
  0xb0   :  { %1103 = vmatpush.bf16.msrb.mxu0 %v3720_v50  ;;  %v869_v55 = vpop.f32.mrf.mxu2  ;;  %v3746_v50 = vld [vmem:[#allocation34_spill] sm:$0xff] }
  0xb1   :  { %1116 = vmatpush.bf16.msrb.mxu1 %v3721_v57  ;;  %v3747_v57 = vld [vmem:[#allocation35_spill] sm:$0xff] }
  0xb2   :  { %1129 = vmatpush.bf16.msrb.mxu2 %v3722_v58  ;;  %v35_v58 = vmul.f32 %v31_v38, %v31_v38  ;;  %v3765_v38 = vld [vmem:[#allocation53_spill] sm:$0xff] }
  0xb3   :  { %1142 = vmatpush.bf16.msrb.mxu3 %v3723_v5  ;;  %v882_v30 = vpop.f32.mrf.mxu3  ;;  %v37_v5 = vadd.f32 %v36_v44, %v34_v12  ;;  %v3766_v12 = vld [vmem:[#allocation54_spill] sm:$0xff] }
  0xb4   :  { %1104 = vmatpush.bf16.msrb.mxu0 %v3724_v6  ;;  %v3758_v30 = vld [vmem:[#allocation46_spill] sm:$0xff] }
  0xb5   :  { %1117 = vmatpush.bf16.msrb.mxu1 %v3725_v9  ;;  %v38_v6 = vadd.f32 %v37_v5, %v35_v58  ;;  %v3749_v9 = vld [vmem:[#allocation37_spill] sm:$0xff]  ;;  %v3770_v58 = vld [vmem:[#allocation58_spill] sm:$0xff]  ;;  %v3771_v5 = vld [vmem:[#allocation59_spill] sm:$0xff] }
  0xb6   :  { %1130 = vmatpush.bf16.msrb.mxu2 %v3726_v14  ;;  %v3750_v14 = vld [vmem:[#allocation38_spill] sm:$0xff] }
  0xb7   :  { %1143 = vmatpush.bf16.msrb.mxu3 %v3727_v23  ;;  %v855_v23 = vadd.f32 %v854_v56, %v842_v3  ;;  %39 = vadd.xlane.f32.xlu0 %v38_v6  ;;  %v3757_v56 = vld [vmem:[#allocation45_spill] sm:$0xff]  ;;  %v3768_v3 = vld [vmem:[#allocation56_spill] sm:$0xff] }
  0xb8   :  { %1105 = vmatpush.bf16.msrb.mxu0 %v3728_v35  ;;  %v3752_v35 = vld [vmem:[#allocation40_spill] sm:$0xff]  ;;  %v3773_v6 = vld [vmem:[#allocation61_spill] sm:$0xff] }
  0xb9   :  { %1118 = vmatpush.bf16.msrb.mxu1 %v3729_v51  ;;  %v3753_v51 = vld [vmem:[#allocation41_spill] sm:$0xff] }
  0xba   :  { %1131 = vmatpush.bf16.msrb.mxu2 %v3730_v52  ;;  %v3754_v52 = vld [vmem:[#allocation42_spill] sm:$0xff] }
  0xbb   :  { %1144 = vmatpush.bf16.msrb.mxu3 %v3731_v59 }
  0xbc   :  { %1106 = vmatpush.bf16.msrb.mxu0 %v3732_v60  ;;  %v868_v60 = vadd.f32 %v867_v62, %v855_v23  ;;  %v3761_v62 = vld [vmem:[#allocation49_spill] sm:$0xff]  ;;  %v3780_v23 = vld [vmem:[#allocation68_spill] sm:$0xff] }
  0xbd   :  { %1119 = vmatpush.bf16.msrb.mxu1 %v3733_v61  ;;  %v3755_v61 = vld [vmem:[#allocation43_spill] sm:$0xff] }
  0xbe   :  { %1132 = vmatpush.bf16.msrb.mxu2 %v3734_v2  ;;  %v881_v53 = vadd.f32 %v880_v27, %v868_v60  ;;  %v3764_v27 = vld [vmem:[#allocation52_spill] sm:$0xff]  ;;  %v3786_v60 = vld [vmem:[#allocation74_spill] sm:$0xff] }
  0xbf   :  { %1145 = vmatpush.bf16.msrb.mxu3 %v3735_v26  ;;  %v3756_v26 = vld [vmem:[#allocation44_spill] sm:$0xff] }
  0xc0   :  { %1107 = vmatpush.bf16.msrb.mxu0 %v3738_v22  ;;  %v893_v43 = vpop.f32.mrf.mxu0 }
  0xc1   :  { %1120 = vmatpush.bf16.msrb.mxu1 %v3740_v1  ;;  %v894_v55 = vadd.f32 %v893_v43, %v185_v46  ;;  %v906_v59 = vpop.f32.mrf.mxu1  ;;  %v3782_v43 = vld [vmem:[#allocation70_spill] sm:$0xff] }
  0xc2   :  { %1133 = vmatpush.bf16.msrb.mxu2 %v3741_v29  ;;  %v1040_v29 = vmax.f32 %v881_v53, 0.0  ;;  %v3790_v53 = vld [vmem:[#allocation78_spill] sm:$0xff] }
  0xc3   :  { %1146 = vmatpush.bf16.msrb.mxu3 %v3742_v33  ;;  %1108 = vmatmul.bf16.vlgmr.msrb.gmra.mxu0 %v3351_v17  ;;  %v907_v2 = vadd.f32 %v906_v59, %v894_v55  ;;  %v3763_v33 = vld [vmem:[#allocation51_spill] sm:$0xff]  ;;  %v3785_v55 = vld [vmem:[#allocation73_spill] sm:$0xff] }
  0xc4   :  { %1152 = vmatpush.bf16.msra.mxu0 %v3743_v34  ;;  %1121 = vmatmul.bf16.vlgmr.msrb.gmra.mxu1 %v3359_v25 }
  0xc5   :  { %1165 = vmatpush.bf16.msra.mxu1 %v3745_v45  ;;  %1134 = vmatmul.bf16.vlgmr.msrb.gmra.mxu2 %v3347_v16  ;;  %v3767_v45 = vld [vmem:[#allocation55_spill] sm:$0xff] }
  0xc6   :  { %1178 = vmatpush.bf16.msra.mxu2 %v3746_v50  ;;  %1147 = vmatmul.bf16.vlgmr.msrb.gmra.mxu3 %v3355_v21 }
  0xc7   :  { %1191 = vmatpush.bf16.msra.mxu3 %v3747_v57  ;;  %v3769_v57 = vld [vmem:[#allocation57_spill] sm:$0xff] }
  0xc8   :  { %1153 = vmatpush.bf16.msra.mxu0 %v3748_v8  ;;  %v919_v49 = vpop.f32.mrf.mxu2  ;;  %v895_v48 = vpop.f32.mrf.mxu0  ;;  %v3772_v8 = vld [vmem:[#allocation60_spill] sm:$0xff] }
  0xc9   :  { %1166 = vmatpush.bf16.msra.mxu1 %v3749_v9  ;;  %v920_v15 = vadd.f32 %v919_v49, %v907_v2  ;;  %v932_v22 = vpop.f32.mrf.mxu3  ;;  %v908_v1 = vpop.f32.mrf.mxu1  ;;  %v3774_v9 = vld [vmem:[#allocation62_spill] sm:$0xff]  ;;  %v3787_v2 = vld [vmem:[#allocation75_spill] sm:$0xff]  ;;  %v186_v48 = vperm.slane %v3394_v19, 2 }
  0xca   :  { %1179 = vmatpush.bf16.msra.mxu2 %v3750_v14 }
  0xcb   :  { %1192 = vmatpush.bf16.msra.mxu3 %v3751_v28  ;;  %v933_v32 = vadd.f32 %v932_v22, %v920_v15  ;;  %v3781_v28 = vld [vmem:[#allocation69_spill] sm:$0xff]  ;;  %v3792_v15 = vld [vmem:[#allocation80_spill] sm:$0xff] }
  0xcc   :  { %1154 = vmatpush.bf16.msra.mxu0 %v3752_v35 }
  0xcd   :  { %1167 = vmatpush.bf16.msra.mxu1 %v3753_v51  ;;  %v1041_v34 = vmax.f32 %v933_v32, 0.0  ;;  %v3783_v51 = vld [vmem:[#allocation71_spill] sm:$0xff] }
  0xce   :  { %1180 = vmatpush.bf16.msra.mxu2 %v3754_v52  ;;  %v3784_v52 = vld [vmem:[#allocation72_spill] sm:$0xff] }
  0xcf   :  { %1193 = vmatpush.bf16.msra.mxu3 %v3755_v61  ;;  %v3436_v7 = vpack.c.bf16 %v1041_v34, %v1040_v29 }
  0xd0   :  { %1155 = vmatpush.bf16.msra.mxu0 %v3756_v26  ;;  %v921_v44 = vpop.f32.mrf.mxu2 }
  0xd1   :  { %1168 = vmatpush.bf16.msra.mxu1 %v3757_v56  ;;  %1264 = vst [vmem:[%s3551_s4] sm:$0xff] %v3436_v7  ;;  %v934_v50 = vpop.f32.mrf.mxu3  ;;  %v3788_v56 = vld [vmem:[#allocation76_spill] sm:$0xff] }
  0xd2   :  { %1181 = vmatpush.bf16.msra.mxu2 %v3758_v30  ;;  %v3789_v30 = vld [vmem:[#allocation77_spill] sm:$0xff] }
  0xd3   :  { %1194 = vmatpush.bf16.msra.mxu3 %v3759_v54  ;;  %v3791_v54 = vld [vmem:[#allocation79_spill] sm:$0xff] }
  0xd4   :  { %1156 = vmatpush.bf16.msra.mxu0 %v3760_v31  ;;  %v3793_v31 = vld [vmem:[#allocation81_spill] sm:$0xff] }
  0xd5   :  { %1169 = vmatpush.bf16.msra.mxu1 %v3761_v62 }
  0xd6   :  { %1182 = vmatpush.bf16.msra.mxu2 %v3762_v10 }
  0xd7   :  { %1195 = vmatpush.bf16.msra.mxu3 %v3763_v33 }
  0xd8   :  { %1157 = vmatpush.bf16.msra.mxu0 %v3764_v27 }
  0xd9   :  { %1170 = vmatpush.bf16.msra.mxu1 %v3765_v38 }
  0xda   :  { %1183 = vmatpush.bf16.msra.mxu2 %v3766_v12 }
  0xdb   :  { %1196 = vmatpush.bf16.msra.mxu3 %v3767_v45 }
  0xdc   :  { %1158 = vmatpush.bf16.msra.mxu0 %v3768_v3 }
  0xdd   :  { %1171 = vmatpush.bf16.msra.mxu1 %v3769_v57 }
  0xde   :  { %1184 = vmatpush.bf16.msra.mxu2 %v2969_v47  ;;  %v3777_v47 = vld [vmem:[#allocation65_spill] sm:$0xff] }
  0xdf   :  { %1197 = vmatpush.bf16.msra.mxu3 %v2981_v11  ;;  %v3775_v11 = vld [vmem:[#allocation63_spill] sm:$0xff] }
  0xe0   :  { %1159 = vmatpush.bf16.msra.mxu0 %v3002_v4  ;;  %v3778_v4 = vld [vmem:[#allocation66_spill] sm:$0xff]  ;;  %v945_v14 = vpop.f32.mrf.mxu0 }
  0xe1   :  { %1172 = vmatpush.bf16.msra.mxu1 %v3015_v13  ;;  %v3776_v13 = vld [vmem:[#allocation64_spill] sm:$0xff]  ;;  %v958_v35 = vpop.f32.mrf.mxu1 }
  0xe2   :  { %1185 = vmatpush.bf16.msra.mxu2 %v3017_v36  ;;  %v3779_v36 = vld [vmem:[#allocation67_spill] sm:$0xff] }
  0xe3   :  { %1198 = vmatpush.bf16.msra.mxu3 %v3770_v58  ;;  %1160 = vmatmul.bf16.vlgmr.msra.gmra.mxu0 %v3351_v17 }
  0xe4   :  { %1204 = vmatpush.bf16.msrb.mxu0 %v3771_v5  ;;  %1173 = vmatmul.bf16.vlgmr.msra.gmra.mxu1 %v3359_v25 }
  0xe5   :  { %1217 = vmatpush.bf16.msrb.mxu1 %v3772_v8  ;;  %1186 = vmatmul.bf16.vlgmr.msra.gmra.mxu2 %v3347_v16 }
  0xe6   :  { %1230 = vmatpush.bf16.msrb.mxu2 %v3773_v6  ;;  %1199 = vmatmul.bf16.vlgmr.msra.gmra.mxu3 %v3355_v21 }
  0xe7   :  { %1243 = vmatpush.bf16.msrb.mxu3 %v3774_v9 }
  0xe8   :  { %1205 = vmatpush.bf16.msrb.mxu0 %v3775_v11  ;;  %v971_v59 = vpop.f32.mrf.mxu2  ;;  %v947_v26 = vpop.f32.mrf.mxu0 }
  0xe9   :  { %1218 = vmatpush.bf16.msrb.mxu1 %v3776_v13  ;;  %v984_v61 = vpop.f32.mrf.mxu3  ;;  %v960_v49 = vpop.f32.mrf.mxu1 }
  0xea   :  { %1231 = vmatpush.bf16.msrb.mxu2 %v3777_v47  ;;  %v1269_v47 = vunpack.c.l.bf16 %v3436_v7 }
  0xeb   :  { %1244 = vmatpush.bf16.msrb.mxu3 %v3778_v4  ;;  %v1270_v4 = vunpack.c.h.bf16 %v3436_v7 }
  0xec   :  { %1206 = vmatpush.bf16.msrb.mxu0 %v3779_v36 }
  0xed   :  { %1219 = vmatpush.bf16.msrb.mxu1 %v3780_v23 }
  0xee   :  { %1232 = vmatpush.bf16.msrb.mxu2 %v3781_v28 }
  0xef   :  { %1245 = vmatpush.bf16.msrb.mxu3 %v3782_v43 }
  0xf0   :  { %1207 = vmatpush.bf16.msrb.mxu0 %v3783_v51  ;;  %v973_v22 = vpop.f32.mrf.mxu2  ;;  %v1325_v51 = vmul.f32 %v1269_v47, %v1269_v47 }
  0xf1   :  { %1220 = vmatpush.bf16.msrb.mxu1 %v3784_v52  ;;  %v986_v32 = vpop.f32.mrf.mxu3  ;;  %v1326_v52 = vmul.f32 %v1270_v4, %v1270_v4 }
  0xf2   :  { %1233 = vmatpush.bf16.msrb.mxu2 %v3785_v55  ;;  %v1329_v7 = vrot.slane %v1325_v51, 4 }
  0xf3   :  { %1246 = vmatpush.bf16.msrb.mxu3 %v3786_v60  ;;  %v1283_v60 = vrot.slane %v1270_v4, 4 }
  0xf4   :  { %1208 = vmatpush.bf16.msrb.mxu0 %v3787_v2  ;;  %v1330_v32 = vadd.f32 %v1329_v7, %v1325_v51 }
  0xf5   :  { %1221 = vmatpush.bf16.msrb.mxu1 %v3788_v56 }
  0xf6   :  { %1234 = vmatpush.bf16.msrb.mxu2 %v3789_v30  ;;  %v1335_v30 = vrot.slane %v1326_v52, 4 }
  0xf7   :  { %1247 = vmatpush.bf16.msrb.mxu3 %v3790_v53 }
  0xf8   :  { %1209 = vmatpush.bf16.msrb.mxu0 %v3213_v42  ;;  %v946_v42 = vadd.f32 %v945_v14, %v186_v48 }
  0xf9   :  { %1222 = vmatpush.bf16.msrb.mxu1 %v3791_v54 }
  0xfa   :  { %1235 = vmatpush.bf16.msrb.mxu2 %v3792_v15 }
  0xfb   :  { %1248 = vmatpush.bf16.msrb.mxu3 %v3793_v31 }
  0xfc   :  { %1210 = vmatpush.bf16.msrb.mxu0 %v3249_v63 }
  0xfd   :  { %1223 = vmatpush.bf16.msrb.mxu1 %v3253_v24  ;;  %v959_v24 = vadd.f32 %v958_v35, %v946_v42  ;;  %v1336_v42 = vadd.f32 %v1335_v30, %v1326_v52 }
  0xfe   :  { %1236 = vmatpush.bf16.msrb.mxu2 %v3255_v37  ;;  %v187_v37 = vperm.slane %v3394_v19, 3 }
  0xff   :  { %1249 = vmatpush.bf16.msrb.mxu3 %v3267_v0 }
 0x100   :  { %1211 = vmatpush.bf16.msrb.mxu0 %v3285_v41  ;;  %v997_v63 = vpop.f32.mrf.mxu0 }
 0x101   :  { %1224 = vmatpush.bf16.msrb.mxu1 %v3289_v18  ;;  %v1010_v18 = vpop.f32.mrf.mxu1 }
 0x102   :  { %1237 = vmatpush.bf16.msrb.mxu2 %v3291_v40  ;;  %v998_v40 = vadd.f32 %v997_v63, %v187_v37 }
 0x103   :  { %1250 = vmatpush.bf16.msrb.mxu3 %v3294_v39  ;;  %1212 = vmatmul.bf16.vlgmr.msrb.gmra.mxu0 %v3351_v17  ;;  %v972_v39 = vadd.f32 %v971_v59, %v959_v24  ;;  %v1277_v59 = vrot.slane %v1269_v47, 4 }
 0x104   :  { %1225 = vmatmul.bf16.vlgmr.msrb.gmra.mxu1 %v3359_v25  ;;  %v1011_v0 = vadd.f32 %v1010_v18, %v998_v40 }
 0x105   :  { %1238 = vmatmul.bf16.vlgmr.msrb.gmra.mxu2 %v3347_v16  ;;  %v985_v17 = vadd.f32 %v984_v61, %v972_v39  ;;  %v1278_v54 = vadd.f32 %v1277_v59, %v1269_v47 }
 0x106   :  { %1251 = vmatmul.bf16.vlgmr.msrb.gmra.mxu3 %v3355_v21 }
 0x107   :  { %v1042_v16 = vmax.f32 %v985_v17, 0.0  ;;  %v1279_v63 = vrot.slane %v1278_v54, 2  ;;  %v1331_v17 = vrot.slane %v1330_v32, 2 }
 0x108   :  { %v1023_v41 = vpop.f32.mrf.mxu2  ;;  %v999_v25 = vpop.f32.mrf.mxu0 }
 0x109   :  { %v1024_v62 = vadd.f32 %v1023_v41, %v1011_v0  ;;  %v1036_v10 = vpop.f32.mrf.mxu3  ;;  %v1012_v29 = vpop.f32.mrf.mxu1 }
 0x10b   :  { %v1037_v1 = vadd.f32 %v1036_v10, %v1024_v62  ;;  %v1337_v62 = vrot.slane %v1336_v42, 2 }
 0x10d   :  { %v1043_v33 = vmax.f32 %v1037_v1, 0.0 }
 0x10f   :  { %v3500_v21 = vpack.c.bf16 %v1043_v33, %v1042_v16  ;;  %v1280_v16 = vadd.f32 %v1279_v63, %v1278_v54 }
 0x110   :  { %v1025_v34 = vpop.f32.mrf.mxu2 }
 0x111   :  { %1265 = vst [vmem:[%s3551_s4 + $0x8] sm:$0xff] %v3500_v21  ;;  %v1038_v27 = vpop.f32.mrf.mxu3 }
 0x120   :  { %v1057_v38 = vpop.f32.mrf.mxu0 }
 0x121   :  { %v1070_v12 = vpop.f32.mrf.mxu1  ;;  %v1058_v8 = vadd.f32 %v1057_v38, %v184_v20 }
 0x123   :  { %v1071_v11 = vadd.f32 %v1070_v12, %v1058_v8 }
 0x128   :  { %v1083_v44 = vpop.f32.mrf.mxu2  ;;  %v1059_v50 = vpop.f32.mrf.mxu0 }
 0x129   :  { %v1096_v45 = vpop.f32.mrf.mxu3  ;;  %v1072_v3 = vpop.f32.mrf.mxu1  ;;  %v1084_v35 = vadd.f32 %v1083_v44, %v1071_v11  ;;  %v1332_v44 = vadd.f32 %v1331_v17, %v1330_v32  ;;  %v1271_v17 = vunpack.c.l.bf16 %v3500_v21 }
 0x12a   :  { %v40_v5 = vpop.xlane.xlu0 %39 }
 0x12b   :  { %v41_v6 = vrot.slane %v40_v5, 4  ;;  %v1097_v2 = vadd.f32 %v1096_v45, %v1084_v35  ;;  %v1338_v45 = vadd.f32 %v1337_v62, %v1336_v42  ;;  %v1333_v47 = vrot.slane %v1332_v44, 1 }
 0x12c   :  { %v1272_v62 = vunpack.c.h.bf16 %v3500_v21 }
 0x12d   :  { %v42_v9 = vadd.f32 %v41_v6, %v40_v5  ;;  %v1256_v22 = vmax.f32 %v1097_v2, 0.0  ;;  %v1281_v5 = vrot.slane %v1280_v16, 1  ;;  %v1334_v59 = vadd.f32 %v1333_v47, %v1332_v44 }
 0x12f   :  { %v43_v13 = vrot.slane %v42_v9, 2  ;;  %v1282_v35 = vadd.f32 %v1281_v5, %v1280_v16  ;;  %v1327_v16 = vmul.f32 %v1271_v17, %v1271_v17 }
 0x130   :  { %v1085_v57 = vpop.f32.mrf.mxu2 }
 0x131   :  { %v1098_v58 = vpop.f32.mrf.mxu3  ;;  %v44_v14 = vadd.f32 %v43_v13, %v42_v9 }
 0x133   :  { %v45_v43 = vrot.slane %v44_v14, 1 }
 0x135   :  { %v46_v20 = vadd.f32 %v45_v43, %v44_v14 }
 0x137   :  { %2063 = vpush %v46_v20 }
 0x140   :  { %v1109_v36 = vpop.f32.mrf.mxu0 }
 0x141   :  { %v1110_v23 = vadd.f32 %v1109_v36, %v185_v46  ;;  %v1122_v28 = vpop.f32.mrf.mxu1  ;;  %v1284_v46 = vadd.f32 %v1283_v60, %v1270_v4  ;;  %v1339_v4 = vrot.slane %v1338_v45, 1 }
 0x143   :  { %v1123_v55 = vadd.f32 %v1122_v28, %v1110_v23  ;;  %v1285_v40 = vrot.slane %v1284_v46, 2  ;;  %v1340_v60 = vadd.f32 %v1339_v4, %v1338_v45 }
 0x145   :  { %v1286_v33 = vadd.f32 %v1285_v40, %v1284_v46 }
 0x147   :  { %v1287_v8 = vrot.slane %v1286_v33, 1 }
 0x148   :  { %v1135_v61 = vpop.f32.mrf.mxu2  ;;  %v1111_v53 = vpop.f32.mrf.mxu0 }
 0x149   :  { %v1136_v26 = vadd.f32 %v1135_v61, %v1123_v55  ;;  %v1148_v56 = vpop.f32.mrf.mxu3  ;;  %v1124_v15 = vpop.f32.mrf.mxu1  ;;  %v1288_v43 = vadd.f32 %v1287_v8, %v1286_v33  ;;  %v1289_v33 = vrot.slane %v1271_v17, 4 }
 0x14b   :  { %v1149_v49 = vadd.f32 %v1148_v56, %v1136_v26  ;;  %v1290_v21 = vadd.f32 %v1289_v33, %v1271_v17 }
 0x14d   :  { %v1257_v31 = vmax.f32 %v1149_v49, 0.0 }
 0x14f   :  { %v1262_v24 = vpack.c.bf16 %v1257_v31, %v1256_v22 }
 0x150   :  { %v1137_v18 = vpop.f32.mrf.mxu2 }
 0x151   :  { %1933 = vst [vmem:[%s3551_s4 + $0x10] sm:$0xff] %v1262_v24  ;;  %v1273_v39 = vunpack.c.l.bf16 %v1262_v24  ;;  %v1274_v0 = vunpack.c.h.bf16 %v1262_v24  ;;  %v1150_v41 = vpop.f32.mrf.mxu3 }
 0x153   :  { %v1301_v10 = vrot.slane %v1273_v39, 4  ;;  %v1307_v1 = vrot.slane %v1274_v0, 4  ;;  %v1353_v25 = vmul.f32 %v1273_v39, %v1273_v39  ;;  %v1354_v29 = vmul.f32 %v1274_v0, %v1274_v0 }
 0x155   :  { %v1302_v34 = vadd.f32 %v1301_v10, %v1273_v39  ;;  %v1308_v27 = vadd.f32 %v1307_v1, %v1274_v0  ;;  %v1357_v38 = vrot.slane %v1353_v25, 4  ;;  %v1363_v12 = vrot.slane %v1354_v29, 4 }
 0x157   :  { %v1303_v50 = vrot.slane %v1302_v34, 2  ;;  %v1309_v3 = vrot.slane %v1308_v27, 2  ;;  %v1358_v57 = vadd.f32 %v1357_v38, %v1353_v25  ;;  %v1364_v58 = vadd.f32 %v1363_v12, %v1354_v29 }
 0x159   :  { %v1304_v6 = vadd.f32 %v1303_v50, %v1302_v34  ;;  %v1310_v9 = vadd.f32 %v1309_v3, %v1308_v27  ;;  %v1359_v11 = vrot.slane %v1358_v57, 2  ;;  %v1365_v13 = vrot.slane %v1364_v58, 2 }
 0x15a   :  { %v1295_v34 = vrot.slane %v1272_v62, 4  ;;  %v1341_v50 = vrot.slane %v1327_v16, 4 }
 0x15b   :  { %v1305_v36 = vrot.slane %v1304_v6, 1  ;;  %v1311_v14 = vrot.slane %v1310_v9, 1  ;;  %v1360_v23 = vadd.f32 %v1359_v11, %v1358_v57  ;;  %v1366_v28 = vadd.f32 %v1365_v13, %v1364_v58 }
 0x15c   :  { %v1296_v5 = vadd.f32 %v1295_v34, %v1272_v62  ;;  %v1342_v8 = vadd.f32 %v1341_v50, %v1327_v16  ;;  %v1291_v11 = vrot.slane %v1290_v21, 2 }
 0x15d   :  { %v1306_v51 = vadd.f32 %v1305_v36, %v1304_v6  ;;  %v1312_v52 = vadd.f32 %v1311_v14, %v1310_v9  ;;  %v1361_v55 = vrot.slane %v1360_v23, 1  ;;  %v1367_v20 = vrot.slane %v1366_v28, 1 }
 0x15e   :  { %v1297_v13 = vrot.slane %v1296_v5, 2 }
 0x15f   :  { %v1362_v61 = vadd.f32 %v1361_v55, %v1360_v23  ;;  %v1368_v2 = vadd.f32 %v1367_v20, %v1366_v28  ;;  %v1382_v26 = vsel %vm1381_vm0, %v1282_v35, %v1306_v51  ;;  %v1383_v56 = vsel %vm1381_vm0, %v1288_v43, %v1312_v52 }
 0x160   :  { %v1387_v7 = vsel %vm1386_vm1, %v1382_v26, %v1334_v59  ;;  %v1388_v30 = vsel %vm1386_vm1, %v1383_v56, %v1340_v60  ;;  %v1161_v53 = vpop.f32.mrf.mxu0  ;;  %v1343_v23 = vrot.slane %v1342_v8, 2  ;;  %v1292_v55 = vadd.f32 %v1291_v11, %v1290_v21 }
 0x161   :  { %v1393_v49 = vsel %vm1391_vm2, %v1388_v30, %v1368_v2  ;;  %v1174_v46 = vpop.f32.mrf.mxu1  ;;  %v1392_v15 = vsel %vm1391_vm2, %v1387_v7, %v1362_v61  ;;  %v1162_v18 = vadd.f32 %v1161_v53, %v186_v48  ;;  %v1328_v48 = vmul.f32 %v1272_v62, %v1272_v62 }
 0x162   :  { %v1400_v54 = vrot.slane %v1393_v49, 4  ;;  %v1298_v20 = vadd.f32 %v1297_v13, %v1296_v5  ;;  %v1344_v26 = vadd.f32 %v1343_v23, %v1342_v8 }
 0x163   :  { %v1175_v0 = vadd.f32 %v1174_v46, %v1162_v18  ;;  %v1347_v3 = vrot.slane %v1328_v48, 4 }
 0x164   :  { %v1403_v22 = vsel %vm1402_vm3, %v1392_v15, %v1400_v54  ;;  %v1293_v54 = vrot.slane %v1292_v55, 1  ;;  %v1299_v46 = vrot.slane %v1298_v20, 1 }
 0x165   :  { %1407 = vst [vmem:[%s3552_s5] sm:$0xff] %v1403_v22  ;;  %v1348_v6 = vadd.f32 %v1347_v3, %v1328_v48 }
 0x167   :  { %v1349_v28 = vrot.slane %v1348_v6, 2 }
 0x168   :  { %v1187_v31 = vpop.f32.mrf.mxu2  ;;  %v1163_v42 = vpop.f32.mrf.mxu0  ;;  %s2064_s13 = spop %2063 }
 0x169   :  { %v1200_v32 = vpop.f32.mrf.mxu3  ;;  %v1176_v24 = vpop.f32.mrf.mxu1  ;;  %v48_v39 = vstv %s2064_s13  ;;  %v1188_v25 = vadd.f32 %v1187_v31, %v1175_v0  ;;  %v1350_v56 = vadd.f32 %v1349_v28, %v1348_v6  ;;  %v1345_v42 = vrot.slane %v1344_v26, 1 }
 0x16a   :  { %49 = vst [vmem:[%s3553_s6] sm:$0x1] %v48_v39  ;;  %v1294_v0 = vadd.f32 %v1293_v54, %v1292_v55 }
 0x16b   :  { %v1201_v38 = vadd.f32 %v1200_v32, %v1188_v25  ;;  %v1351_v24 = vrot.slane %v1350_v56, 1  ;;  %v1346_v25 = vadd.f32 %v1345_v42, %v1344_v26 }
 0x16d   :  { %v1258_v19 = vmax.f32 %v1201_v38, 0.0 }
 0x170   :  { %v1189_v63 = vpop.f32.mrf.mxu2 }
 0x171   :  { %v1202_v40 = vpop.f32.mrf.mxu3 }
 0x180   :  { %v1213_v41 = vpop.f32.mrf.mxu0 }
 0x181   :  { %v1214_v10 = vadd.f32 %v1213_v41, %v187_v37  ;;  %v1226_v1 = vpop.f32.mrf.mxu1  ;;  %v1300_v41 = vadd.f32 %v1299_v46, %v1298_v20 }
 0x183   :  { %v1227_v29 = vadd.f32 %v1226_v1, %v1214_v10 }
 0x188   :  { %v1239_v27 = vpop.f32.mrf.mxu2  ;;  %v1215_v45 = vpop.f32.mrf.mxu0 }
 0x189   :  { %v1240_v12 = vadd.f32 %v1239_v27, %v1227_v29  ;;  %v1252_v44 = vpop.f32.mrf.mxu3  ;;  %v1228_v57 = vpop.f32.mrf.mxu1  ;;  %v1352_v29 = vadd.f32 %v1351_v24, %v1350_v56 }
 0x18b   :  { %v1253_v58 = vadd.f32 %v1252_v44, %v1240_v12 }
 0x18d   :  { %v1259_v37 = vmax.f32 %v1253_v58, 0.0 }
 0x18f   :  { %v1263_v9 = vpack.c.bf16 %v1259_v37, %v1258_v19 }
 0x190   :  { %v1241_v47 = vpop.f32.mrf.mxu2 }
 0x191   :  { %1934 = vst [vmem:[%s3551_s4 + $0x18] sm:$0xff] %v1263_v9  ;;  %v1275_v4 = vunpack.c.l.bf16 %v1263_v9  ;;  %v1276_v36 = vunpack.c.h.bf16 %v1263_v9  ;;  %v1254_v14 = vpop.f32.mrf.mxu3 }
 0x193   :  { %v1313_v35 = vrot.slane %v1275_v4, 4  ;;  %v1319_v43 = vrot.slane %v1276_v36, 4  ;;  %v1355_v51 = vmul.f32 %v1275_v4, %v1275_v4  ;;  %v1356_v52 = vmul.f32 %v1276_v36, %v1276_v36 }
 0x195   :  { %v1314_v59 = vadd.f32 %v1313_v35, %v1275_v4  ;;  %v1320_v60 = vadd.f32 %v1319_v43, %v1276_v36  ;;  %v1369_v61 = vrot.slane %v1355_v51, 4  ;;  %v1375_v2 = vrot.slane %v1356_v52, 4 }
 0x197   :  { %v1315_v7 = vrot.slane %v1314_v59, 2  ;;  %v1321_v30 = vrot.slane %v1320_v60, 2  ;;  %v1370_v49 = vadd.f32 %v1369_v61, %v1355_v51  ;;  %v1376_v53 = vadd.f32 %v1375_v2, %v1356_v52 }
 0x199   :  { %v1316_v15 = vadd.f32 %v1315_v7, %v1314_v59  ;;  %v1322_v22 = vadd.f32 %v1321_v30, %v1320_v60  ;;  %v1371_v31 = vrot.slane %v1370_v49, 2  ;;  %v1377_v32 = vrot.slane %v1376_v53, 2 }
 0x19b   :  { %v1317_v63 = vrot.slane %v1316_v15, 1  ;;  %v1323_v40 = vrot.slane %v1322_v22, 1  ;;  %v1372_v18 = vadd.f32 %v1371_v31, %v1370_v49  ;;  %v1378_v39 = vadd.f32 %v1377_v32, %v1376_v53 }
 0x19d   :  { %v1318_v17 = vadd.f32 %v1317_v63, %v1316_v15  ;;  %v1324_v62 = vadd.f32 %v1323_v40, %v1322_v22  ;;  %v1373_v10 = vrot.slane %v1372_v18, 1  ;;  %v1379_v1 = vrot.slane %v1378_v39, 1 }
 0x19f   :  { %v1374_v16 = vadd.f32 %v1373_v10, %v1372_v18  ;;  %v1380_v48 = vadd.f32 %v1379_v1, %v1378_v39  ;;  %v1384_v33 = vsel %vm1381_vm0, %v1294_v0, %v1318_v17  ;;  %v1385_v34 = vsel %vm1381_vm0, %v1300_v41, %v1324_v62 }
 0x1a0   :  { %v1389_v27 = vsel %vm1386_vm1, %v1384_v33, %v1346_v25  ;;  %v1390_v38 = vsel %vm1386_vm1, %v1385_v34, %v1352_v29 }
 0x1a1   :  { %v1395_v12 = vsel %vm1391_vm2, %v1390_v38, %v1380_v48  ;;  %v1394_v45 = vsel %vm1391_vm2, %v1389_v27, %v1374_v16 }
 0x1a2   :  { %v1401_v44 = vrot.slane %v1395_v12, 4 }
 0x1a4   :  { %v1404_v50 = vsel %vm1402_vm3, %v1394_v45, %v1401_v44 }
 0x1a5   :  { %1408 = vst [vmem:[%s3552_s5 + $0x8] sm:$0xff] %v1404_v50 }

</bundles_post_ra>
